<compile_context>
chip_gen: v7x
topology: tpu7x:2x2x1
jax: 0.10.0
libtpu: 0.0.40
codegen_flags: <defaults>
</compile_context>

<pallas_src>
from functools import partial

import jax
import jax.numpy as jnp
from jax import lax
from jax.experimental import pallas as pl
from jax.experimental.pallas import tpu as pltpu

KH = KW = 4
STRIDE = 2
PAD = 1
L_CHUNK = 256   # rows of the "extended" output processed per accumulator tile


def _vmem_limit_bytes():
    # v7x has 64 MiB physical VMEM per TC -> stay at 48 MiB; v5e/v6e have 128 MiB -> use 100 MiB.
    try:
        cap = pltpu.get_tpu_info().vmem_capacity_bytes
        if cap >= 100 * 1024 * 1024:
            return 100 * 1024 * 1024
    except Exception:
        pass
    return 48 * 1024 * 1024


def _pconv_kernel(cin, cout, ho, wo, x_ref, w_ref, b_ref, out_ref):
    """PartialConv2d(k=4, s=2, p=1, multi_channel) + ReLU for one batch element.

    x_ref  : (1, 4, S1p, Ceff) bf16  parity-split padded combined input
             (Ceff = Cin gated-x channels + Cm mask channels).
    w_ref  : (4, 4*Ceff, Cout+1) bf16  per-plane weights; column Cout is the mask-sum column.
    b_ref  : (1, Cout) f32            bias.
    out_ref: (1, L, Cout+1) bf16      L = Ho*(Wo+1) extended rows (col index Wo is junk);
             channels [0:Cout] = relu(partial-conv), channel Cout = binary update mask.
    """
    wo1 = wo + 1
    L = ho * wo1
    winsize = float(cin * KH * KW)            # slide_winsize = Cin*kH*kW
    bias = b_ref[...].astype(jnp.float32)     # (1, Cout)

    for cs in range(0, L, L_CHUNK):           # static spatial chunking of the accumulator
        lc = min(L_CHUNK, L - cs)
        res = jnp.zeros((lc, cout + 1), jnp.float32)
        # One deep-K matmul per parity plane (K = 4*Ceff); the 4 within-plane taps are
        # contiguous shifted slices of the same plane, landed into one operand.
        for plane in range(4):
            pieces = [x_ref[0, plane, cs + a * wo1 + b: cs + a * wo1 + b + lc, :]
                      for a in range(2) for b in range(2)]        # order: (a,b)=(0,0),(0,1),(1,0),(1,1)
            xcat = jnp.concatenate(pieces, axis=-1)               # (lc, 4*Ceff) bf16
            res = res + jnp.dot(xcat, w_ref[plane],
                                preferred_element_type=jnp.float32)

        acc = res[:, :cout]                    # conv(x*m) without bias (f32)
        msum = res[:, cout:cout + 1]           # exact mask coverage sum (f32)
        um = jnp.clip(msum, 0.0, 1.0)          # binary update mask
        # Exact divide kept on purpose: it is only (lc,1) elements and preserves parity with
        # NVIDIA's slide_winsize/(sum+eps). (acc is exactly 0 wherever msum==0, so no inf/nan.)
        ratio = winsize / (msum + 1e-8)
        out = jnp.maximum((acc * ratio + bias) * um, 0.0)          # PartialConv bias rule + ReLU
        out_ref[0, cs:cs + lc, :] = jnp.concatenate([out, um], axis=-1).astype(out_ref.dtype)


def _parity_split(a, n, ho, wo):
    """(N, H, W, C) -> (N, 4, (Ho+1)*(Wo+1)+1, C); plane[r*2+s][hh*(Wo+1)+ww] = pad(a)[2hh+r, 2ww+s].

    Pure layout transform (no data duplication).  One extra zero row so every tap slice of
    length Ho*(Wo+1) starting at a*(Wo+1)+b stays in bounds.
    """
    c = a.shape[-1]
    ap = jnp.pad(a, ((0, 0), (PAD, PAD), (PAD, PAD), (0, 0)))
    aq = ap.reshape(n, ho + 1, 2, wo + 1, 2, c).transpose(0, 2, 4, 1, 3, 5)
    aq = aq.reshape(n, 4, (ho + 1) * (wo + 1), c)
    return jnp.pad(aq, ((0, 0), (0, 0), (0, 1), (0, 0)))


def _prep_weights(weight, bias, cin, cm):
    """Build (4, 4*Ceff, Cout+1) per-plane weights with an extra mask-sum output column."""
    cout = weight.shape[0]
    ceff = cin + cm
    mask_scale = float(cin) / float(cm)                       # 1.0 (multi-channel) or Cin (single)
    w_taps = jnp.transpose(weight, (2, 3, 1, 0))              # (KH, KW, Cin, Cout)
    wb = jnp.zeros((KH, KW, ceff, cout + 1), jnp.float32)
    wb = wb.at[:, :, :cin, :cout].set(w_taps)                 # x channels -> conv columns
    wb = wb.at[:, :, cin:, cout].set(mask_scale)              # mask channels -> msum column
    # Tap (i, j): i = 2a + r, j = 2b + s.  Regroup so plane = r*2+s leads and the within-plane
    # contraction order is (a, b, channel), matching the kernel's concat order.
    wb = wb.reshape(2, 2, 2, 2, ceff, cout + 1)               # (a, r, b, s, ceff, cout+1)
    wb = wb.transpose(1, 3, 0, 2, 4, 5)                       # (r, s, a, b, ceff, cout+1)
    wb = wb.reshape(4, 4 * ceff, cout + 1)
    return wb.astype(jnp.bfloat16), bias.reshape(1, cout).astype(jnp.float32)


def pconv_relu_layer(comb, weight, bias):
    """One PartialConv2d(k=4,s=2,p=1, multi_channel, return_mask) + ReLU.

    comb: (N, H, W, Cin+Cm) bf16 — gated input channels followed by mask channels.
    weight: (Cout, Cin, 4, 4) PyTorch layout.  bias: (Cout,).
    Returns (N, Ho, Wo, Cout+1) bf16: [relu(out) channels | update-mask channel].
    """
    N, H, W, ceff = comb.shape
    cout, cin = weight.shape[0], weight.shape[1]
    cm = ceff - cin
    Ho, Wo = H // STRIDE, W // STRIDE
    S1p = (Ho + 1) * (Wo + 1) + 1
    L = Ho * (Wo + 1)

    xq = _parity_split(comb, N, Ho, Wo)                       # (N, 4, S1p, Ceff) bf16
    wk, b2 = _prep_weights(weight, bias, cin, cm)

    out = pl.pallas_call(
        partial(_pconv_kernel, cin, cout, Ho, Wo),
        out_shape=jax.ShapeDtypeStruct((N, L, cout + 1), jnp.bfloat16),
        grid=(N,),
        in_specs=[pl.BlockSpec((1, 4, S1p, ceff), lambda n: (n, 0, 0, 0)),
                  pl.BlockSpec((4, 4 * ceff, cout + 1), lambda n: (0, 0, 0)),
                  pl.BlockSpec((1, cout), lambda n: (0, 0))],
        out_specs=pl.BlockSpec((1, L, cout + 1), lambda n: (n, 0, 0)),
        compiler_params=pltpu.CompilerParams(
            dimension_semantics=("parallel",),
            vmem_limit_bytes=_vmem_limit_bytes()),
    )(xq, wk, b2)

    # Drop the junk column; result is already the next layer's combined (x | mask) input.
    return out.reshape(N, Ho, Wo + 1, cout + 1)[:, :, :Wo, :]


def pconv_encoder(x_nchw, m_nchw, params):
    """Full 3-layer encoder.  Inputs/outputs in NCHW to match the PyTorch module."""
    x = jnp.transpose(x_nchw, (0, 2, 3, 1))
    m = jnp.transpose(m_nchw, (0, 2, 3, 1))
    comb = jnp.concatenate([x * m, m], axis=-1).astype(jnp.bfloat16)   # pre-fold x*m (exact for 0/1 m)
    for w, b in params:
        comb = pconv_relu_layer(comb, w, b)
    cout = params[-1][0].shape[0]
    x_out = jnp.transpose(comb[..., :cout].astype(jnp.float32), (0, 3, 1, 2))
    m_out = jnp.broadcast_to(
        jnp.transpose(comb[..., cout:].astype(jnp.float32), (0, 3, 1, 2)), x_out.shape)
    return x_out, m_out


def init_params(key):
    """Deterministic PyTorch-style (kaiming-uniform-ish) init for the 3 layers."""
    params = []
    for cin, cout in [(3, 32), (32, 64), (64, 128)]:
        key, kw_, kb_ = jax.random.split(key, 3)
        fan_in = cin * KH * KW
        bound = 1.0 / (fan_in ** 0.5)
        w = jax.random.uniform(kw_, (cout, cin, KH, KW), jnp.float32, -bound, bound)
        b = jax.random.uniform(kb_, (cout,), jnp.float32, -bound, bound)
        params.append((w, b))
    return params


# ---------------- pure-JAX reference (NVIDIA PartialConv2d semantics), for validation ---------
def _partial_conv_ref(x, m, w, b):
    dn = ('NCHW', 'OIHW', 'NCHW')
    raw = lax.conv_general_dilated(x * m, w, (STRIDE, STRIDE), [(PAD, PAD), (PAD, PAD)],
                                   dimension_numbers=dn)
    msum = lax.conv_general_dilated(m, jnp.ones_like(w), (STRIDE, STRIDE),
                                    [(PAD, PAD), (PAD, PAD)], dimension_numbers=dn)
    ratio = float(w.shape[1] * KH * KW) / (msum + 1e-8)
    um = jnp.clip(msum, 0.0, 1.0)
    out = (raw * ratio * um + b[None, :, None, None]) * um
    return out, um


def pconv_encoder_ref(x, m, params):
    for w, b in params:
        x, m = _partial_conv_ref(x, m, w, b)
        x = jax.nn.relu(x)
    return x, m


if __name__ == "__main__":
    key = jax.random.PRNGKey(0)
    kx, km, kp = jax.random.split(key, 3)

    N, C, H, W = 2, 3, 16, 16
    x = jax.random.normal(kx, (N, C, H, W), dtype=jnp.float32)
    # binary hole mask (1 = valid pixel, 0 = hole), multi-channel as PartialConv expects
    m = (jax.random.uniform(km, (N, C, H, W)) > 0.25).astype(jnp.float32)

    params = init_params(kp)

    encoder = jax.jit(pconv_encoder)
    x3, m3 = encoder(x, m, params)
    x3 = jax.block_until_ready(x3)
    m3 = jax.block_until_ready(m3)

    assert x3.shape == (N, 128, H // 8, W // 8), x3.shape
    assert m3.shape == (N, 128, H // 8, W // 8), m3.shape

    # Validate against the f32 reference with a bf16-appropriate tolerance.
    x3_ref, m3_ref = pconv_encoder_ref(x, m, params)
    assert bool(jnp.allclose(m3, m3_ref, atol=1e-2)), "update mask mismatch"
    assert bool(jnp.allclose(x3, x3_ref, rtol=1e-1, atol=1e-1)), \
        float(jnp.max(jnp.abs(x3 - x3_ref)))

    print("KERNEL_OK")
</pallas_src>

<mosaic_0001>
module attributes {stable_mosaic.version = 11 : i64} {
  func.func @_pconv_kernel(%arg0: i32, %arg1: memref<1x4x26x33xbf16, #tpu.memory_space<vmem>>, %arg2: memref<4x132x65xbf16, #tpu.memory_space<vmem>>, %arg3: memref<1x64xf32, #tpu.memory_space<vmem>>, %arg4: memref<1x20x65xbf16, #tpu.memory_space<vmem>>) attributes {dimension_semantics = [#tpu.dimension_semantics<parallel>], iteration_bounds = array<i64: 2>, scalar_prefetch = 0 : i64, scratch_operands = 0 : i64, tpu.core_type = #tpu.core_type<tc>, window_params = [{transform_indices = @transform_0, window_bounds = array<i64: 1, 4, 26, 33>}, {pipeline_mode = #tpu.pipeline_mode<synchronous>, transform_indices = @transform_1, window_bounds = array<i64: 4, 132, 65>}, {pipeline_mode = #tpu.pipeline_mode<synchronous>, transform_indices = @transform_2, window_bounds = array<i64: 1, 64>}, {transform_indices = @transform_3, window_bounds = array<i64: 1, 20, 65>}]} {
    %c0 = arith.constant 0 : index
    %c0_0 = arith.constant 0 : index
    %0 = vector.load %arg3[%c0, %c0_0] : memref<1x64xf32, #tpu.memory_space<vmem>>, vector<1x64xf32>
    %cst = arith.constant 0.000000e+00 : f32
    %1 = vector.broadcast %cst : f32 to vector<20x65xf32>
    %c0_1 = arith.constant 0 : index
    %c0_2 = arith.constant 0 : index
    %c0_3 = arith.constant 0 : index
    %c0_4 = arith.constant 0 : index
    %2 = vector.load %arg1[%c0_1, %c0_2, %c0_3, %c0_4] : memref<1x4x26x33xbf16, #tpu.memory_space<vmem>>, vector<1x1x20x33xbf16>
    %3 = vector.shape_cast %2 : vector<1x1x20x33xbf16> to vector<20x33xbf16>
    %c0_5 = arith.constant 0 : index
    %c0_6 = arith.constant 0 : index
    %c1 = arith.constant 1 : index
    %c0_7 = arith.constant 0 : index
    %4 = vector.load %arg1[%c0_5, %c0_6, %c1, %c0_7] : memref<1x4x26x33xbf16, #tpu.memory_space<vmem>>, vector<1x1x20x33xbf16>
    %5 = vector.shape_cast %4 : vector<1x1x20x33xbf16> to vector<20x33xbf16>
    %c0_8 = arith.constant 0 : index
    %c0_9 = arith.constant 0 : index
    %c5 = arith.constant 5 : index
    %c0_10 = arith.constant 0 : index
    %6 = vector.load %arg1[%c0_8, %c0_9, %c5, %c0_10] : memref<1x4x26x33xbf16, #tpu.memory_space<vmem>>, vector<1x1x20x33xbf16>
    %7 = vector.shape_cast %6 : vector<1x1x20x33xbf16> to vector<20x33xbf16>
    %c0_11 = arith.constant 0 : index
    %c0_12 = arith.constant 0 : index
    %c6 = arith.constant 6 : index
    %c0_13 = arith.constant 0 : index
    %8 = vector.load %arg1[%c0_11, %c0_12, %c6, %c0_13] : memref<1x4x26x33xbf16, #tpu.memory_space<vmem>>, vector<1x1x20x33xbf16>
    %9 = vector.shape_cast %8 : vector<1x1x20x33xbf16> to vector<20x33xbf16>
    %10 = tpu.concatenate %3, %5, %7, %9 in 1 : vector<20x33xbf16>, vector<20x33xbf16>, vector<20x33xbf16>, vector<20x33xbf16> -> vector<20x132xbf16>
    %c0_14 = arith.constant 0 : index
    %c0_15 = arith.constant 0 : index
    %c0_16 = arith.constant 0 : index
    %11 = vector.load %arg2[%c0_14, %c0_15, %c0_16] : memref<4x132x65xbf16, #tpu.memory_space<vmem>>, vector<1x132x65xbf16>
    %12 = vector.shape_cast %11 : vector<1x132x65xbf16> to vector<132x65xbf16>
    %cst_17 = arith.constant dense<0.000000e+00> : vector<20x65xf32>
    %13 = tpu.matmul %10, %12, %cst_17 {dimension_numbers = #tpu.dot_dimension_numbers<[1], [0], [0], [1], [0, 0, 1, 1], [], []>} : vector<20x132xbf16>, vector<132x65xbf16>, vector<20x65xf32> -> vector<20x65xf32>
    %14 = arith.addf %1, %13 : vector<20x65xf32>
    %c0_18 = arith.constant 0 : index
    %c1_19 = arith.constant 1 : index
    %c0_20 = arith.constant 0 : index
    %c0_21 = arith.constant 0 : index
    %15 = vector.load %arg1[%c0_18, %c1_19, %c0_20, %c0_21] : memref<1x4x26x33xbf16, #tpu.memory_space<vmem>>, vector<1x1x20x33xbf16>
    %16 = vector.shape_cast %15 : vector<1x1x20x33xbf16> to vector<20x33xbf16>
    %c0_22 = arith.constant 0 : index
    %c1_23 = arith.constant 1 : index
    %c1_24 = arith.constant 1 : index
    %c0_25 = arith.constant 0 : index
    %17 = vector.load %arg1[%c0_22, %c1_23, %c1_24, %c0_25] : memref<1x4x26x33xbf16, #tpu.memory_space<vmem>>, vector<1x1x20x33xbf16>
    %18 = vector.shape_cast %17 : vector<1x1x20x33xbf16> to vector<20x33xbf16>
    %c0_26 = arith.constant 0 : index
    %c1_27 = arith.constant 1 : index
    %c5_28 = arith.constant 5 : index
    %c0_29 = arith.constant 0 : index
    %19 = vector.load %arg1[%c0_26, %c1_27, %c5_28, %c0_29] : memref<1x4x26x33xbf16, #tpu.memory_space<vmem>>, vector<1x1x20x33xbf16>
    %20 = vector.shape_cast %19 : vector<1x1x20x33xbf16> to vector<20x33xbf16>
    %c0_30 = arith.constant 0 : index
    %c1_31 = arith.constant 1 : index
    %c6_32 = arith.constant 6 : index
    %c0_33 = arith.constant 0 : index
    %21 = vector.load %arg1[%c0_30, %c1_31, %c6_32, %c0_33] : memref<1x4x26x33xbf16, #tpu.memory_space<vmem>>, vector<1x1x20x33xbf16>
    %22 = vector.shape_cast %21 : vector<1x1x20x33xbf16> to vector<20x33xbf16>
    %23 = tpu.concatenate %16, %18, %20, %22 in 1 : vector<20x33xbf16>, vector<20x33xbf16>, vector<20x33xbf16>, vector<20x33xbf16> -> vector<20x132xbf16>
    %c1_34 = arith.constant 1 : index
    %c0_35 = arith.constant 0 : index
    %c0_36 = arith.constant 0 : index
    %24 = vector.load %arg2[%c1_34, %c0_35, %c0_36] : memref<4x132x65xbf16, #tpu.memory_space<vmem>>, vector<1x132x65xbf16>
    %25 = vector.shape_cast %24 : vector<1x132x65xbf16> to vector<132x65xbf16>
    %cst_37 = arith.constant dense<0.000000e+00> : vector<20x65xf32>
    %26 = tpu.matmul %23, %25, %cst_37 {dimension_numbers = #tpu.dot_dimension_numbers<[1], [0], [0], [1], [0, 0, 1, 1], [], []>} : vector<20x132xbf16>, vector<132x65xbf16>, vector<20x65xf32> -> vector<20x65xf32>
    %27 = arith.addf %14, %26 : vector<20x65xf32>
    %c0_38 = arith.constant 0 : index
    %c2 = arith.constant 2 : index
    %c0_39 = arith.constant 0 : index
    %c0_40 = arith.constant 0 : index
    %28 = vector.load %arg1[%c0_38, %c2, %c0_39, %c0_40] : memref<1x4x26x33xbf16, #tpu.memory_space<vmem>>, vector<1x1x20x33xbf16>
    %29 = vector.shape_cast %28 : vector<1x1x20x33xbf16> to vector<20x33xbf16>
    %c0_41 = arith.constant 0 : index
    %c2_42 = arith.constant 2 : index
    %c1_43 = arith.constant 1 : index
    %c0_44 = arith.constant 0 : index
    %30 = vector.load %arg1[%c0_41, %c2_42, %c1_43, %c0_44] : memref<1x4x26x33xbf16, #tpu.memory_space<vmem>>, vector<1x1x20x33xbf16>
    %31 = vector.shape_cast %30 : vector<1x1x20x33xbf16> to vector<20x33xbf16>
    %c0_45 = arith.constant 0 : index
    %c2_46 = arith.constant 2 : index
    %c5_47 = arith.constant 5 : index
    %c0_48 = arith.constant 0 : index
    %32 = vector.load %arg1[%c0_45, %c2_46, %c5_47, %c0_48] : memref<1x4x26x33xbf16, #tpu.memory_space<vmem>>, vector<1x1x20x33xbf16>
    %33 = vector.shape_cast %32 : vector<1x1x20x33xbf16> to vector<20x33xbf16>
    %c0_49 = arith.constant 0 : index
    %c2_50 = arith.constant 2 : index
    %c6_51 = arith.constant 6 : index
    %c0_52 = arith.constant 0 : index
    %34 = vector.load %arg1[%c0_49, %c2_50, %c6_51, %c0_52] : memref<1x4x26x33xbf16, #tpu.memory_space<vmem>>, vector<1x1x20x33xbf16>
    %35 = vector.shape_cast %34 : vector<1x1x20x33xbf16> to vector<20x33xbf16>
    %36 = tpu.concatenate %29, %31, %33, %35 in 1 : vector<20x33xbf16>, vector<20x33xbf16>, vector<20x33xbf16>, vector<20x33xbf16> -> vector<20x132xbf16>
    %c2_53 = arith.constant 2 : index
    %c0_54 = arith.constant 0 : index
    %c0_55 = arith.constant 0 : index
    %37 = vector.load %arg2[%c2_53, %c0_54, %c0_55] : memref<4x132x65xbf16, #tpu.memory_space<vmem>>, vector<1x132x65xbf16>
    %38 = vector.shape_cast %37 : vector<1x132x65xbf16> to vector<132x65xbf16>
    %cst_56 = arith.constant dense<0.000000e+00> : vector<20x65xf32>
    %39 = tpu.matmul %36, %38, %cst_56 {dimension_numbers = #tpu.dot_dimension_numbers<[1], [0], [0], [1], [0, 0, 1, 1], [], []>} : vector<20x132xbf16>, vector<132x65xbf16>, vector<20x65xf32> -> vector<20x65xf32>
    %40 = arith.addf %27, %39 : vector<20x65xf32>
    %c0_57 = arith.constant 0 : index
    %c3 = arith.constant 3 : index
    %c0_58 = arith.constant 0 : index
    %c0_59 = arith.constant 0 : index
    %41 = vector.load %arg1[%c0_57, %c3, %c0_58, %c0_59] : memref<1x4x26x33xbf16, #tpu.memory_space<vmem>>, vector<1x1x20x33xbf16>
    %42 = vector.shape_cast %41 : vector<1x1x20x33xbf16> to vector<20x33xbf16>
    %c0_60 = arith.constant 0 : index
    %c3_61 = arith.constant 3 : index
    %c1_62 = arith.constant 1 : index
    %c0_63 = arith.constant 0 : index
    %43 = vector.load %arg1[%c0_60, %c3_61, %c1_62, %c0_63] : memref<1x4x26x33xbf16, #tpu.memory_space<vmem>>, vector<1x1x20x33xbf16>
    %44 = vector.shape_cast %43 : vector<1x1x20x33xbf16> to vector<20x33xbf16>
    %c0_64 = arith.constant 0 : index
    %c3_65 = arith.constant 3 : index
    %c5_66 = arith.constant 5 : index
    %c0_67 = arith.constant 0 : index
    %45 = vector.load %arg1[%c0_64, %c3_65, %c5_66, %c0_67] : memref<1x4x26x33xbf16, #tpu.memory_space<vmem>>, vector<1x1x20x33xbf16>
    %46 = vector.shape_cast %45 : vector<1x1x20x33xbf16> to vector<20x33xbf16>
    %c0_68 = arith.constant 0 : index
    %c3_69 = arith.constant 3 : index
    %c6_70 = arith.constant 6 : index
    %c0_71 = arith.constant 0 : index
    %47 = vector.load %arg1[%c0_68, %c3_69, %c6_70, %c0_71] : memref<1x4x26x33xbf16, #tpu.memory_space<vmem>>, vector<1x1x20x33xbf16>
    %48 = vector.shape_cast %47 : vector<1x1x20x33xbf16> to vector<20x33xbf16>
    %49 = tpu.concatenate %42, %44, %46, %48 in 1 : vector<20x33xbf16>, vector<20x33xbf16>, vector<20x33xbf16>, vector<20x33xbf16> -> vector<20x132xbf16>
    %c3_72 = arith.constant 3 : index
    %c0_73 = arith.constant 0 : index
    %c0_74 = arith.constant 0 : index
    %50 = vector.load %arg2[%c3_72, %c0_73, %c0_74] : memref<4x132x65xbf16, #tpu.memory_space<vmem>>, vector<1x132x65xbf16>
    %51 = vector.shape_cast %50 : vector<1x132x65xbf16> to vector<132x65xbf16>
    %cst_75 = arith.constant dense<0.000000e+00> : vector<20x65xf32>
    %52 = tpu.matmul %49, %51, %cst_75 {dimension_numbers = #tpu.dot_dimension_numbers<[1], [0], [0], [1], [0, 0, 1, 1], [], []>} : vector<20x132xbf16>, vector<132x65xbf16>, vector<20x65xf32> -> vector<20x65xf32>
    %53 = arith.addf %40, %52 : vector<20x65xf32>
    %54 = vector.extract_strided_slice %53 {offsets = [0, 0], sizes = [20, 64], strides = [1, 1]} : vector<20x65xf32> to vector<20x64xf32>
    %55 = vector.extract_strided_slice %53 {offsets = [0, 64], sizes = [20, 1], strides = [1, 1]} : vector<20x65xf32> to vector<20x1xf32>
    %cst_76 = arith.constant 0.000000e+00 : f32
    %cst_77 = arith.constant 1.000000e+00 : f32
    %56 = vector.broadcast %cst_76 : f32 to vector<20x1xf32>
    %57 = arith.maximumf %56, %55 : vector<20x1xf32>
    %58 = vector.broadcast %cst_77 : f32 to vector<20x1xf32>
    %59 = arith.minimumf %58, %57 : vector<20x1xf32>
    %cst_78 = arith.constant 9.99999993E-9 : f32
    %60 = vector.broadcast %cst_78 : f32 to vector<20x1xf32>
    %61 = arith.addf %55, %60 : vector<20x1xf32>
    %cst_79 = arith.constant 5.120000e+02 : f32
    %62 = vector.broadcast %cst_79 : f32 to vector<20x1xf32>
    %63 = arith.divf %62, %61 : vector<20x1xf32>
    %64 = vector.broadcast %63 : vector<20x1xf32> to vector<20x64xf32>
    %65 = arith.mulf %54, %64 : vector<20x64xf32>
    %66 = vector.broadcast %0 : vector<1x64xf32> to vector<20x64xf32>
    %67 = arith.addf %65, %66 : vector<20x64xf32>
    %68 = vector.broadcast %59 : vector<20x1xf32> to vector<20x64xf32>
    %69 = arith.mulf %67, %68 : vector<20x64xf32>
    %cst_80 = arith.constant 0.000000e+00 : f32
    %70 = vector.broadcast %cst_80 : f32 to vector<20x64xf32>
    %71 = arith.maximumf %69, %70 : vector<20x64xf32>
    %72 = tpu.concatenate %71, %59 in 1 : vector<20x64xf32>, vector<20x1xf32> -> vector<20x65xf32>
    %73 = arith.truncf %72 : vector<20x65xf32> to vector<20x65xbf16>
    %c0_81 = arith.constant 0 : index
    %c0_82 = arith.constant 0 : index
    %c0_83 = arith.constant 0 : index
    %74 = vector.load %arg4[%c0_81, %c0_82, %c0_83] : memref<1x20x65xbf16, #tpu.memory_space<vmem>>, vector<1x20x65xbf16>
    %75 = vector.shape_cast %74 : vector<1x20x65xbf16> to vector<20x65xbf16>
    %76 = vector.shape_cast %73 : vector<20x65xbf16> to vector<1x20x65xbf16>
    tpu.vector_store %arg4[%c0_81, %c0_82, %c0_83], %76 {strides = array<i32>} : memref<1x20x65xbf16, #tpu.memory_space<vmem>>, vector<1x20x65xbf16>,
    return
  }
  func.func @transform_0(%arg0: i32) -> (i32, i32, i32, i32) {
    %c0_i32 = arith.constant 0 : i32
    %c0_i32_0 = arith.constant 0 : i32
    %c0_i32_1 = arith.constant 0 : i32
    %c0_i32_2 = arith.constant 0 : i32
    return %arg0, %c0_i32, %c0_i32_0, %c0_i32_1 : i32, i32, i32, i32
  }
  func.func @transform_1(%arg0: i32) -> (i32, i32, i32) {
    %c0_i32 = arith.constant 0 : i32
    %c0_i32_0 = arith.constant 0 : i32
    %c0_i32_1 = arith.constant 0 : i32
    %c0_i32_2 = arith.constant 0 : i32
    return %c0_i32, %c0_i32_0, %c0_i32_1 : i32, i32, i32
  }
  func.func @transform_2(%arg0: i32) -> (i32, i32) {
    %c0_i32 = arith.constant 0 : i32
    %c0_i32_0 = arith.constant 0 : i32
    %c0_i32_1 = arith.constant 0 : i32
    return %c0_i32, %c0_i32_0 : i32, i32
  }
  func.func @transform_3(%arg0: i32) -> (i32, i32, i32) {
    %c0_i32 = arith.constant 0 : i32
    %c0_i32_0 = arith.constant 0 : i32
    %c0_i32_1 = arith.constant 0 : i32
    return %arg0, %c0_i32, %c0_i32_0 : i32, i32, i32
  }
}

module attributes {stable_mosaic.version = 11 : i64} {
  func.func @_pconv_kernel(%arg0: i32, %arg1: memref<1x4x82x6xbf16, #tpu.memory_space<vmem>>, %arg2: memref<4x24x33xbf16, #tpu.memory_space<vmem>>, %arg3: memref<1x32xf32, #tpu.memory_space<vmem>>, %arg4: memref<1x72x33xbf16, #tpu.memory_space<vmem>>) attributes {dimension_semantics = [#tpu.dimension_semantics<parallel>], iteration_bounds = array<i64: 2>, scalar_prefetch = 0 : i64, scratch_operands = 0 : i64, tpu.core_type = #tpu.core_type<tc>, window_params = [{transform_indices = @transform_0, window_bounds = array<i64: 1, 4, 82, 6>}, {pipeline_mode = #tpu.pipeline_mode<synchronous>, transform_indices = @transform_1, window_bounds = array<i64: 4, 24, 33>}, {pipeline_mode = #tpu.pipeline_mode<synchronous>, transform_indices = @transform_2, window_bounds = array<i64: 1, 32>}, {transform_indices = @transform_3, window_bounds = array<i64: 1, 72, 33>}]} {
    %c0 = arith.constant 0 : index
    %c0_0 = arith.constant 0 : index
    %0 = vector.load %arg3[%c0, %c0_0] : memref<1x32xf32, #tpu.memory_space<vmem>>, vector<1x32xf32>
    %cst = arith.constant 0.000000e+00 : f32
    %1 = vector.broadcast %cst : f32 to vector<72x33xf32>
    %c0_1 = arith.constant 0 : index
    %c0_2 = arith.constant 0 : index
    %c0_3 = arith.constant 0 : index
    %c0_4 = arith.constant 0 : index
    %2 = vector.load %arg1[%c0_1, %c0_2, %c0_3, %c0_4] : memref<1x4x82x6xbf16, #tpu.memory_space<vmem>>, vector<1x1x72x6xbf16>
    %3 = vector.shape_cast %2 : vector<1x1x72x6xbf16> to vector<72x6xbf16>
    %c0_5 = arith.constant 0 : index
    %c0_6 = arith.constant 0 : index
    %c1 = arith.constant 1 : index
    %c0_7 = arith.constant 0 : index
    %4 = vector.load %arg1[%c0_5, %c0_6, %c1, %c0_7] : memref<1x4x82x6xbf16, #tpu.memory_space<vmem>>, vector<1x1x72x6xbf16>
    %5 = vector.shape_cast %4 : vector<1x1x72x6xbf16> to vector<72x6xbf16>
    %c0_8 = arith.constant 0 : index
    %c0_9 = arith.constant 0 : index
    %c9 = arith.constant 9 : index
    %c0_10 = arith.constant 0 : index
    %6 = vector.load %arg1[%c0_8, %c0_9, %c9, %c0_10] : memref<1x4x82x6xbf16, #tpu.memory_space<vmem>>, vector<1x1x72x6xbf16>
    %7 = vector.shape_cast %6 : vector<1x1x72x6xbf16> to vector<72x6xbf16>
    %c0_11 = arith.constant 0 : index
    %c0_12 = arith.constant 0 : index
    %c10 = arith.constant 10 : index
    %c0_13 = arith.constant 0 : index
    %8 = vector.load %arg1[%c0_11, %c0_12, %c10, %c0_13] : memref<1x4x82x6xbf16, #tpu.memory_space<vmem>>, vector<1x1x72x6xbf16>
    %9 = vector.shape_cast %8 : vector<1x1x72x6xbf16> to vector<72x6xbf16>
    %10 = tpu.concatenate %3, %5, %7, %9 in 1 : vector<72x6xbf16>, vector<72x6xbf16>, vector<72x6xbf16>, vector<72x6xbf16> -> vector<72x24xbf16>
    %c0_14 = arith.constant 0 : index
    %c0_15 = arith.constant 0 : index
    %c0_16 = arith.constant 0 : index
    %11 = vector.load %arg2[%c0_14, %c0_15, %c0_16] : memref<4x24x33xbf16, #tpu.memory_space<vmem>>, vector<1x24x33xbf16>
    %12 = vector.shape_cast %11 : vector<1x24x33xbf16> to vector<24x33xbf16>
    %cst_17 = arith.constant dense<0.000000e+00> : vector<72x33xf32>
    %13 = tpu.matmul %10, %12, %cst_17 {dimension_numbers = #tpu.dot_dimension_numbers<[1], [0], [0], [1], [0, 0, 1, 1], [], []>} : vector<72x24xbf16>, vector<24x33xbf16>, vector<72x33xf32> -> vector<72x33xf32>
    %14 = arith.addf %1, %13 : vector<72x33xf32>
    %c0_18 = arith.constant 0 : index
    %c1_19 = arith.constant 1 : index
    %c0_20 = arith.constant 0 : index
    %c0_21 = arith.constant 0 : index
    %15 = vector.load %arg1[%c0_18, %c1_19, %c0_20, %c0_21] : memref<1x4x82x6xbf16, #tpu.memory_space<vmem>>, vector<1x1x72x6xbf16>
    %16 = vector.shape_cast %15 : vector<1x1x72x6xbf16> to vector<72x6xbf16>
    %c0_22 = arith.constant 0 : index
    %c1_23 = arith.constant 1 : index
    %c1_24 = arith.constant 1 : index
    %c0_25 = arith.constant 0 : index
    %17 = vector.load %arg1[%c0_22, %c1_23, %c1_24, %c0_25] : memref<1x4x82x6xbf16, #tpu.memory_space<vmem>>, vector<1x1x72x6xbf16>
    %18 = vector.shape_cast %17 : vector<1x1x72x6xbf16> to vector<72x6xbf16>
    %c0_26 = arith.constant 0 : index
    %c1_27 = arith.constant 1 : index
    %c9_28 = arith.constant 9 : index
    %c0_29 = arith.constant 0 : index
    %19 = vector.load %arg1[%c0_26, %c1_27, %c9_28, %c0_29] : memref<1x4x82x6xbf16, #tpu.memory_space<vmem>>, vector<1x1x72x6xbf16>
    %20 = vector.shape_cast %19 : vector<1x1x72x6xbf16> to vector<72x6xbf16>
    %c0_30 = arith.constant 0 : index
    %c1_31 = arith.constant 1 : index
    %c10_32 = arith.constant 10 : index
    %c0_33 = arith.constant 0 : index
    %21 = vector.load %arg1[%c0_30, %c1_31, %c10_32, %c0_33] : memref<1x4x82x6xbf16, #tpu.memory_space<vmem>>, vector<1x1x72x6xbf16>
    %22 = vector.shape_cast %21 : vector<1x1x72x6xbf16> to vector<72x6xbf16>
    %23 = tpu.concatenate %16, %18, %20, %22 in 1 : vector<72x6xbf16>, vector<72x6xbf16>, vector<72x6xbf16>, vector<72x6xbf16> -> vector<72x24xbf16>
    %c1_34 = arith.constant 1 : index
    %c0_35 = arith.constant 0 : index
    %c0_36 = arith.constant 0 : index
    %24 = vector.load %arg2[%c1_34, %c0_35, %c0_36] : memref<4x24x33xbf16, #tpu.memory_space<vmem>>, vector<1x24x33xbf16>
    %25 = vector.shape_cast %24 : vector<1x24x33xbf16> to vector<24x33xbf16>
    %cst_37 = arith.constant dense<0.000000e+00> : vector<72x33xf32>
    %26 = tpu.matmul %23, %25, %cst_37 {dimension_numbers = #tpu.dot_dimension_numbers<[1], [0], [0], [1], [0, 0, 1, 1], [], []>} : vector<72x24xbf16>, vector<24x33xbf16>, vector<72x33xf32> -> vector<72x33xf32>
    %27 = arith.addf %14, %26 : vector<72x33xf32>
    %c0_38 = arith.constant 0 : index
    %c2 = arith.constant 2 : index
    %c0_39 = arith.constant 0 : index
    %c0_40 = arith.constant 0 : index
    %28 = vector.load %arg1[%c0_38, %c2, %c0_39, %c0_40] : memref<1x4x82x6xbf16, #tpu.memory_space<vmem>>, vector<1x1x72x6xbf16>
    %29 = vector.shape_cast %28 : vector<1x1x72x6xbf16> to vector<72x6xbf16>
    %c0_41 = arith.constant 0 : index
    %c2_42 = arith.constant 2 : index
    %c1_43 = arith.constant 1 : index
    %c0_44 = arith.constant 0 : index
    %30 = vector.load %arg1[%c0_41, %c2_42, %c1_43, %c0_44] : memref<1x4x82x6xbf16, #tpu.memory_space<vmem>>, vector<1x1x72x6xbf16>
    %31 = vector.shape_cast %30 : vector<1x1x72x6xbf16> to vector<72x6xbf16>
    %c0_45 = arith.constant 0 : index
    %c2_46 = arith.constant 2 : index
    %c9_47 = arith.constant 9 : index
    %c0_48 = arith.constant 0 : index
    %32 = vector.load %arg1[%c0_45, %c2_46, %c9_47, %c0_48] : memref<1x4x82x6xbf16, #tpu.memory_space<vmem>>, vector<1x1x72x6xbf16>
    %33 = vector.shape_cast %32 : vector<1x1x72x6xbf16> to vector<72x6xbf16>
    %c0_49 = arith.constant 0 : index
    %c2_50 = arith.constant 2 : index
    %c10_51 = arith.constant 10 : index
    %c0_52 = arith.constant 0 : index
    %34 = vector.load %arg1[%c0_49, %c2_50, %c10_51, %c0_52] : memref<1x4x82x6xbf16, #tpu.memory_space<vmem>>, vector<1x1x72x6xbf16>
    %35 = vector.shape_cast %34 : vector<1x1x72x6xbf16> to vector<72x6xbf16>
    %36 = tpu.concatenate %29, %31, %33, %35 in 1 : vector<72x6xbf16>, vector<72x6xbf16>, vector<72x6xbf16>, vector<72x6xbf16> -> vector<72x24xbf16>
    %c2_53 = arith.constant 2 : index
    %c0_54 = arith.constant 0 : index
    %c0_55 = arith.constant 0 : index
    %37 = vector.load %arg2[%c2_53, %c0_54, %c0_55] : memref<4x24x33xbf16, #tpu.memory_space<vmem>>, vector<1x24x33xbf16>
    %38 = vector.shape_cast %37 : vector<1x24x33xbf16> to vector<24x33xbf16>
    %cst_56 = arith.constant dense<0.000000e+00> : vector<72x33xf32>
    %39 = tpu.matmul %36, %38, %cst_56 {dimension_numbers = #tpu.dot_dimension_numbers<[1], [0], [0], [1], [0, 0, 1, 1], [], []>} : vector<72x24xbf16>, vector<24x33xbf16>, vector<72x33xf32> -> vector<72x33xf32>
    %40 = arith.addf %27, %39 : vector<72x33xf32>
    %c0_57 = arith.constant 0 : index
    %c3 = arith.constant 3 : index
    %c0_58 = arith.constant 0 : index
    %c0_59 = arith.constant 0 : index
    %41 = vector.load %arg1[%c0_57, %c3, %c0_58, %c0_59] : memref<1x4x82x6xbf16, #tpu.memory_space<vmem>>, vector<1x1x72x6xbf16>
    %42 = vector.shape_cast %41 : vector<1x1x72x6xbf16> to vector<72x6xbf16>
    %c0_60 = arith.constant 0 : index
    %c3_61 = arith.constant 3 : index
    %c1_62 = arith.constant 1 : index
    %c0_63 = arith.constant 0 : index
    %43 = vector.load %arg1[%c0_60, %c3_61, %c1_62, %c0_63] : memref<1x4x82x6xbf16, #tpu.memory_space<vmem>>, vector<1x1x72x6xbf16>
    %44 = vector.shape_cast %43 : vector<1x1x72x6xbf16> to vector<72x6xbf16>
    %c0_64 = arith.constant 0 : index
    %c3_65 = arith.constant 3 : index
    %c9_66 = arith.constant 9 : index
    %c0_67 = arith.constant 0 : index
    %45 = vector.load %arg1[%c0_64, %c3_65, %c9_66, %c0_67] : memref<1x4x82x6xbf16, #tpu.memory_space<vmem>>, vector<1x1x72x6xbf16>
    %46 = vector.shape_cast %45 : vector<1x1x72x6xbf16> to vector<72x6xbf16>
    %c0_68 = arith.constant 0 : index
    %c3_69 = arith.constant 3 : index
    %c10_70 = arith.constant 10 : index
    %c0_71 = arith.constant 0 : index
    %47 = vector.load %arg1[%c0_68, %c3_69, %c10_70, %c0_71] : memref<1x4x82x6xbf16, #tpu.memory_space<vmem>>, vector<1x1x72x6xbf16>
    %48 = vector.shape_cast %47 : vector<1x1x72x6xbf16> to vector<72x6xbf16>
    %49 = tpu.concatenate %42, %44, %46, %48 in 1 : vector<72x6xbf16>, vector<72x6xbf16>, vector<72x6xbf16>, vector<72x6xbf16> -> vector<72x24xbf16>
    %c3_72 = arith.constant 3 : index
    %c0_73 = arith.constant 0 : index
    %c0_74 = arith.constant 0 : index
    %50 = vector.load %arg2[%c3_72, %c0_73, %c0_74] : memref<4x24x33xbf16, #tpu.memory_space<vmem>>, vector<1x24x33xbf16>
    %51 = vector.shape_cast %50 : vector<1x24x33xbf16> to vector<24x33xbf16>
    %cst_75 = arith.constant dense<0.000000e+00> : vector<72x33xf32>
    %52 = tpu.matmul %49, %51, %cst_75 {dimension_numbers = #tpu.dot_dimension_numbers<[1], [0], [0], [1], [0, 0, 1, 1], [], []>} : vector<72x24xbf16>, vector<24x33xbf16>, vector<72x33xf32> -> vector<72x33xf32>
    %53 = arith.addf %40, %52 : vector<72x33xf32>
    %54 = vector.extract_strided_slice %53 {offsets = [0, 0], sizes = [72, 32], strides = [1, 1]} : vector<72x33xf32> to vector<72x32xf32>
    %55 = vector.extract_strided_slice %53 {offsets = [0, 32], sizes = [72, 1], strides = [1, 1]} : vector<72x33xf32> to vector<72x1xf32>
    %cst_76 = arith.constant 0.000000e+00 : f32
    %cst_77 = arith.constant 1.000000e+00 : f32
    %56 = vector.broadcast %cst_76 : f32 to vector<72x1xf32>
    %57 = arith.maximumf %56, %55 : vector<72x1xf32>
    %58 = vector.broadcast %cst_77 : f32 to vector<72x1xf32>
    %59 = arith.minimumf %58, %57 : vector<72x1xf32>
    %cst_78 = arith.constant 9.99999993E-9 : f32
    %60 = vector.broadcast %cst_78 : f32 to vector<72x1xf32>
    %61 = arith.addf %55, %60 : vector<72x1xf32>
    %cst_79 = arith.constant 4.800000e+01 : f32
    %62 = vector.broadcast %cst_79 : f32 to vector<72x1xf32>
    %63 = arith.divf %62, %61 : vector<72x1xf32>
    %64 = vector.broadcast %63 : vector<72x1xf32> to vector<72x32xf32>
    %65 = arith.mulf %54, %64 : vector<72x32xf32>
    %66 = vector.broadcast %0 : vector<1x32xf32> to vector<72x32xf32>
    %67 = arith.addf %65, %66 : vector<72x32xf32>
    %68 = vector.broadcast %59 : vector<72x1xf32> to vector<72x32xf32>
    %69 = arith.mulf %67, %68 : vector<72x32xf32>
    %cst_80 = arith.constant 0.000000e+00 : f32
    %70 = vector.broadcast %cst_80 : f32 to vector<72x32xf32>
    %71 = arith.maximumf %69, %70 : vector<72x32xf32>
    %72 = tpu.concatenate %71, %59 in 1 : vector<72x32xf32>, vector<72x1xf32> -> vector<72x33xf32>
    %73 = arith.truncf %72 : vector<72x33xf32> to vector<72x33xbf16>
    %c0_81 = arith.constant 0 : index
    %c0_82 = arith.constant 0 : index
    %c0_83 = arith.constant 0 : index
    %74 = vector.load %arg4[%c0_81, %c0_82, %c0_83] : memref<1x72x33xbf16, #tpu.memory_space<vmem>>, vector<1x72x33xbf16>
    %75 = vector.shape_cast %74 : vector<1x72x33xbf16> to vector<72x33xbf16>
    %76 = vector.shape_cast %73 : vector<72x33xbf16> to vector<1x72x33xbf16>
    tpu.vector_store %arg4[%c0_81, %c0_82, %c0_83], %76 {strides = array<i32>} : memref<1x72x33xbf16, #tpu.memory_space<vmem>>, vector<1x72x33xbf16>,
    return
  }
  func.func @transform_0(%arg0: i32) -> (i32, i32, i32, i32) {
    %c0_i32 = arith.constant 0 : i32
    %c0_i32_0 = arith.constant 0 : i32
    %c0_i32_1 = arith.constant 0 : i32
    %c0_i32_2 = arith.constant 0 : i32
    return %arg0, %c0_i32, %c0_i32_0, %c0_i32_1 : i32, i32, i32, i32
  }
  func.func @transform_1(%arg0: i32) -> (i32, i32, i32) {
    %c0_i32 = arith.constant 0 : i32
    %c0_i32_0 = arith.constant 0 : i32
    %c0_i32_1 = arith.constant 0 : i32
    %c0_i32_2 = arith.constant 0 : i32
    return %c0_i32, %c0_i32_0, %c0_i32_1 : i32, i32, i32
  }
  func.func @transform_2(%arg0: i32) -> (i32, i32) {
    %c0_i32 = arith.constant 0 : i32
    %c0_i32_0 = arith.constant 0 : i32
    %c0_i32_1 = arith.constant 0 : i32
    return %c0_i32, %c0_i32_0 : i32, i32
  }
  func.func @transform_3(%arg0: i32) -> (i32, i32, i32) {
    %c0_i32 = arith.constant 0 : i32
    %c0_i32_0 = arith.constant 0 : i32
    %c0_i32_1 = arith.constant 0 : i32
    return %arg0, %c0_i32, %c0_i32_0 : i32, i32, i32
  }
}

module attributes {stable_mosaic.version = 11 : i64} {
  func.func @_pconv_kernel(%arg0: i32, %arg1: memref<1x4x10x65xbf16, #tpu.memory_space<vmem>>, %arg2: memref<4x260x129xbf16, #tpu.memory_space<vmem>>, %arg3: memref<1x128xf32, #tpu.memory_space<vmem>>, %arg4: memref<1x6x129xbf16, #tpu.memory_space<vmem>>) attributes {dimension_semantics = [#tpu.dimension_semantics<parallel>], iteration_bounds = array<i64: 2>, scalar_prefetch = 0 : i64, scratch_operands = 0 : i64, tpu.core_type = #tpu.core_type<tc>, window_params = [{transform_indices = @transform_0, window_bounds = array<i64: 1, 4, 10, 65>}, {pipeline_mode = #tpu.pipeline_mode<synchronous>, transform_indices = @transform_1, window_bounds = array<i64: 4, 260, 129>}, {pipeline_mode = #tpu.pipeline_mode<synchronous>, transform_indices = @transform_2, window_bounds = array<i64: 1, 128>}, {transform_indices = @transform_3, window_bounds = array<i64: 1, 6, 129>}]} {
    %c0 = arith.constant 0 : index
    %c0_0 = arith.constant 0 : index
    %0 = vector.load %arg3[%c0, %c0_0] : memref<1x128xf32, #tpu.memory_space<vmem>>, vector<1x128xf32>
    %cst = arith.constant 0.000000e+00 : f32
    %1 = vector.broadcast %cst : f32 to vector<6x129xf32>
    %c0_1 = arith.constant 0 : index
    %c0_2 = arith.constant 0 : index
    %c0_3 = arith.constant 0 : index
    %c0_4 = arith.constant 0 : index
    %2 = vector.load %arg1[%c0_1, %c0_2, %c0_3, %c0_4] : memref<1x4x10x65xbf16, #tpu.memory_space<vmem>>, vector<1x1x6x65xbf16>
    %3 = vector.shape_cast %2 : vector<1x1x6x65xbf16> to vector<6x65xbf16>
    %c0_5 = arith.constant 0 : index
    %c0_6 = arith.constant 0 : index
    %c1 = arith.constant 1 : index
    %c0_7 = arith.constant 0 : index
    %4 = vector.load %arg1[%c0_5, %c0_6, %c1, %c0_7] : memref<1x4x10x65xbf16, #tpu.memory_space<vmem>>, vector<1x1x6x65xbf16>
    %5 = vector.shape_cast %4 : vector<1x1x6x65xbf16> to vector<6x65xbf16>
    %c0_8 = arith.constant 0 : index
    %c0_9 = arith.constant 0 : index
    %c3 = arith.constant 3 : index
    %c0_10 = arith.constant 0 : index
    %6 = vector.load %arg1[%c0_8, %c0_9, %c3, %c0_10] : memref<1x4x10x65xbf16, #tpu.memory_space<vmem>>, vector<1x1x6x65xbf16>
    %7 = vector.shape_cast %6 : vector<1x1x6x65xbf16> to vector<6x65xbf16>
    %c0_11 = arith.constant 0 : index
    %c0_12 = arith.constant 0 : index
    %c4 = arith.constant 4 : index
    %c0_13 = arith.constant 0 : index
    %8 = vector.load %arg1[%c0_11, %c0_12, %c4, %c0_13] : memref<1x4x10x65xbf16, #tpu.memory_space<vmem>>, vector<1x1x6x65xbf16>
    %9 = vector.shape_cast %8 : vector<1x1x6x65xbf16> to vector<6x65xbf16>
    %10 = tpu.concatenate %3, %5, %7, %9 in 1 : vector<6x65xbf16>, vector<6x65xbf16>, vector<6x65xbf16>, vector<6x65xbf16> -> vector<6x260xbf16>
    %c0_14 = arith.constant 0 : index
    %c0_15 = arith.constant 0 : index
    %c0_16 = arith.constant 0 : index
    %11 = vector.load %arg2[%c0_14, %c0_15, %c0_16] : memref<4x260x129xbf16, #tpu.memory_space<vmem>>, vector<1x260x129xbf16>
    %12 = vector.shape_cast %11 : vector<1x260x129xbf16> to vector<260x129xbf16>
    %cst_17 = arith.constant dense<0.000000e+00> : vector<6x129xf32>
    %13 = tpu.matmul %10, %12, %cst_17 {dimension_numbers = #tpu.dot_dimension_numbers<[1], [0], [0], [1], [0, 0, 1, 1], [], []>} : vector<6x260xbf16>, vector<260x129xbf16>, vector<6x129xf32> -> vector<6x129xf32>
    %14 = arith.addf %1, %13 : vector<6x129xf32>
    %c0_18 = arith.constant 0 : index
    %c1_19 = arith.constant 1 : index
    %c0_20 = arith.constant 0 : index
    %c0_21 = arith.constant 0 : index
    %15 = vector.load %arg1[%c0_18, %c1_19, %c0_20, %c0_21] : memref<1x4x10x65xbf16, #tpu.memory_space<vmem>>, vector<1x1x6x65xbf16>
    %16 = vector.shape_cast %15 : vector<1x1x6x65xbf16> to vector<6x65xbf16>
    %c0_22 = arith.constant 0 : index
    %c1_23 = arith.constant 1 : index
    %c1_24 = arith.constant 1 : index
    %c0_25 = arith.constant 0 : index
    %17 = vector.load %arg1[%c0_22, %c1_23, %c1_24, %c0_25] : memref<1x4x10x65xbf16, #tpu.memory_space<vmem>>, vector<1x1x6x65xbf16>
    %18 = vector.shape_cast %17 : vector<1x1x6x65xbf16> to vector<6x65xbf16>
    %c0_26 = arith.constant 0 : index
    %c1_27 = arith.constant 1 : index
    %c3_28 = arith.constant 3 : index
    %c0_29 = arith.constant 0 : index
    %19 = vector.load %arg1[%c0_26, %c1_27, %c3_28, %c0_29] : memref<1x4x10x65xbf16, #tpu.memory_space<vmem>>, vector<1x1x6x65xbf16>
    %20 = vector.shape_cast %19 : vector<1x1x6x65xbf16> to vector<6x65xbf16>
    %c0_30 = arith.constant 0 : index
    %c1_31 = arith.constant 1 : index
    %c4_32 = arith.constant 4 : index
    %c0_33 = arith.constant 0 : index
    %21 = vector.load %arg1[%c0_30, %c1_31, %c4_32, %c0_33] : memref<1x4x10x65xbf16, #tpu.memory_space<vmem>>, vector<1x1x6x65xbf16>
    %22 = vector.shape_cast %21 : vector<1x1x6x65xbf16> to vector<6x65xbf16>
    %23 = tpu.concatenate %16, %18, %20, %22 in 1 : vector<6x65xbf16>, vector<6x65xbf16>, vector<6x65xbf16>, vector<6x65xbf16> -> vector<6x260xbf16>
    %c1_34 = arith.constant 1 : index
    %c0_35 = arith.constant 0 : index
    %c0_36 = arith.constant 0 : index
    %24 = vector.load %arg2[%c1_34, %c0_35, %c0_36] : memref<4x260x129xbf16, #tpu.memory_space<vmem>>, vector<1x260x129xbf16>
    %25 = vector.shape_cast %24 : vector<1x260x129xbf16> to vector<260x129xbf16>
    %cst_37 = arith.constant dense<0.000000e+00> : vector<6x129xf32>
    %26 = tpu.matmul %23, %25, %cst_37 {dimension_numbers = #tpu.dot_dimension_numbers<[1], [0], [0], [1], [0, 0, 1, 1], [], []>} : vector<6x260xbf16>, vector<260x129xbf16>, vector<6x129xf32> -> vector<6x129xf32>
    %27 = arith.addf %14, %26 : vector<6x129xf32>
    %c0_38 = arith.constant 0 : index
    %c2 = arith.constant 2 : index
    %c0_39 = arith.constant 0 : index
    %c0_40 = arith.constant 0 : index
    %28 = vector.load %arg1[%c0_38, %c2, %c0_39, %c0_40] : memref<1x4x10x65xbf16, #tpu.memory_space<vmem>>, vector<1x1x6x65xbf16>
    %29 = vector.shape_cast %28 : vector<1x1x6x65xbf16> to vector<6x65xbf16>
    %c0_41 = arith.constant 0 : index
    %c2_42 = arith.constant 2 : index
    %c1_43 = arith.constant 1 : index
    %c0_44 = arith.constant 0 : index
    %30 = vector.load %arg1[%c0_41, %c2_42, %c1_43, %c0_44] : memref<1x4x10x65xbf16, #tpu.memory_space<vmem>>, vector<1x1x6x65xbf16>
    %31 = vector.shape_cast %30 : vector<1x1x6x65xbf16> to vector<6x65xbf16>
    %c0_45 = arith.constant 0 : index
    %c2_46 = arith.constant 2 : index
    %c3_47 = arith.constant 3 : index
    %c0_48 = arith.constant 0 : index
    %32 = vector.load %arg1[%c0_45, %c2_46, %c3_47, %c0_48] : memref<1x4x10x65xbf16, #tpu.memory_space<vmem>>, vector<1x1x6x65xbf16>
    %33 = vector.shape_cast %32 : vector<1x1x6x65xbf16> to vector<6x65xbf16>
    %c0_49 = arith.constant 0 : index
    %c2_50 = arith.constant 2 : index
    %c4_51 = arith.constant 4 : index
    %c0_52 = arith.constant 0 : index
    %34 = vector.load %arg1[%c0_49, %c2_50, %c4_51, %c0_52] : memref<1x4x10x65xbf16, #tpu.memory_space<vmem>>, vector<1x1x6x65xbf16>
    %35 = vector.shape_cast %34 : vector<1x1x6x65xbf16> to vector<6x65xbf16>
    %36 = tpu.concatenate %29, %31, %33, %35 in 1 : vector<6x65xbf16>, vector<6x65xbf16>, vector<6x65xbf16>, vector<6x65xbf16> -> vector<6x260xbf16>
    %c2_53 = arith.constant 2 : index
    %c0_54 = arith.constant 0 : index
    %c0_55 = arith.constant 0 : index
    %37 = vector.load %arg2[%c2_53, %c0_54, %c0_55] : memref<4x260x129xbf16, #tpu.memory_space<vmem>>, vector<1x260x129xbf16>
    %38 = vector.shape_cast %37 : vector<1x260x129xbf16> to vector<260x129xbf16>
    %cst_56 = arith.constant dense<0.000000e+00> : vector<6x129xf32>
    %39 = tpu.matmul %36, %38, %cst_56 {dimension_numbers = #tpu.dot_dimension_numbers<[1], [0], [0], [1], [0, 0, 1, 1], [], []>} : vector<6x260xbf16>, vector<260x129xbf16>, vector<6x129xf32> -> vector<6x129xf32>
    %40 = arith.addf %27, %39 : vector<6x129xf32>
    %c0_57 = arith.constant 0 : index
    %c3_58 = arith.constant 3 : index
    %c0_59 = arith.constant 0 : index
    %c0_60 = arith.constant 0 : index
    %41 = vector.load %arg1[%c0_57, %c3_58, %c0_59, %c0_60] : memref<1x4x10x65xbf16, #tpu.memory_space<vmem>>, vector<1x1x6x65xbf16>
    %42 = vector.shape_cast %41 : vector<1x1x6x65xbf16> to vector<6x65xbf16>
    %c0_61 = arith.constant 0 : index
    %c3_62 = arith.constant 3 : index
    %c1_63 = arith.constant 1 : index
    %c0_64 = arith.constant 0 : index
    %43 = vector.load %arg1[%c0_61, %c3_62, %c1_63, %c0_64] : memref<1x4x10x65xbf16, #tpu.memory_space<vmem>>, vector<1x1x6x65xbf16>
    %44 = vector.shape_cast %43 : vector<1x1x6x65xbf16> to vector<6x65xbf16>
    %c0_65 = arith.constant 0 : index
    %c3_66 = arith.constant 3 : index
    %c3_67 = arith.constant 3 : index
    %c0_68 = arith.constant 0 : index
    %45 = vector.load %arg1[%c0_65, %c3_66, %c3_67, %c0_68] : memref<1x4x10x65xbf16, #tpu.memory_space<vmem>>, vector<1x1x6x65xbf16>
    %46 = vector.shape_cast %45 : vector<1x1x6x65xbf16> to vector<6x65xbf16>
    %c0_69 = arith.constant 0 : index
    %c3_70 = arith.constant 3 : index
    %c4_71 = arith.constant 4 : index
    %c0_72 = arith.constant 0 : index
    %47 = vector.load %arg1[%c0_69, %c3_70, %c4_71, %c0_72] : memref<1x4x10x65xbf16, #tpu.memory_space<vmem>>, vector<1x1x6x65xbf16>
    %48 = vector.shape_cast %47 : vector<1x1x6x65xbf16> to vector<6x65xbf16>
    %49 = tpu.concatenate %42, %44, %46, %48 in 1 : vector<6x65xbf16>, vector<6x65xbf16>, vector<6x65xbf16>, vector<6x65xbf16> -> vector<6x260xbf16>
    %c3_73 = arith.constant 3 : index
    %c0_74 = arith.constant 0 : index
    %c0_75 = arith.constant 0 : index
    %50 = vector.load %arg2[%c3_73, %c0_74, %c0_75] : memref<4x260x129xbf16, #tpu.memory_space<vmem>>, vector<1x260x129xbf16>
    %51 = vector.shape_cast %50 : vector<1x260x129xbf16> to vector<260x129xbf16>
    %cst_76 = arith.constant dense<0.000000e+00> : vector<6x129xf32>
    %52 = tpu.matmul %49, %51, %cst_76 {dimension_numbers = #tpu.dot_dimension_numbers<[1], [0], [0], [1], [0, 0, 1, 1], [], []>} : vector<6x260xbf16>, vector<260x129xbf16>, vector<6x129xf32> -> vector<6x129xf32>
    %53 = arith.addf %40, %52 : vector<6x129xf32>
    %54 = vector.extract_strided_slice %53 {offsets = [0, 0], sizes = [6, 128], strides = [1, 1]} : vector<6x129xf32> to vector<6x128xf32>
    %55 = vector.extract_strided_slice %53 {offsets = [0, 128], sizes = [6, 1], strides = [1, 1]} : vector<6x129xf32> to vector<6x1xf32>
    %cst_77 = arith.constant 0.000000e+00 : f32
    %cst_78 = arith.constant 1.000000e+00 : f32
    %56 = vector.broadcast %cst_77 : f32 to vector<6x1xf32>
    %57 = arith.maximumf %56, %55 : vector<6x1xf32>
    %58 = vector.broadcast %cst_78 : f32 to vector<6x1xf32>
    %59 = arith.minimumf %58, %57 : vector<6x1xf32>
    %cst_79 = arith.constant 9.99999993E-9 : f32
    %60 = vector.broadcast %cst_79 : f32 to vector<6x1xf32>
    %61 = arith.addf %55, %60 : vector<6x1xf32>
    %cst_80 = arith.constant 1.024000e+03 : f32
    %62 = vector.broadcast %cst_80 : f32 to vector<6x1xf32>
    %63 = arith.divf %62, %61 : vector<6x1xf32>
    %64 = vector.broadcast %63 : vector<6x1xf32> to vector<6x128xf32>
    %65 = arith.mulf %54, %64 : vector<6x128xf32>
    %66 = vector.broadcast %0 : vector<1x128xf32> to vector<6x128xf32>
    %67 = arith.addf %65, %66 : vector<6x128xf32>
    %68 = vector.broadcast %59 : vector<6x1xf32> to vector<6x128xf32>
    %69 = arith.mulf %67, %68 : vector<6x128xf32>
    %cst_81 = arith.constant 0.000000e+00 : f32
    %70 = vector.broadcast %cst_81 : f32 to vector<6x128xf32>
    %71 = arith.maximumf %69, %70 : vector<6x128xf32>
    %72 = tpu.concatenate %71, %59 in 1 : vector<6x128xf32>, vector<6x1xf32> -> vector<6x129xf32>
    %73 = arith.truncf %72 : vector<6x129xf32> to vector<6x129xbf16>
    %c0_82 = arith.constant 0 : index
    %c0_83 = arith.constant 0 : index
    %c0_84 = arith.constant 0 : index
    %74 = vector.load %arg4[%c0_82, %c0_83, %c0_84] : memref<1x6x129xbf16, #tpu.memory_space<vmem>>, vector<1x6x129xbf16>
    %75 = vector.shape_cast %74 : vector<1x6x129xbf16> to vector<6x129xbf16>
    %76 = vector.shape_cast %73 : vector<6x129xbf16> to vector<1x6x129xbf16>
    tpu.vector_store %arg4[%c0_82, %c0_83, %c0_84], %76 {strides = array<i32>} : memref<1x6x129xbf16, #tpu.memory_space<vmem>>, vector<1x6x129xbf16>,
    return
  }
  func.func @transform_0(%arg0: i32) -> (i32, i32, i32, i32) {
    %c0_i32 = arith.constant 0 : i32
    %c0_i32_0 = arith.constant 0 : i32
    %c0_i32_1 = arith.constant 0 : i32
    %c0_i32_2 = arith.constant 0 : i32
    return %arg0, %c0_i32, %c0_i32_0, %c0_i32_1 : i32, i32, i32, i32
  }
  func.func @transform_1(%arg0: i32) -> (i32, i32, i32) {
    %c0_i32 = arith.constant 0 : i32
    %c0_i32_0 = arith.constant 0 : i32
    %c0_i32_1 = arith.constant 0 : i32
    %c0_i32_2 = arith.constant 0 : i32
    return %c0_i32, %c0_i32_0, %c0_i32_1 : i32, i32, i32
  }
  func.func @transform_2(%arg0: i32) -> (i32, i32) {
    %c0_i32 = arith.constant 0 : i32
    %c0_i32_0 = arith.constant 0 : i32
    %c0_i32_1 = arith.constant 0 : i32
    return %c0_i32, %c0_i32_0 : i32, i32
  }
  func.func @transform_3(%arg0: i32) -> (i32, i32, i32) {
    %c0_i32 = arith.constant 0 : i32
    %c0_i32_0 = arith.constant 0 : i32
    %c0_i32_1 = arith.constant 0 : i32
    return %arg0, %c0_i32, %c0_i32_0 : i32, i32, i32
  }
}

</mosaic_0001>

<bundles_post_ra>
// kernel: pconv_encoder.4
= control target key start
LH: loop header
LB: loop body
LE: loop exit
PB: predicated region body
PF: predicated region fallthrough
CT: control target
= control target key end

     0   :  { %s1488_s12 = smov 0   ;;  %s1862_s0 = inlined_call_operand.vmem [shape: bf16[2,4,26,33], index: 0, kind: input, shape index: {}]   ;;  %s1863_s1 = inlined_call_operand.vmem [shape: bf16[4,132,65], index: 1, kind: input, shape index: {}]   ;;  %s1864_s2 = inlined_call_operand.vmem [shape: f32[1,64], index: 2, kind: input, shape index: {}]   ;;  %s1865_s3 = inlined_call_operand.vmem [shape: bf16[2,20,65], index: 3, kind: output, shape index: {}]  }
   0x1 LB: > { %s1193_s13 = sadd.s32 4294967295, %s1461_s12   ;;  %p1197_p0 = scmp.ge.s32.totalorder %s1461_s12, 1  ;;  %s1461_s12 = sphi %s1488_s12, %s13_s12  }
   0x2   : > { %p137_p1 = scmp.lt.s32.totalorder %s1461_s12, 3 }
   0x4   : > { %p138_p2 = pnand %p1197_p0, %p137_p1 }
   0x5   : > { %p161_p3 = scmp.lt.s32.totalorder (!%p138_p2), %s1193_s13, 1  ;;  %v1463_v0 = vmov (!%p138_p2), 0   ;;  %v1409_v1 = vld [vmem:[%s1863_s1 + $0x44] sm:$0xff] (!%p138_p2)   ;;  %vm220_vm0 = vsmask.f32 (!%p138_p2), 5376  ;;  %v1411_v3 = vld [vmem:[%s1863_s1 + $0x4c] sm:$0xff] (!%p138_p2)  }
   0x6   : > { %141 = sbr.rel (%p138_p2) target bundleno = 566 (0x236), region = 32  ;;  %459 = vmatprep.subr.bf16.mxu1 (!%p138_p2), %v1463_v0  ;;  %782 = vmatprep.subr.bf16.mxu0 (!%p138_p2), %v1463_v0  ;;  %v1410_v2 = vld [vmem:[%s1863_s1 + $0x88] sm:$0xff] (!%p138_p2)   ;;  %vm192_vm1 = vsmask.f32 (!%p138_p2), 7424  ;;  %v1412_v4 = vld [vmem:[%s1863_s1 + $0x90] sm:$0xff] (!%p138_p2)   ;;  %vm245_vm2 = vcmask (!%p138_p2), 1044480  }
   0x7   : > { %460 = vmatpush1.bf16.msra.mxu1 (!%p138_p2), %v1409_v1  ;;  %783 = vmatpush1.bf16.msra.mxu0 (!%p138_p2), %v1410_v2  ;;  %v1413_v12 = vld [vmem:[%s1863_s1 + $0x54] sm:$0xff] (!%p138_p2)   ;;  %s1464_s30 = smov (!%p138_p2), 66   ;;  %v1415_v52 = vld [vmem:[%s1863_s1 + $0x5c] sm:$0xff] (!%p138_p2)   ;;  %s1465_s6 = smov (!%p138_p2), 33   ;;  %vm455_vm3 = vcmask (!%p138_p2), 1041408   ;;  %vm253_vm4 = vcmask (!%p138_p2), 269312  }
   0x8   : > { %461 = vmatprep.subr.bf16.mxu1 (!%p138_p2), %v1463_v0  ;;  %784 = vmatprep.subr.bf16.mxu0 (!%p138_p2), %v1463_v0  ;;  %v1414_v46 = vld [vmem:[%s1863_s1 + $0x98] sm:$0xff] (!%p138_p2)   ;;  %v1416_v62 = vld [vmem:[%s1863_s1 + $0xa0] sm:$0xff] (!%p138_p2)   ;;  %s1466_s11 = smov (!%p138_p2), 99   ;;  %vm450_vm5 = vcmask (!%p138_p2), 31744   ;;  %vm264_vm6 = vcmask (!%p138_p2), 809984   ;;  %vm259_vm7 = vcmask (!%p138_p2), 539648  }
   0x9   : > { %vm1116_vm8 = vcmask (!%p138_p2), 523264   ;;  %vm1133_vm9 = vcmask (!%p138_p2), 527360   ;;  %vm1136_vm10 = vcmask (!%p138_p2), 525312  }
   0xb   : > { %462 = vmatpush1.bf16.msra.mxu1 (!%p138_p2), %v1411_v3  ;;  %785 = vmatpush1.bf16.msra.mxu0 (!%p138_p2), %v1412_v4  ;;  %v1417_v4 = vld [vmem:[%s1863_s1 + $0x64] sm:$0xff] (!%p138_p2)  }
   0xc   : > { %463 = vmatprep.subr.bf16.mxu1 (!%p138_p2), %v1463_v0  ;;  %786 = vmatprep.subr.bf16.mxu0 (!%p138_p2), %v1463_v0 }
   0xd   : > { %s1867_s13 = smov (!%p161_p3, %s1193_s13), 1 }
   0xe   : > { %s1350_s18 = sshll.u32 %s1867_s13, 6  ;;  %s1373_s21 = smul.u32 12, %s1867_s13 }
   0xf   : > { %s1513_s23 = scalar_lea.vmem %s1862_s0, %s1350_s18  ;;  %464 = vmatpush1.bf16.msra.mxu1 %v1413_v12  ;;  %787 = vmatpush1.bf16.msra.mxu0 %v1414_v46 }
  0x10   : > { %v1520_v5 = vld [vmem:[%s1513_s23 + $0x14] sm:$0xf]  ;;  %v1211_v6 = vld [vmem:[%s1513_s23 + $0x10] sm:$0xc]  ;;  %v1526_v8 = vld [vmem:[%s1513_s23 + $0x18] sm:$0x1f]   ;;  %465 = vmatprep.subr.bf16.mxu1 %v1463_v0  ;;  %788 = vmatprep.subr.bf16.mxu0 %v1463_v0  ;;  %s170_s25 = scalar_lea.vmem %s1865_s3, %s1373_s21 }
  0x11   : > { %v1218_v7 = vcombine.low %v1211_v6, %v1520_v5  ;;  %v1207_v9 = vld [vmem:[%s1513_s23 + $0x10] sm:$0xf]  ;;  %v1533_v11 = vld [vmem:[%s1513_s23 + $0x18] ss:$0 sps:$4 sm:$0x77]   ;;  %v344_v15 = vshrl.u32 %v1526_v8, 16 }
  0x12   : > { %v1530_v10 = vcombine.low %v1207_v9, %v1520_v5  ;;  %v347_v16 = vshll.u32 %v1526_v8, 16  ;;  %v1261_v17 = vld [vmem:[%s1513_s23 + $0x24] sm:$0xf]  ;;  %v316_v20 = vshll.u32 %v1533_v11, 16  ;;  %v1264_v21 = vld [vmem:[%s1513_s23 + $0x20] sm:$0xc] }
  0x13   : > { %v336_v13 = vshrl.u32 %v1218_v7, 16  ;;  %v339_v14 = vshll.u32 %v1218_v7, 16  ;;  %v360_v22 = vrot.slane %v1526_v8, 3  ;;  %v346_v25 = vrot.slane %v344_v15, 2  ;;  %v1551_v30 = vld [vmem:[%s1513_s23 + $0x28] sm:$0x1f]   ;;  %466 = vmatpush1.bf16.msra.mxu1 %v1415_v52  ;;  %789 = vmatpush1.bf16.msra.mxu0 %v1416_v62 }
  0x14   : > { %v309_v18 = vshrl.u32 %v1530_v10, 16  ;;  %v311_v19 = vshll.u32 %v1530_v10, 16  ;;  %v349_v26 = vrot.slane %v347_v16, 3  ;;  %v1548_v28 = vrot.slane %v316_v20, 1  ;;  %v1260_v33 = vld [vmem:[%s1513_s23 + $0x20] sm:$0xf]  ;;  %467 = vmatprep.subr.bf16.mxu1 %v1463_v0  ;;  %790 = vmatprep.subr.bf16.mxu0 %v1463_v0 }
  0x15   : > { %v338_v23 = vrot.slane %v336_v13, 2  ;;  %v341_v24 = vrot.slane %v339_v14, 3  ;;  %v1271_v29 = vcombine.low %v1264_v21, %v1261_v17  ;;  %v1267_v34 = vld [vmem:[%s1513_s23 + $0x20] sm:$0x8]  ;;  %v669_v38 = vshrl.u32 %v1551_v30, 16 }
  0x16   : > { %v313_v27 = vrot.slane %v311_v19, 1  ;;  %v1553_v32 = vor.u32 %v349_v26, %v346_v25  ;;  %v1560_v39 = vld [vmem:[%s1513_s23 + $0x28] ss:$0 sps:$4 sm:$0x77]   ;;  %v672_v41 = vshll.u32 %v1551_v30, 16  ;;  %v1565_v42 = vcombine.low %v1260_v33, %v1261_v17 }
  0x17   : > { %v342_v31 = vor.u32 %v341_v24, %v338_v23  ;;  %v661_v36 = vshrl.u32 %v1271_v29, 16  ;;  %v664_v37 = vshll.u32 %v1271_v29, 16  ;;  %v1273_v43 = vcombine.low %v1267_v34, %v1261_v17  ;;  %v1214_v44 = vld [vmem:[%s1513_s23 + $0x10] sm:$0x8]  ;;  %v1576_v51 = vld [vmem:[%s1513_s23 + $0x34] sm:$0xf]  ;;  %468 = vmatpush1.bf16.msra.mxu1 %v1417_v4 }
  0x18   : > { %v314_v35 = vor.u32 %v313_v27, %v309_v18  ;;  %v1302_v45 = vld [vmem:[%s1513_s23 + $0x30] sm:$0xf]  ;;  %v671_v50 = vrot.slane %v669_v38, 2  ;;  %v674_v53 = vrot.slane %v672_v41, 3  ;;  %v634_v54 = vshrl.u32 %v1565_v42, 16  ;;  %469 = vmatprep.subr.bf16.mxu1 %v1463_v0  ;;  %v1418_v38 = vld [vmem:[%s1863_s1 + $0xa8] sm:$0xff]  }
  0x19   : > { %v351_v40 = vsel %vm220_vm0, %v342_v31, %v1553_v32  ;;  %v663_v48 = vrot.slane %v661_v36, 2  ;;  %v666_v49 = vrot.slane %v664_v37, 3  ;;  %v636_v55 = vshll.u32 %v1565_v42, 16  ;;  %v1588_v61 = vld [vmem:[%s1513_s23 + $0x38] ss:$0 sps:$4 sm:$0x77]   ;;  %791 = vmatpush1.bf16.msra.mxu0 %v1418_v38 }
  0x1a   : > { %352 = vrot.lane.b32.xlu1 %v351_v40, %s1464_s30  ;;  %v319_v47 = vsel %vm192_vm1, %v314_v35, %v1548_v28  ;;  %v641_v56 = vshll.u32 %v1560_v39, 16  ;;  %v684_v58 = vrot.slane %v1273_v43, 3  ;;  %v685_v59 = vrot.slane %v1551_v30, 3  ;;  %v173_v6 = vld [vmem:[%s1513_s23] sm:$0xf]  ;;  %792 = vmatprep.subr.bf16.mxu0 %v1463_v0 }
  0x1b   : > { %323 = vrot.lane.b32.xlu0 %v319_v47, %s1465_s6  ;;  %v667_v57 = vor.u32 %v666_v49, %v663_v48  ;;  %v1220_v60 = vcombine.low %v1214_v44, %v1520_v5  ;;  %v1594_v63 = vor.u32 %v674_v53, %v671_v50  ;;  %v638_v1 = vrot.slane %v636_v55, 1  ;;  %v1606_v7 = vld [vmem:[%s1513_s23 + $0x4] sm:$0xf]  ;;  %v1611_v14 = vld [vmem:[%s1513_s23 + $0x8] ss:$0 sps:$4 sm:$0x77]  }
  0x1c   : > { %v643_v2 = vrot.slane %v641_v56, 1  ;;  %v645_v3 = vshrl.u32 %v1560_v39, 16  ;;  %v1602_v5 = vcombine.low %v1302_v45, %v1576_v51  ;;  %v1306_v15 = vld [vmem:[%s1513_s23 + $0x30] sm:$0xc]  ;;  %v861_v17 = vshll.u32 %v1588_v61, 16 }
  0x1d   : > { %v676_v9 = vsel %vm220_vm0, %v667_v57, %v1594_v63  ;;  %v639_v12 = vor.u32 %v638_v1, %v634_v54  ;;  %v359_v13 = vrot.slane %v1220_v60, 3  ;;  %v686_v19 = vsel %vm245_vm2, %v684_v58, %v685_v59  ;;  %v1627_v23 = vld [vmem:[%s1513_s23 + $0x38] sm:$0x1f]   ;;  %v177_v24 = vld [vmem:[%s1513_s23] sm:$0xc]  ;;  %v1419_v48 = vld [vmem:[%s1863_s1 + $0x6c] sm:$0xff]  }
  0x1e   : > { %677 = vrot.lane.b32.xlu1 %v676_v9, %s1464_s30  ;;  %v856_v16 = vshll.u32 %v1602_v5, 16  ;;  %v1623_v20 = vcombine.low %v173_v6, %v1606_v7  ;;  %v201_v21 = vshll.u32 %v1611_v14, 16  ;;  %v320_v25 = vshrl.u32 %v1533_v11, 16  ;;  %v1641_v34 = vld [vmem:[%s1513_s23 + $0x8] sm:$0x1f]   ;;  %470 = vmatpush1.bf16.msra.mxu1 %v1419_v48  ;;  %v1421_v54 = vld [vmem:[%s1863_s1 + $0x74] sm:$0xff]  }
  0x1f   : > { %v644_v18 = vsel %vm192_vm1, %v639_v12, %v643_v2  ;;  %v1313_v26 = vcombine.low %v1306_v15, %v1576_v51  ;;  %v1204_v27 = vcombine.low %v177_v24, %v1606_v7  ;;  %v361_v29 = vsel %vm245_vm2, %v359_v13, %v360_v22  ;;  %471 = vmatprep.subr.bf16.mxu1 %v1463_v0  ;;  %v1309_v1 = vld [vmem:[%s1513_s23 + $0x30] sm:$0x8]  ;;  %v180_v9 = vld [vmem:[%s1513_s23] sm:$0x8] }
  0x20   : > { %648 = vrot.lane.b32.xlu0 %v644_v18, %s1465_s6  ;;  %v196_v31 = vshll.u32 %v1623_v20, 16  ;;  %v889_v33 = vshrl.u32 %v1627_v23, 16  ;;  %v647_v11 = vor.u32 %v645_v3, %v643_v2  ;;  %v854_v35 = vshrl.u32 %v1602_v5, 16  ;;  %v1422_v3 = vld [vmem:[%s1863_s1 + $0xb8] sm:$0xff]  }
  0x21   : > { %v858_v36 = vrot.slane %v856_v16, 1  ;;  %v1645_v37 = vrot.slane %v861_v17, 1  ;;  %v194_v39 = vshrl.u32 %v1623_v20, 16  ;;  %v1651_v40 = vrot.slane %v201_v21, 1  ;;  %v1423_v12 = vld [vmem:[%s1863_s1 + $0x7c] sm:$0xff]  }
  0x22   : > { %687 = vrot.lane.b32.xlu1 %v686_v19, %s1466_s11  ;;  %v881_v41 = vshrl.u32 %v1313_v26, 16  ;;  %v884_v43 = vshll.u32 %v1313_v26, 16  ;;  %v322_v44 = vor.u32 %v320_v25, %v1548_v28  ;;  %v198_v45 = vrot.slane %v196_v31, 1  ;;  %v1420_v28 = vld [vmem:[%s1863_s1 + $0xb0] sm:$0xff]   ;;  %472 = vmatpush1.bf16.msra.mxu1 %v1421_v54  ;;  %v1424_v16 = vld [vmem:[%s1863_s1 + $0xc0] sm:$0xff]  }
  0x23   : > { %v892_v46 = vshll.u32 %v1627_v23, 16  ;;  %v222_v47 = vshrl.u32 %v1204_v27, 16  ;;  %v891_v49 = vrot.slane %v889_v33, 2  ;;  %v225_v50 = vshll.u32 %v1204_v27, 16  ;;  %793 = vmatpush1.bf16.msra.mxu0 %v1420_v28  ;;  %473 = vmatprep.subr.bf16.mxu1 %v1463_v0 }
  0x24   : > { %362 = vrot.lane.b32.xlu0 %v361_v29, %s1466_s11  ;;  %v230_v52 = vshrl.u32 %v1641_v34, 16  ;;  %v233_v53 = vshll.u32 %v1641_v34, 16  ;;  %v883_v55 = vrot.slane %v881_v41, 2  ;;  %v886_v56 = vrot.slane %v884_v43, 3  ;;  %794 = vmatprep.subr.bf16.mxu0 %v1463_v0  ;;  %v1427_v43 = vld [vmem:[%s1863_s1] sm:$0xff]  }
  0x25   : > { %v894_v57 = vrot.slane %v892_v46, 3  ;;  %v224_v58 = vrot.slane %v222_v47, 2  ;;  %v227_v60 = vrot.slane %v225_v50, 3  ;;  %v859_v4 = vor.u32 %v858_v36, %v854_v35  ;;  %v1425_v30 = vld [vmem:[%s1863_s1 + $0x84] ss:$0 sps:$4 sm:$0x33]  }
  0x26   : > { %650 = vrot.lane.b32.xlu1 %v647_v11, %s1465_s6  ;;  %v232_v62 = vrot.slane %v230_v52, 2  ;;  %v235_v2 = vrot.slane %v233_v53, 3  ;;  %v199_v6 = vor.u32 %v198_v45, %v194_v39  ;;  %474 = vmatpush1.bf16.msra.mxu1 %v1423_v12  ;;  %v1426_v17 = vld [vmem:[%s1863_s1 + $0xc8] ss:$0 sps:$4 sm:$0x33]   ;;  %v905_v19 = vrot.slane %v1627_v23, 3 }
  0x27   : > { %795 = vmatpush1.bf16.msra.mxu0 %v1422_v3  ;;  %v864_v13 = vsel %vm192_vm1, %v859_v4, %v1645_v37  ;;  %v895_v15 = vor.u32 %v894_v57, %v891_v49  ;;  %v1206_v21 = vcombine.low %v180_v9, %v1606_v7  ;;  %475 = vmatprep.subr.bf16.mxu1 %v1463_v0  ;;  %v457_v8 = vsel %vm455_vm3, %v1425_v30, 0  ;;  %v1428_v39 = vld [vmem:[%s1863_s1 + $0xcc] sm:$0xff]   ;;  %v1429_v46 = vld [vmem:[%s1513_s23 + $0x28] ss:$0 sps:$4 sm:$0x33]   ;;  %v1432_v47 = vld [vmem:[%s1863_s1 + $0xd4] sm:$0xff]  }
  0x28   : > { %325 = vrot.lane.b32.xlu0 %v322_v44, %s1465_s6  ;;  %796 = vmatprep.subr.bf16.mxu0 %v1463_v0  ;;  %v236_v18 = vor.u32 %v235_v2, %v232_v62  ;;  %v780_v24 = vsel %vm455_vm3, %v1426_v17, 0  ;;  %v247_v26 = vrot.slane %v1641_v34, 3  ;;  %v865_v27 = vshrl.u32 %v1588_v61, 16  ;;  %v1430_v49 = vld [vmem:[%s1513_s23 + $0x18] ss:$0 sps:$4 sm:$0x33]  }
  0x29   : > { %v246_v7 = vrot.slane %v1206_v21, 3  ;;  %v205_v31 = vshrl.u32 %v1611_v14, 16  ;;  %v1431_v50 = vld [vmem:[%s1863_s1 + $0x8] sm:$0xff]   ;;  %v1434_v53 = vld [vmem:[%s1863_s1 + $0xdc] sm:$0xff]   ;;  %v1441_v17 = vld [vmem:[%s1863_s1 + $0x30] sm:$0xff]  }
  0x2a   : > { %679 = vrot.lane.b32.xlu1 %v1594_v63, %s1464_s30  ;;  %v1315_v63 = vcombine.low %v1309_v1, %v1576_v51  ;;  %v204_v51 = vsel %vm192_vm1, %v199_v6, %v1651_v40  ;;  %476 = vmatpush1.bf16.msra.mxu1 %v457_v8  ;;  %v867_v34 = vor.u32 %v865_v27, %v1645_v37  ;;  %v1435_v2 = vld [vmem:[%s1863_s1 + $0x18] sm:$0xff]   ;;  %v1438_v9 = vld [vmem:[%s1863_s1 + $0xec] sm:$0xff]   ;;  %v1437_v12 = vld [vmem:[%s1863_s1 + $0x20] sm:$0xff]  }
  0x2b   : > { %797 = vmatpush1.bf16.msra.mxu0 %v1424_v16  ;;  %565 = vmatprep.subr.bf16.mxu1 %v1463_v0  ;;  %v248_v33 = vsel %vm245_vm2, %v246_v7, %v247_v26  ;;  %v207_v11 = vor.u32 %v205_v31, %v1651_v40  ;;  %v1439_v16 = vld [vmem:[%s1863_s1 + $0x28] sm:$0xff]  }
  0x2c   : > { %354 = vrot.lane.b32.xlu0 %v1553_v32, %s1464_s30  ;;  %v887_v32 = vor.u32 %v886_v56, %v883_v55  ;;  %798 = vmatprep.subr.bf16.mxu0 %v1463_v0  ;;  %v1433_v56 = vld [vmem:[%s1863_s1 + $0x10] sm:$0xff]   ;;  %v1448_v8 = vld [vmem:[%s1863_s1 + $0x10c] ss:$0 sps:$4 sm:$0x33]  }
  0x2e   : > { %689 = vrot.lane.b32.xlu1 %v685_v59, %s1466_s11  ;;  %v228_v59 = vor.u32 %v227_v60, %v224_v58  ;;  %v896_v25 = vsel %vm220_vm0, %v887_v32, %v895_v15  ;;  %v1436_v60 = vld [vmem:[%s1863_s1 + $0xe4] sm:$0xff]   ;;  %v1440_v32 = vld [vmem:[%s1863_s1 + $0xf4] sm:$0xff]  }
  0x2f   : > { %799 = vmatpush1.bf16.msra.mxu0 %v780_v24 }
  0x30   : > { %364 = vrot.lane.b32.xlu0 %v360_v22, %s1466_s11  ;;  %v904_v22 = vrot.slane %v1315_v63, 3  ;;  %v237_v23 = vsel %vm220_vm0, %v228_v59, %v236_v18  ;;  %1002 = vmatprep.subr.bf16.mxu0 %v1463_v0 }
  0x32   : > { %868 = vrot.lane.b32.xlu1 %v864_v13, %s1465_s6  ;;  %v906_v29 = vsel %vm245_vm2, %v904_v22, %v905_v19  ;;  %v1445_v22 = vld [vmem:[%s1863_s1 + $0x38] sm:$0xff]  }
  0x34   : > { %208 = vrot.lane.b32.xlu0 %v204_v51, %s1465_s6  ;;  %v1442_v51 = vld [vmem:[%s1863_s1 + $0xfc] sm:$0xff]  }
  0x36   : > { %897 = vrot.lane.b32.xlu1 %v896_v25, %s1464_s30  ;;  %v1447_v25 = vld [vmem:[%s1863_s1 + $0x40] ss:$0 sps:$4 sm:$0x33]  }
  0x38   : > { %238 = vrot.lane.b32.xlu0 %v237_v23, %s1464_s30 }
  0x3a   : > { %907 = vrot.lane.b32.xlu1 %v906_v29, %s1466_s11 }
  0x3c   : > { %249 = vrot.lane.b32.xlu0 %v248_v33, %s1466_s11  ;;  %v563_v33 = vsel %vm455_vm3, %v1447_v25, 0 }
  0x3e   : > { %870 = vrot.lane.b32.xlu1 %v867_v34, %s1465_s6  ;;  %v1443_v34 = vld [vmem:[%s1513_s23 + $0x38] ss:$0 sps:$4 sm:$0x33]  }
  0x40   : > { %210 = vrot.lane.b32.xlu0 %v207_v11, %s1465_s6 }
  0x42   : > { %899 = vrot.lane.b32.xlu1 %v895_v15, %s1464_s30 }
  0x44   : > { %240 = vrot.lane.b32.xlu0 %v236_v18, %s1464_s30 }
  0x46   : > { %909 = vrot.lane.b32.xlu1 %v905_v19, %s1466_s11  ;;  %v1446_v19 = vld [vmem:[%s1863_s1 + $0x104] sm:$0xff]  }
  0x48   : > { %251 = vrot.lane.b32.xlu0 %v247_v26, %s1466_s11  ;;  %v1000_v26 = vsel %vm455_vm3, %v1448_v8, 0 }
  0x8c   : > { %v353_v61 = vpop.permute.xlu1 %352 }
  0x8d   : > { %v324_v14 = vpop.permute.xlu0 %323 }
  0x8e   : > { %v367_v37 = vsel %vm253_vm4, %v1530_v10, %v324_v14 }
  0x90   : > { %v678_v35 = vpop.permute.xlu1 %677 }
  0x92   : > { %v649_v36 = vpop.permute.xlu0 %648 }
  0x93   : > { %v692_v38 = vsel %vm253_vm4, %v1565_v42, %v649_v36  ;;  %v372_v42 = vsel %vm259_vm7, %v367_v37, %v353_v61  ;;  %v1444_v61 = vld [vmem:[%s1513_s23 + $0x8] ss:$0 sps:$4 sm:$0x33]  }
  0x94   : > { %v688_v40 = vpop.permute.xlu1 %687  ;;  %v697_v41 = vsel %vm259_vm7, %v692_v38, %v678_v35 }
  0x95   : > { %1300 = vmatprep.mubr.msk.bf16.mxu0 %vm450_vm5, %v688_v40  ;;  %v701_v10 = vsel %vm264_vm6, %v697_v41, %v688_v40  ;;  %v1467_v41 = vmov 64  }
  0x96   : > { %v363_v44 = vpop.permute.xlu0 %362  ;;  %815 = vmatmul.mubr.bf16.vlgmr.msra.gmra.mrb[0].mxu0 %v701_v10  ;;  %1387 = vset.pattern.permute.xlu0 %v1467_v41 }
  0x97   : > { %1247 = vmatprep.mubr.msk.bf16.mxu1 %vm450_vm5, %v363_v44  ;;  %v376_v45 = vsel %vm264_vm6, %v372_v42, %v363_v44  ;;  %1003 = vmatpush1.bf16.msra.mxu0 %v1428_v39 }
  0x98   : > { %492 = vmatmul.mubr.bf16.vlgmr.msra.gmra.mrb[0].mxu1 %v376_v45  ;;  %v651_v48 = vpop.permute.xlu1 %650  ;;  %1004 = vmatprep.subr.bf16.mxu0 %v1463_v0 }
  0x99   : > { %566 = vmatpush1.bf16.msra.mxu1 %v1427_v43  ;;  %v695_v28 = vsel %vm253_vm4, %v1429_v46, %v651_v48  ;;  %1388 = vset.pattern.permute.xlu1 %v1467_v41 }
  0x9a   : > { %567 = vmatprep.subr.bf16.mxu1 %v1463_v0  ;;  %v326_v52 = vpop.permute.xlu0 %325 }
  0x9b   : > { %1005 = vmatpush1.bf16.msra.mxu0 %v1432_v47  ;;  %v370_v55 = vsel %vm253_vm4, %v1430_v49, %v326_v52 }
  0x9c   : > { %v680_v54 = vpop.permute.xlu1 %679  ;;  %1006 = vmatprep.subr.bf16.mxu0 %v1463_v0 }
  0x9d   : > { %568 = vmatpush1.bf16.msra.mxu1 %v1431_v50  ;;  %v699_v57 = vsel %vm259_vm7, %v695_v28, %v680_v54 }
  0x9e   : > { %569 = vmatprep.subr.bf16.mxu1 %v1463_v0  ;;  %v355_v58 = vpop.permute.xlu0 %354 }
  0x9f   : > { %1007 = vmatpush1.bf16.msra.mxu0 %v1434_v53  ;;  %v374_v62 = vsel %vm259_vm7, %v370_v55, %v355_v58 }
  0xa0   : > { %v690_v1 = vpop.permute.xlu1 %689  ;;  %1008 = vmatprep.subr.bf16.mxu0 %v1463_v0 }
  0xa1   : > { %570 = vmatpush1.bf16.msra.mxu1 %v1433_v56  ;;  %1301 = vmatprep.mubr.msk.bf16.mxu0 %vm450_vm5, %v690_v1  ;;  %v704_v3 = vsel %vm264_vm6, %v699_v57, %v690_v1 }
  0xa2   : > { %571 = vmatprep.subr.bf16.mxu1 %v1463_v0  ;;  %v365_v4 = vpop.permute.xlu0 %364  ;;  %823 = vmatmul.mubr.bf16.gmra.mrb[4].mxu0 %v704_v3 }
  0xa3   : > { %1248 = vmatprep.mubr.msk.bf16.mxu1 %vm450_vm5, %v365_v4  ;;  %1009 = vmatpush1.bf16.msra.mxu0 %v1436_v60  ;;  %v379_v6 = vsel %vm264_vm6, %v374_v62, %v365_v4 }
  0xa4   : > { %500 = vmatmul.mubr.bf16.gmra.mrb[4].mxu1 %v379_v6  ;;  %v869_v63 = vpop.permute.xlu1 %868  ;;  %1010 = vmatprep.subr.bf16.mxu0 %v1463_v0 }
  0xa5   : > { %572 = vmatpush1.bf16.msra.mxu1 %v1435_v2  ;;  %v912_v23 = vsel %vm253_vm4, %v1602_v5, %v869_v63 }
  0xa6   : > { %573 = vmatprep.subr.bf16.mxu1 %v1463_v0  ;;  %v209_v13 = vpop.permute.xlu0 %208 }
  0xa7   : > { %1011 = vmatpush1.bf16.msra.mxu0 %v1438_v9  ;;  %v255_v27 = vsel %vm253_vm4, %v1623_v20, %v209_v13 }
  0xa8   : > { %v898_v15 = vpop.permute.xlu1 %897  ;;  %1012 = vmatprep.subr.bf16.mxu0 %v1463_v0 }
  0xa9   : > { %574 = vmatpush1.bf16.msra.mxu1 %v1437_v12  ;;  %v917_v29 = vsel %vm259_vm7, %v912_v23, %v898_v15 }
  0xaa   : > { %575 = vmatprep.subr.bf16.mxu1 %v1463_v0  ;;  %v239_v30 = vpop.permute.xlu0 %238 }
  0xab   : > { %1013 = vmatpush1.bf16.msra.mxu0 %v1440_v32  ;;  %v261_v5 = vsel %vm259_vm7, %v255_v27, %v239_v30 }
  0xac   : > { %v908_v59 = vpop.permute.xlu1 %907  ;;  %1014 = vmatprep.subr.bf16.mxu0 %v1463_v0 }
  0xad   : > { %576 = vmatpush1.bf16.msra.mxu1 %v1439_v16  ;;  %1342 = vmatprep.mubr.msk.bf16.mxu0 %vm450_vm5, %v908_v59  ;;  %v921_v11 = vsel %vm264_vm6, %v917_v29, %v908_v59 }
  0xae   : > { %577 = vmatprep.subr.bf16.mxu1 %v1463_v0  ;;  %v250_v18 = vpop.permute.xlu0 %249 }
  0xaf   : > { %1015 = vmatpush1.bf16.msra.mxu0 %v1442_v51  ;;  %1258 = vmatprep.mubr.msk.bf16.mxu1 %vm450_vm5, %v250_v18  ;;  %v266_v20 = vsel %vm264_vm6, %v261_v5, %v250_v18 }
  0xb0   : > { %v871_v21 = vpop.permute.xlu1 %870  ;;  %1016 = vmatprep.subr.bf16.mxu0 %v1463_v0 }
  0xb1   : > { %578 = vmatpush1.bf16.msra.mxu1 %v1441_v17  ;;  %v915_v35 = vsel %vm253_vm4, %v1443_v34, %v871_v21  ;;  %v1344_v17 = vld [vmem:[%s1864_s2] ss:$0 sm:$0xff] }
  0xb2   : > { %579 = vmatprep.subr.bf16.mxu1 %v1463_v0  ;;  %v211_v24 = vpop.permute.xlu0 %210 }
  0xb3   : > { %1017 = vmatpush1.bf16.msra.mxu0 %v1446_v19  ;;  %v258_v36 = vsel %vm253_vm4, %v1444_v61, %v211_v24 }
  0xb4   : > { %v900_v7 = vpop.permute.xlu1 %899  ;;  %1018 = vmatprep.subr.bf16.mxu0 %v1463_v0 }
  0xb5   : > { %580 = vmatpush1.bf16.msra.mxu1 %v1445_v22  ;;  %v919_v37 = vsel %vm259_vm7, %v915_v35, %v900_v7 }
  0xb6   : > { %581 = vmatprep.subr.bf16.mxu1 %v1463_v0  ;;  %v241_v31 = vpop.permute.xlu0 %240 }
  0xb7   : > { %1019 = vmatpush1.bf16.msra.mxu0 %v1000_v26  ;;  %v263_v38 = vsel %vm259_vm7, %v258_v36, %v241_v31 }
  0xb8   : > { %v910_v14 = vpop.permute.xlu1 %909 }
  0xb9   : > { %582 = vmatpush1.bf16.msra.mxu1 %v563_v33  ;;  %v924_v39 = vsel %vm264_vm6, %v919_v37, %v910_v14 }
  0xba   : > { %1035 = vmatmul.mubr.bf16.vlgmr.msra.gmra.mrb[0].mxu0 %v921_v11  ;;  %v252_v0 = vpop.permute.xlu0 %251 }
  0xbb   : > { %1343 = vmatprep.mubr.msk.bf16.mxu0 %vm450_vm5, %v910_v14  ;;  %v269_v40 = vsel %vm264_vm6, %v263_v38, %v252_v0 }
  0xbc   : > { %598 = vmatmul.mubr.bf16.vlgmr.msra.gmra.mrb[0].mxu1 %v266_v20 }
  0xbd   : > { %1259 = vmatprep.mubr.msk.bf16.mxu1 %vm450_vm5, %v252_v0 }
  0xc2   : > { %1043 = vmatmul.mubr.bf16.gmra.mrb[4].mxu0 %v924_v39 }
  0xc4   : > { %606 = vmatmul.mubr.bf16.gmra.mrb[4].mxu1 %v269_v40 }
 0x18d   : > { %v1036_v43 = vpop.f32.mrb[0].mxu0 }
 0x18e   : > { %v1038_v10 = vpop.f32.mrb[1].mxu0 }
 0x18f   : > { %v599_v44 = vpop.f32.mrb[0].mxu1  ;;  %v1039_v42 = vpop.f32.mrb[2].mxu0 }
 0x190   : > { %v1354_v45 = vadd.f32 %v1036_v43, %v599_v44  ;;  %v601_v46 = vpop.f32.mrb[1].mxu1  ;;  %v1041_v47 = vpop.f32.mrb[3].mxu0 }
 0x191   : > { %v602_v48 = vpop.f32.mrb[2].mxu1 }
 0x192   : > { %v1059_v49 = vadd.f32 1e-08, %v1354_v45  ;;  %v1355_v50 = vadd.f32 %v1039_v42, %v602_v48  ;;  %v604_v52 = vpop.f32.mrb[3].mxu1  ;;  %v1053_v28 = vmax.f32 %v1354_v45, 0.0 }
 0x194   : > { %1449 = vrcp.f32 %v1059_v49  ;;  %v1060_v53 = vadd.f32 1e-08, %v1355_v50  ;;  %v1056_v54 = vmin.f32 %v1053_v28, 1.0  ;;  %v1054_v30 = vmax.f32 %v1355_v50, 0.0 }
 0x195   : > { %v1044_v55 = vpop.f32.mrb[4].mxu0 }
 0x196   : > { %1451 = vrcp.f32 %v1060_v53  ;;  %1097 = vperm.xlu0 %1387, %v1056_v54   ;;  %v1046_v56 = vpop.f32.mrb[5].mxu0  ;;  %v1057_v51 = vmin.f32 %v1054_v30, 1.0 }
 0x197   : > { %v607_v57 = vpop.f32.mrb[4].mxu1  ;;  %v1047_v58 = vpop.f32.mrb[6].mxu0 }
 0x198   : > { %v1356_v60 = vadd.f32 %v1044_v55, %v607_v57  ;;  %v609_v62 = vpop.f32.mrb[5].mxu1  ;;  %v1048_v1 = vpop.f32.mrb[7].mxu0 }
 0x199   : > { %v610_v2 = vpop.f32.mrb[6].mxu1 }
 0x19a   : > { %v1061_v3 = vadd.f32 1e-08, %v1356_v60  ;;  %v611_v4 = vpop.f32.mrb[7].mxu1  ;;  %v1055_v63 = vmax.f32 %v1356_v60, 0.0 }
 0x19c   : > { %1453 = vrcp.f32 %v1061_v3  ;;  %v1058_v32 = vmin.f32 %v1055_v63, 1.0 }
 0x19e   : > { %v1450_v6 = vpop.eup %1449 }
 0x19f   : > { %v1063_v9 = vmul.f32 512.0, %v1450_v6 }
 0x1a0   : > { %v1452_v12 = vpop.eup %1451 }
 0x1a1   : > { %1070 = vperm.xlu0 %1387, %v1063_v9   ;;  %v1065_v13 = vmul.f32 512.0, %v1452_v12 }
 0x1a3   : > { %1075 = vperm.xlu1 %1388, %v1065_v13  }
 0x1a5   : > { %1107 = vperm.xlu0 %1387, %v1058_v32  }
 0x1a6   : > { %v1454_v15 = vpop.eup %1453 }
 0x1a7   : > { %v1067_v16 = vmul.f32 512.0, %v1454_v15 }
 0x1a9   : > { %1080 = vperm.xlu1 %1388, %v1067_v16  }
 0x1ad   : > { %1102 = vperm.xlu1 %1388, %v1057_v51  }
 0x215   : > { %v1098_v59 = vpop.permute.xlu0 %1097 }
 0x220   : > { %v1071_v18 = vpop.permute.xlu0 %1070 }
 0x221   : > { %v1083_v19 = vmul.f32 %v1354_v45, %v1071_v18 }
 0x222   : > { %v1076_v8 = vpop.permute.xlu1 %1075 }
 0x223   : > { %v1092_v21 = vadd.f32 %v1344_v17, %v1083_v19  ;;  %v1084_v25 = vmul.f32 %v1355_v50, %v1076_v8 }
 0x224   : > { %v1108_v33 = vpop.permute.xlu0 %1107 }
 0x225   : > { %v1110_v22 = vmul.f32 %v1098_v59, %v1092_v21  ;;  %v1093_v31 = vadd.f32 %v1344_v17, %v1084_v25 }
 0x227   : > { %v1113_v24 = vmax.f32 %v1110_v22, 0.0 }
 0x228   : > { %v1081_v23 = vpop.permute.xlu1 %1080 }
 0x229   : > { %v1085_v7 = vmul.f32 %v1356_v60, %v1081_v23  ;;  %v1117_v26 = vsel %vm1116_vm8, %v1113_v24, %v1056_v54 }
 0x22a   : > { %v1351_v27 = vpack.c.bf16 %v1117_v26, %v1117_v26 }
 0x22b   : > { %v1094_v29 = vadd.f32 %v1344_v17, %v1085_v7 }
 0x22c   : > { %v1103_v34 = vpop.permute.xlu1 %1102  ;;  %1134 = vst.msk [vmem:[%s170_s25] sm:$0xf] %vm1133_vm9, %v1351_v27 }
 0x22d   : > { %v1112_v5 = vmul.f32 %v1108_v33, %v1094_v29  ;;  %v1111_v11 = vmul.f32 %v1103_v34, %v1093_v31 }
 0x22f   : > { %v1115_v61 = vmax.f32 %v1112_v5, 0.0  ;;  %v1114_v14 = vmax.f32 %v1111_v11, 0.0 }
 0x231   : > { %v1118_v20 = vsel %vm1116_vm8, %v1114_v14, %v1057_v51  ;;  %v1119_v35 = vsel %vm1116_vm8, %v1115_v61, %v1058_v32 }
 0x232   : > { %v1352_v0 = vpack.c.bf16 %v1118_v20, %v1118_v20  ;;  %v1353_v36 = vpack.c.bf16 %v1119_v35, %v1119_v35 }
 0x234   : > { %1135 = vst.msk [vmem:[%s170_s25 + $0x4] sm:$0xf] %vm1133_vm9, %v1352_v0 }
 0x235   : > { %1137 = vst.msk [vmem:[%s170_s25 + $0x8] sm:$0x3] %vm1136_vm10, %v1353_v36 }
 0x236 PF: > { %s13_s12 = sadd.s32 1, %s1461_s12  }
 0x237   : > { %p10_p4 = scmp.ge.s32.totalorder %s13_s12, 4  }
 0x239   :  { %12 = sbr.rel (!%p10_p4) target bundleno = 1 (0x1), region = 68 }

// kernel: pconv_encoder.3
= control target key start
LH: loop header
LB: loop body
LE: loop exit
PB: predicated region body
PF: predicated region fallthrough
CT: control target
= control target key end

     0   :  { %s2128_s12 = smov 0   ;;  %s2927_s0 = inlined_call_operand.vmem [shape: bf16[2,4,82,6], index: 0, kind: input, shape index: {}]   ;;  %s2928_s1 = inlined_call_operand.vmem [shape: bf16[4,24,33], index: 1, kind: input, shape index: {}]   ;;  %s2929_s2 = inlined_call_operand.vmem [shape: f32[1,32], index: 2, kind: input, shape index: {}]   ;;  %s2930_s3 = inlined_call_operand.vmem [shape: bf16[2,72,33], index: 3, kind: output, shape index: {}]  }
   0x1 LB: > { %s1677_s13 = sadd.s32 4294967295, %s2100_s12   ;;  %p1681_p0 = scmp.ge.s32.totalorder %s2100_s12, 1  ;;  %s2100_s12 = sphi %s2128_s12, %s13_s12  }
   0x2   : > { %p137_p1 = scmp.lt.s32.totalorder %s2100_s12, 3 }
   0x4   : > { %p138_p2 = pnand %p1681_p0, %p137_p1 }
   0x6   : > { %141 = sbr.rel (%p138_p2) target bundleno = 631 (0x277), region = 32 }
   0xd   : > { %p161_p3 = scmp.lt.s32.totalorder %s1677_s13, 1  ;;  %v2064_v0 = vld [vmem:[%s2928_s1 + $0xc] sm:$0xff]   ;;  %v2931_v1 = vmov 0.0   ;;  %vm323_vm0 = vcmask 1046528   ;;  %vm212_vm1 = vsmask.f32 7424 }
   0xe   : > { %1857 = vmatprep.subr.bf16.mxu1 %v2931_v1  ;;  %1905 = vmatprep.subr.bf16.mxu0 %v2931_v1  ;;  %v2066_v27 = vld [vmem:[%s2928_s1 + $0x18] sm:$0xff]   ;;  %s2103_s22 = smov 18   ;;  %s2104_s23 = smov 12   ;;  %vm604_vm2 = vcmask 1043456   ;;  %vm2106_vm3 = vmmov 0   ;;  %vm343_vm4 = vcmask 48128  }
   0xf   : > { %s2961_s13 = smov (!%p161_p3, %s1677_s13), 1  ;;  %1858 = vmatpush3.bf16.msra.mxu1 %v2064_v0  ;;  %1906 = vmatpush3.bf16.msra.mxu0 %v2066_v27  ;;  %s2105_s24 = smov 6   ;;  %vm355_vm5 = vcmask 97280   ;;  %vm366_vm6 = vcmask 146432   ;;  %vm593_vm7 = vcmask 195584   ;;  %vm1565_vm8 = vcmask 261120  }
  0x10   : > { %s2002_s16 = smul.u32 176, %s2961_s13  ;;  %1859 = vmatprep.subr.bf16.mxu1 %v2931_v1  ;;  %1907 = vmatprep.subr.bf16.mxu0 %v2931_v1  ;;  %vm1612_vm9 = vcmask 265216  }
  0x11   : > { %s2003_s14 = smul.u32 36, %s2961_s13 }
  0x12   : > { %s2148_s19 = scalar_lea.vmem %s2927_s0, %s2002_s16 }
  0x13   : > { %v1740_v2 = vld [vmem:[%s2148_s19 + $0x60] sm:$0xf]  ;;  %v1741_v3 = vld [vmem:[%s2148_s19 + $0x64] sm:$0xf]  ;;  %v1742_v4 = vld [vmem:[%s2148_s19 + $0x68] sm:$0xf]  ;;  %s2872_s17 = scalar_lea.vmem %s2930_s3, %s2003_s14 }
  0x14   : > { %v1750_v5 = vld [vmem:[%s2148_s19 + $0x5c] sm:$0xe]  ;;  %v2154_v6 = vcombine.low %v1741_v3, %v1742_v4  ;;  %v1738_v7 = vld [vmem:[%s2148_s19 + $0x58] sm:$0xf]  ;;  %v2160_v11 = vcombine.low %v1740_v2, %v1741_v3  ;;  %v1698_v13 = vld [vmem:[%s2148_s19 + $0x34] sm:$0xf] }
  0x15   : > { %v1739_v8 = vld [vmem:[%s2148_s19 + $0x5c] sm:$0xf]  ;;  %v1762_v9 = vcombine.low %v1750_v5, %v1740_v2  ;;  %v1699_v14 = vld [vmem:[%s2148_s19 + $0x38] sm:$0xf]  ;;  %v1708_v17 = vld [vmem:[%s2148_s19 + $0x30] sm:$0xe] }
  0x16   : > { %v2158_v10 = vcombine.low %v1738_v7, %v1739_v8  ;;  %v1757_v12 = vcombine.low %v1739_v8, %v1740_v2  ;;  %v1700_v15 = vld [vmem:[%s2148_s19 + $0x3c] sm:$0xf]  ;;  %v925_v16 = vrot.slane %v2154_v6, 1  ;;  %v1696_v19 = vld [vmem:[%s2148_s19 + $0x2c] sm:$0xf]  ;;  %v2170_v20 = vcombine.low %v1698_v13, %v1699_v14 }
  0x17   : > { %v2167_v18 = vcombine.low %v1699_v14, %v1700_v15  ;;  %v880_v21 = vshll.u32 %v2154_v6, 16  ;;  %v924_v22 = vrot.slane %v1762_v9, 1  ;;  %v1720_v23 = vcombine.low %v1708_v17, %v1698_v13  ;;  %v1697_v24 = vld [vmem:[%s2148_s19 + $0x30] sm:$0xf]  ;;  %v1743_v40 = vld [vmem:[%s2148_s19 + $0x6c] sm:$0xf] }
  0x18   : > { %v873_v25 = vshrl.u32 %v1757_v12, 16  ;;  %v875_v26 = vshll.u32 %v1757_v12, 16  ;;  %v2178_v29 = vcombine.low %v1696_v19, %v1697_v24  ;;  %v1715_v30 = vcombine.low %v1697_v24, %v1698_v13  ;;  %v1701_v45 = vld [vmem:[%s2148_s19 + $0x40] sm:$0xf]  ;;  %v1744_v54 = vld [vmem:[%s2148_s19 + $0x70] sm:$0xf] }
  0x19   : > { %v531_v28 = vrot.slane %v2167_v18, 1  ;;  %v486_v31 = vshll.u32 %v2167_v18, 16  ;;  %v926_v32 = vsel %vm323_vm0, %v924_v22, %v925_v16  ;;  %v530_v33 = vrot.slane %v1720_v23, 1  ;;  %v1702_v3 = vld [vmem:[%s2148_s19 + $0x44] sm:$0xf] }
  0x1a   : > { %v428_v34 = vshll.u32 %v2170_v20, 16  ;;  %v877_v35 = vrot.slane %v875_v26, 1  ;;  %933 = vrot.lane.b32.xlu1 %v926_v32, %s2103_s22  ;;  %v479_v36 = vshrl.u32 %v1715_v30, 16  ;;  %v481_v37 = vshll.u32 %v1715_v30, 16  ;;  %v1703_v22 = vld [vmem:[%s2148_s19 + $0x48] sm:$0xf] }
  0x1b   : > { %v488_v38 = vrot.slane %v486_v31, 1  ;;  %v421_v39 = vshrl.u32 %v2178_v29, 16  ;;  %v532_v41 = vsel %vm323_vm0, %v530_v33, %v531_v28  ;;  %v423_v42 = vshll.u32 %v2178_v29, 16  ;;  %v2226_v24 = vld [vmem:[%s2148_s19 + $0x78] sm:$0xf] }
  0x1c   : > { %v430_v43 = vrot.slane %v428_v34, 1  ;;  %v878_v44 = vor.u32 %v877_v35, %v873_v25  ;;  %539 = vrot.lane.b32.xlu0 %v532_v41, %s2103_s22  ;;  %v483_v46 = vrot.slane %v481_v37, 1  ;;  %v882_v47 = vrot.slane %v880_v21, 1  ;;  %v1745_v21 = vld [vmem:[%s2148_s19 + $0x74] sm:$0xf]  ;;  %2942 = vst [vmem:[#allocation2_spill] sm:$0xff] %v2226_v24 }
  0x1d   : > { %v815_v48 = vshrl.u32 %v2158_v10, 16  ;;  %v817_v49 = vshll.u32 %v2158_v10, 16  ;;  %v425_v50 = vrot.slane %v423_v42, 1  ;;  %v822_v51 = vshll.u32 %v2160_v11, 16  ;;  %v2233_v31 = vld [vmem:[%s2148_s19 + $0x4c] sm:$0xf] }
  0x1e   : > { %v2198_v52 = vcombine.low %v1742_v4, %v1743_v40  ;;  %v826_v53 = vshrl.u32 %v2160_v11, 16  ;;  %v484_v55 = vor.u32 %v483_v46, %v479_v36  ;;  %v2202_v57 = vcombine.low %v1700_v15, %v1701_v45  ;;  %2943 = vst [vmem:[#allocation3_spill] sm:$0xff] %v2233_v31  ;;  %v1747_v42 = vld [vmem:[%s2148_s19 + $0x7c] sm:$0x1] }
  0x1f   : > { %v819_v56 = vrot.slane %v817_v49, 1  ;;  %v426_v58 = vor.u32 %v425_v50, %v421_v39  ;;  %v824_v59 = vrot.slane %v822_v51, 1  ;;  %v432_v61 = vshrl.u32 %v2170_v20, 16  ;;  %v1705_v50 = vld [vmem:[%s2148_s19 + $0x50] sm:$0x1] }
  0x20   : > { %v830_v60 = vshll.u32 %v2198_v52, 16  ;;  %v489_v62 = vsel %vm212_vm1, %v484_v55, %v488_v38  ;;  %v436_v0 = vshll.u32 %v2202_v57, 16  ;;  %v2208_v2 = vcombine.low %v1743_v40, %v1744_v54 }
  0x21   : > { %v820_v63 = vor.u32 %v819_v56, %v815_v48  ;;  %517 = vrot.lane.b32.xlu1 %v489_v62, %s2104_s23  ;;  %v431_v4 = vsel %vm212_vm1, %v426_v58, %v430_v43  ;;  %v883_v5 = vsel %vm212_vm1, %v878_v44, %v882_v47  ;;  %v828_v7 = vor.u32 %v826_v53, %v824_v59  ;;  %v2271_v58 = vld [vmem:[%s2148_s19 + $0x7c] sm:$0x1f]  }
  0x22   : > { %459 = vrot.lane.b32.xlu0 %v431_v4, %s2105_s24  ;;  %v832_v8 = vrot.slane %v830_v60, 1  ;;  %v434_v9 = vor.u32 %v432_v61, %v430_v43  ;;  %v884_v12 = vshrl.u32 %v2154_v6, 16  ;;  %v888_v13 = vshll.u32 %v2208_v2, 16 }
  0x23   : > { %v825_v14 = vsel %vm212_vm1, %v820_v63, %v824_v59  ;;  %v438_v15 = vrot.slane %v436_v0, 1  ;;  %v2218_v17 = vcombine.low %v1701_v45, %v1702_v3  ;;  %v490_v19 = vshrl.u32 %v2167_v18, 16  ;;  %v2282_v63 = vld [vmem:[%s2148_s19 + $0x50] sm:$0x1f]  }
  0x24   : > { %v833_v25 = vsel %vm212_vm1, %v828_v7, %v832_v8  ;;  %v886_v26 = vor.u32 %v884_v12, %v882_v47  ;;  %v890_v27 = vrot.slane %v888_v13, 1  ;;  %v2230_v30 = vcombine.low %v1744_v54, %v1745_v21 }
  0x25   : > { %911 = vrot.lane.b32.xlu1 %v883_v5, %s2104_s23  ;;  %v494_v23 = vshll.u32 %v2218_v17, 16  ;;  %v439_v32 = vsel %vm212_vm1, %v434_v9, %v438_v15  ;;  %v492_v33 = vor.u32 %v490_v19, %v488_v38  ;;  %v2236_v35 = vcombine.low %v1702_v3, %v1703_v22 }
  0x26   : > { %853 = vrot.lane.b32.xlu0 %v825_v14, %s2105_s24  ;;  %v2239_v36 = vcombine.low %v1745_v21, %v2226_v24  ;;  %v2243_v37 = vcombine.low %v1703_v22, %v2233_v31  ;;  %v891_v39 = vsel %vm212_vm1, %v886_v26, %v890_v27  ;;  %v927_v40 = vrot.slane %v2208_v2, 1 }
  0x27   : > { %v496_v34 = vrot.slane %v494_v23, 1  ;;  %v834_v38 = vshrl.u32 %v2198_v52, 16  ;;  %v838_v41 = vshll.u32 %v2230_v30, 16  ;;  %v533_v44 = vrot.slane %v2218_v17, 1 }
  0x28   : > { %v440_v45 = vshrl.u32 %v2202_v57, 16  ;;  %v444_v46 = vshll.u32 %v2236_v35, 16  ;;  %v892_v47 = vshrl.u32 %v2208_v2, 16  ;;  %v896_v48 = vshll.u32 %v2239_v36, 16 }
  0x29   : > { %855 = vrot.lane.b32.xlu1 %v833_v25, %s2105_s24  ;;  %v497_v43 = vsel %vm212_vm1, %v492_v33, %v496_v34  ;;  %v498_v49 = vshrl.u32 %v2218_v17, 16  ;;  %v502_v51 = vshll.u32 %v2243_v37, 16  ;;  %v2262_v53 = vcombine.low %v2226_v24, %v1747_v42 }
  0x2a   : > { %461 = vrot.lane.b32.xlu0 %v439_v32, %s2105_s24  ;;  %v928_v54 = vsel %vm323_vm0, %v925_v16, %v927_v40  ;;  %v836_v55 = vor.u32 %v834_v38, %v832_v8  ;;  %v840_v56 = vrot.slane %v838_v41, 1  ;;  %v534_v59 = vsel %vm323_vm0, %v531_v28, %v533_v44 }
  0x2b   : > { %v442_v60 = vor.u32 %v440_v45, %v438_v15  ;;  %v446_v61 = vrot.slane %v444_v46, 1  ;;  %v2279_v62 = vcombine.low %v2233_v31, %v1705_v50  ;;  %v894_v6 = vor.u32 %v892_v47, %v890_v27  ;;  %v2309_v45 = vld [vmem:[%s2148_s19 + $0x94] sm:$0xf] }
  0x2c   : > { %v898_v0 = vrot.slane %v896_v48, 1  ;;  %v500_v16 = vor.u32 %v498_v49, %v496_v34  ;;  %v504_v3 = vrot.slane %v502_v51, 1  ;;  %v842_v4 = vshrl.u32 %v2230_v30, 16  ;;  %v1776_v48 = vld [vmem:[%s2148_s19 + $0x90] sm:$0xf] }
  0x2d   : > { %913 = vrot.lane.b32.xlu1 %v891_v39, %s2104_s23  ;;  %v846_v5 = vshll.u32 %v2262_v53, 16  ;;  %v448_v18 = vshrl.u32 %v2236_v35, 16  ;;  %v841_v28 = vsel %vm212_vm1, %v836_v55, %v840_v56  ;;  %v900_v7 = vshrl.u32 %v2239_v36, 16  ;;  %v173_v49 = vld [vmem:[%s2148_s19] sm:$0xf] }
  0x2e   : > { %519 = vrot.lane.b32.xlu0 %v497_v43, %s2104_s23  ;;  %v904_v8 = vshll.u32 %v2271_v58, 16  ;;  %v506_v9 = vshrl.u32 %v2243_v37, 16  ;;  %v447_v12 = vsel %vm212_vm1, %v442_v60, %v446_v61  ;;  %v452_v13 = vshll.u32 %v2279_v62, 16  ;;  %v1775_v43 = vld [vmem:[%s2148_s19 + $0x8c] sm:$0xf] }
  0x2f   : > { %v510_v14 = vshll.u32 %v2282_v63, 16  ;;  %v899_v15 = vsel %vm212_vm1, %v894_v6, %v898_v0  ;;  %v929_v19 = vrot.slane %v2239_v36, 1  ;;  %v535_v21 = vrot.slane %v2243_v37, 1  ;;  %v1773_v36 = vld [vmem:[%s2148_s19 + $0x84] sm:$0xf] }
  0x30   : > { %v505_v22 = vsel %vm212_vm1, %v500_v16, %v504_v3  ;;  %v844_v23 = vor.u32 %v842_v4, %v840_v56  ;;  %v848_v25 = vrot.slane %v846_v5, 1  ;;  %v450_v26 = vor.u32 %v448_v18, %v446_v61  ;;  %v1774_v37 = vld [vmem:[%s2148_s19 + $0x88] sm:$0xf]  ;;  %v174_v56 = vld [vmem:[%s2148_s19 + $0x4] sm:$0xf] }
  0x31   : > { %935 = vrot.lane.b32.xlu1 %v928_v54, %s2103_s22  ;;  %v902_v27 = vor.u32 %v900_v7, %v898_v0  ;;  %v906_v32 = vrot.slane %v904_v8, 1  ;;  %v508_v33 = vor.u32 %v506_v9, %v504_v3  ;;  %v2934_v34 = vrot.slane %v2271_v58, 1  ;;  %v2325_v54 = vld [vmem:[%s2148_s19 + $0x10] sm:$0xf]  ;;  %v176_v60 = vld [vmem:[%s2148_s19 + $0xc] sm:$0xf] }
  0x32   : > { %541 = vrot.lane.b32.xlu0 %v534_v59, %s2103_s22  ;;  %v454_v39 = vrot.slane %v452_v13, 1  ;;  %v512_v38 = vrot.slane %v510_v14, 1  ;;  %v2933_v41 = vrot.slane %v2282_v63, 1  ;;  %v850_v42 = vshrl.u32 %v2262_v53, 16  ;;  %v175_v59 = vld [vmem:[%s2148_s19 + $0x8] sm:$0xf] }
  0x33   : > { %v930_v46 = vsel %vm323_vm0, %v927_v40, %v929_v19  ;;  %v456_v47 = vshrl.u32 %v2279_v62, 16  ;;  %v536_v50 = vsel %vm323_vm0, %v533_v44, %v535_v21  ;;  %v849_v51 = vsel %vm212_vm1, %v844_v23, %v848_v25  ;;  %v1785_v40 = vld [vmem:[%s2148_s19 + $0x88] sm:$0xe] }
  0x34   : > { %v908_v53 = vshrl.u32 %v2271_v58, 16  ;;  %v514_v2 = vshrl.u32 %v2282_v63, 16  ;;  %v907_v55 = vsel %vm212_vm1, %v902_v27, %v906_v32  ;;  %v2333_v17 = vsel %vm323_vm0, %v929_v19, %v2934_v34 }
  0x35   : > { %857 = vrot.lane.b32.xlu1 %v841_v28, %s2105_s24  ;;  %v2335_v44 = vcombine.low %v1773_v36, %v1774_v37  ;;  %v2341_v61 = vcombine.low %v1776_v48, %v2309_v45  ;;  %v455_v62 = vsel %vm212_vm1, %v450_v26, %v454_v39  ;;  %v513_v6 = vsel %vm212_vm1, %v508_v33, %v512_v38  ;;  %v185_v28 = vld [vmem:[%s2148_s19 + $0x4] sm:$0xe] }
  0x36   : > { %463 = vrot.lane.b32.xlu0 %v447_v12, %s2105_s24  ;;  %v2348_v0 = vsel %vm323_vm0, %v535_v21, %v2933_v41  ;;  %v2350_v16 = vor.u32 %v850_v42, %v848_v25  ;;  %v2352_v3 = vor.u32 %v456_v47, %v454_v39  ;;  %v2354_v4 = vcombine.low %v1775_v43, %v1776_v48  ;;  %v1779_v21 = vld [vmem:[%s2148_s19 + $0x9c] sm:$0xf]  ;;  %v2385_v39 = vld [vmem:[%s2148_s19 + $0x98] sm:$0xf]  ;;  %v2425_v48 = vld [vmem:[%s2148_s19 + $0xa4] sm:$0xf] }
  0x37   : > { %2944 = vst [vmem:[#allocation4_spill] sm:$0xff] %v2335_v44  ;;  %v2357_v5 = vcombine.low %v176_v60, %v2325_v54  ;;  %v1797_v18 = vcombine.low %v1785_v40, %v1775_v43  ;;  %v2361_v7 = vor.u32 %v908_v53, %v906_v32  ;;  %v2363_v8 = vor.u32 %v514_v2, %v512_v38 }
  0x38   : > { %v2365_v9 = vcombine.low %v173_v49, %v174_v56  ;;  %v2367_v12 = vcombine.low %v175_v59, %v176_v60  ;;  %v1124_v13 = vshll.u32 %v2335_v44, 16  ;;  %v1187_v14 = vshll.u32 %v2341_v61, 16  ;;  %v2407_v60 = vld [vmem:[%s2148_s19 + $0x14] sm:$0xf]  ;;  %2946 = vst [vmem:[#allocation6_spill] sm:$0xff] %v2425_v48 }
  0x39   : > { %915 = vrot.lane.b32.xlu1 %v899_v15, %s2104_s23  ;;  %v1231_v15 = vrot.slane %v1797_v18, 1  ;;  %v1232_v19 = vrot.slane %v2341_v61, 1  ;;  %v2375_v23 = vcombine.low %v1774_v37, %v1775_v43  ;;  %v1695_v25 = vcombine.low %v185_v28, %v175_v59 }
  0x3a   : > { %521 = vrot.lane.b32.xlu0 %v505_v22, %s2104_s23  ;;  %2945 = vst [vmem:[#allocation5_spill] sm:$0xff] %v2365_v9  ;;  %v1122_v22 = vshrl.u32 %v2335_v44, 16  ;;  %v325_v26 = vrot.slane %v2357_v5, 1  ;;  %v1129_v27 = vshll.u32 %v2354_v4, 16  ;;  %v214_v32 = vshrl.u32 %v2365_v9, 16 }
  0x3b   : > { %v279_v33 = vshll.u32 %v2357_v5, 16  ;;  %v2382_v36 = vsel %vm323_vm0, %v1231_v15, %v1232_v19  ;;  %v216_v37 = vshll.u32 %v2365_v9, 16  ;;  %v221_v38 = vshll.u32 %v2367_v12, 16 }
  0x3c   : > { %v324_v42 = vrot.slane %v1695_v25, 1  ;;  %v2391_v43 = vcombine.low %v2385_v39, %v1779_v21  ;;  %v1126_v47 = vrot.slane %v1124_v13, 1  ;;  %v2396_v49 = vrot.slane %v1187_v14, 1  ;;  %v180_v25 = vld [vmem:[%s2148_s19 + $0x1c] sm:$0xf] }
  0x3d   : > { %937 = vrot.lane.b32.xlu1 %v930_v46, %s2103_s22  ;;  %v179_v46 = vld [vmem:[%s2148_s19 + $0x18] sm:$0xf]  ;;  %v1182_v53 = vshll.u32 %v2375_v23, 16  ;;  %v2401_v2 = vcombine.low %v174_v56, %v175_v59  ;;  %v2410_v18 = vrot.slane %v279_v33, 1  ;;  %v283_v13 = vshrl.u32 %v2357_v5, 16 }
  0x3e   : > { %543 = vrot.lane.b32.xlu0 %v536_v50, %s2103_s22  ;;  %v1191_v50 = vshrl.u32 %v2341_v61, 16  ;;  %v2404_v40 = vsel %vm323_vm0, %v324_v42, %v325_v26  ;;  %v1692_v61 = vcombine.low %v2407_v60, %v179_v46  ;;  %v2416_v56 = vrot.slane %v1129_v27, 1 }
  0x3f   : > { %v1234_v14 = vrot.slane %v2391_v43, 1  ;;  %v218_v33 = vrot.slane %v216_v37, 1  ;;  %v285_v42 = vor.u32 %v283_v13, %v2410_v18  ;;  %v2427_v5 = vrot.slane %v221_v38, 1 }
  0x40   : > { %v1193_v28 = vor.u32 %v1191_v50, %v2396_v49  ;;  %v287_v50 = vshll.u32 %v1692_v61, 16  ;;  %v327_v1 = vrot.slane %v1692_v61, 1  ;;  %v2443_v41 = vcombine.low %v179_v46, %v180_v25 }
  0x41   : > { %859 = vrot.lane.b32.xlu1 %v849_v51, %s2105_s24  ;;  %v1780_v51 = vld [vmem:[%s2148_s19 + $0xa0] sm:$0xf]  ;;  %v1127_v38 = vor.u32 %v1126_v47, %v1122_v22  ;;  %v272_v22 = vshrl.u32 %v2401_v2, 16 }
  0x42   : > { %465 = vrot.lane.b32.xlu0 %v455_v62, %s2105_s24  ;;  %v1195_v62 = vshll.u32 %v2391_v43, 16  ;;  %v2419_v15 = vcombine.low %v1779_v21, %v1780_v51  ;;  %v2434_v21 = vsel %vm323_vm0, %v1232_v19, %v1234_v14  ;;  %v2440_v37 = vsel %vm323_vm0, %v325_v26, %v327_v1  ;;  %2948 = vst [vmem:[#allocation8_spill] sm:$0xff] %v2443_v41 }
  0x43   : > { %v1795_v34 = vcombine.low %v1780_v51, %v2425_v48  ;;  %v1199_v19 = vshrl.u32 %v2391_v43, 16  ;;  %v237_v46 = vshll.u32 %v2443_v41, 16 }
  0x44   : > { %v1197_v59 = vrot.slane %v1195_v62, 1  ;;  %v2437_v62 = vld [vmem:[%s2148_s19 + $0x20] sm:$0xf]  ;;  %v1145_v13 = vshll.u32 %v2419_v15, 16 }
  0x45   : > { %917 = vrot.lane.b32.xlu1 %v907_v55, %s2104_s23  ;;  %v274_v55 = vshll.u32 %v2401_v2, 16  ;;  %2947 = vst [vmem:[#allocation7_spill] sm:$0xff] %v2437_v62  ;;  %v1693_v9 = vcombine.low %v180_v25, %v2437_v62  ;;  %v1203_v51 = vshll.u32 %v1795_v34, 16  ;;  %v2469_v2 = vld [vmem:[%s2148_s19 + $0xa8] sm:$0x1f]  }
  0x46   : > { %523 = vrot.lane.b32.xlu0 %v513_v6, %s2104_s23  ;;  %v2431_v27 = vsel %vm212_vm1, %v1193_v28, %v1197_v59  ;;  %v289_v6 = vrot.slane %v287_v50, 1  ;;  %v1184_v28 = vrot.slane %v1182_v53, 1  ;;  %v2451_v50 = vor.u32 %v218_v33, %v214_v32  ;;  %v182_v33 = vld [vmem:[%s2148_s19 + $0x24] sm:$0x1] }
  0x47   : > { %v1201_v47 = vor.u32 %v1199_v19, %v1197_v59  ;;  %v291_v53 = vshrl.u32 %v1692_v61, 16  ;;  %v276_v43 = vrot.slane %v274_v55, 1  ;;  %v2460_v44 = vrot.slane %v1145_v13, 1 }
  0x48   : > { %v2454_v26 = vsel %vm212_vm1, %v285_v42, %v289_v6  ;;  %v1236_v32 = vrot.slane %v1795_v34, 1  ;;  %v1205_v42 = vrot.slane %v1203_v51, 1  ;;  %v329_v25 = vrot.slane %v1693_v9, 1 }
  0x49   : > { %939 = vrot.lane.b32.xlu1 %v2333_v17, %s2103_s22  ;;  %v1782_v17 = vld [vmem:[%s2148_s19 + $0xa8] sm:$0x1]  ;;  %v293_v31 = vor.u32 %v291_v53, %v289_v6  ;;  %v2473_v61 = vrot.slane %v237_v46, 1  ;;  %v1149_v13 = vshrl.u32 %v2419_v15, 16  ;;  %v241_v51 = vshrl.u32 %v2443_v41, 16 }
  0x4a   : > { %545 = vrot.lane.b32.xlu0 %v2348_v0, %s2103_s22  ;;  %v295_v0 = vshll.u32 %v1693_v9, 16  ;;  %v2466_v24 = vcombine.low %v2425_v48, %v1782_v17  ;;  %v2476_v55 = vsel %vm323_vm0, %v1234_v14, %v1236_v32  ;;  %v2483_v6 = vsel %vm212_vm1, %v1201_v47, %v1205_v42 }
  0x4b   : > { %v2486_v19 = vsel %vm323_vm0, %v327_v1, %v329_v25  ;;  %v1151_v14 = vor.u32 %v1149_v13, %v2460_v44  ;;  %v1207_v53 = vshrl.u32 %v1795_v34, 16  ;;  %v299_v48 = vshrl.u32 %v1693_v9, 16 }
  0x4c   : > { %v297_v59 = vrot.slane %v295_v0, 1  ;;  %v1153_v17 = vshll.u32 %v2466_v24, 16  ;;  %v1211_v0 = vshll.u32 %v2469_v2, 16  ;;  %v1238_v34 = vrot.slane %v2469_v2, 1 }
  0x4d   : > { %861 = vrot.lane.b32.xlu1 %v2350_v16, %s2105_s24  ;;  %v2480_v16 = vld [vmem:[%s2148_s19 + $0x24] sm:$0x1f]  }
  0x4e   : > { %467 = vrot.lane.b32.xlu0 %v2352_v3, %s2105_s24  ;;  %v2490_v3 = vcombine.low %v2437_v62, %v182_v33  ;;  %v2493_v46 = vsel %vm212_vm1, %v293_v31, %v297_v59  ;;  %v2499_v47 = vrot.slane %v1153_v17, 1  ;;  %v243_v31 = vor.u32 %v241_v51, %v2473_v61 }
  0x4f   : > { %v1209_v33 = vor.u32 %v1207_v53, %v1205_v42  ;;  %v303_v13 = vshll.u32 %v2480_v16, 16  ;;  %v2514_v62 = vrot.slane %v1211_v0, 1  ;;  %v301_v41 = vor.u32 %v299_v48, %v297_v59  ;;  %v2067_v59 = vld [vmem:[%s2928_s1 + $0x20] ss:$0 sps:$4 sm:$0xff]  }
  0x50   : > { %v245_v1 = vshll.u32 %v2490_v3, 16  ;;  %v331_v42 = vrot.slane %v2480_v16, 1  ;;  %v2949_v51 = vrot.slane %v2271_v58, 1  ;;  %v2950_v58 = vrot.slane %v2282_v63, 1 }
  0x51   : > { %919 = vrot.lane.b32.xlu1 %v2361_v7, %s2104_s23  ;;  %v2510_v7 = vsel %vm212_vm1, %v1151_v14, %v2499_v47  ;;  %v2516_v9 = vrot.slane %v303_v13, 1  ;;  %v1132_v14 = vsel %vm212_vm1, %v1127_v38, %v2416_v56  ;;  %v1214_v48 = vsel %vm212_vm1, %v1209_v33, %v2514_v62 }
  0x52   : > { %525 = vrot.lane.b32.xlu0 %v2363_v8, %s2104_s23  ;;  %v2512_v17 = vrot.slane %v245_v1, 1  ;;  %v2521_v8 = vsel %vm323_vm0, %v1236_v32, %v1238_v34  ;;  %v2065_v32 = vld [vmem:[%s2928_s1 + $0x14] ss:$0 sps:$4 sm:$0xff]   ;;  %v2951_v38 = vshrl.u32 %v2375_v23, 16  ;;  %v2546_v0 = vcombine.low %v2309_v45, %v2385_v39 }
  0x53   : > { %v332_v33 = vsel %vm323_vm0, %v329_v25, %v331_v42  ;;  %v224_v13 = vsel %vm212_vm1, %v2451_v50, %v2427_v5  ;;  %v277_v63 = vor.u32 %v276_v43, %v272_v22  ;;  %v2558_v23 = vcombine.low %v2325_v54, %v2407_v60 }
  0x54   : > { %v248_v53 = vsel %vm212_vm1, %v243_v31, %v2512_v17  ;;  %v1185_v1 = vor.u32 %v1184_v28, %v2951_v38  ;;  %v306_v31 = vsel %vm212_vm1, %v301_v41, %v2516_v9  ;;  %v606_v45 = vsel %vm604_vm2, %v2065_v32, 0 }
  0x55   : > { %941 = vrot.lane.b32.xlu1 %v2949_v51, %s2103_s22  ;;  %v2952_v41 = vmov 0.0   ;;  %v998_v39 = vsel %vm604_vm2, %v2067_v59, 0  ;;  %v1133_v50 = vshrl.u32 %v2354_v4, 16  ;;  %v1137_v54 = vshll.u32 %v2546_v0, 16  ;;  %1860 = vmatpush3.bf16.msra.mxu1 %v606_v45 }
  0x56   : > { %547 = vrot.lane.b32.xlu0 %v2950_v58, %s2103_s22  ;;  %1861 = vmatprep.mubr.msk.bf16.mxu1 %vm2106_vm3, %v2952_v41  ;;  %v1190_v28 = vsel %vm212_vm1, %v1185_v1, %v2396_v49  ;;  %v282_v60 = vsel %vm212_vm1, %v277_v63, %v2410_v18  ;;  %v225_v22 = vshrl.u32 %v2367_v12, 16  ;;  %v229_v43 = vshll.u32 %v2558_v23, 16 }
  0x57   : > { %1908 = vmatpush3.bf16.msra.mxu0 %v998_v39  ;;  %1909 = vmatprep.mubr.msk.bf16.mxu0 %vm2106_vm3, %v2952_v41  ;;  %v1135_v49 = vor.u32 %v1133_v50, %v2416_v56  ;;  %v1139_v25 = vrot.slane %v1137_v54, 1  ;;  %v1141_v56 = vshrl.u32 %v2546_v0, 16  ;;  %v233_v59 = vshrl.u32 %v2558_v23, 16 }
  0x58   : > { %1881 = vmatprep.subr.bf16.mxu1 %v2952_v41  ;;  %1929 = vmatprep.subr.bf16.mxu0 %v2952_v41  ;;  %v227_v18 = vor.u32 %v225_v22, %v2427_v5  ;;  %v231_v51 = vrot.slane %v229_v43, 1 }
  0x59   : > { %1160 = vrot.lane.b32.xlu1 %v1132_v14, %s2105_s24  ;;  %v1140_v14 = vsel %vm212_vm1, %v1135_v49, %v1139_v25 }
  0x5a   : > { %252 = vrot.lane.b32.xlu0 %v224_v13, %s2105_s24  ;;  %v232_v32 = vsel %vm212_vm1, %v227_v18, %v231_v51 }
  0x5d   : > { %1218 = vrot.lane.b32.xlu1 %v1190_v28, %s2104_s23 }
  0x5e   : > { %310 = vrot.lane.b32.xlu0 %v282_v60, %s2104_s23 }
  0x61   : > { %1240 = vrot.lane.b32.xlu1 %v2382_v36, %s2103_s22  ;;  %v1143_v36 = vor.u32 %v1141_v56, %v1139_v25 }
  0x62   : > { %333 = vrot.lane.b32.xlu0 %v2404_v40, %s2103_s22  ;;  %v235_v40 = vor.u32 %v233_v59, %v231_v51 }
  0x63   : > { %v1148_v5 = vsel %vm212_vm1, %v1143_v36, %v2460_v44  ;;  %v1157_v44 = vshrl.u32 %v2466_v24, 16 }
  0x64   : > { %v240_v58 = vsel %vm212_vm1, %v235_v40, %v2473_v61  ;;  %v307_v61 = vshrl.u32 %v2480_v16, 16  ;;  %v2072_v16 = vld [vmem:[%s2928_s1 + $0x8] ss:$0 sps:$4 sm:$0xff]  }
  0x65   : > { %1162 = vrot.lane.b32.xlu1 %v1140_v14, %s2105_s24 }
  0x66   : > { %254 = vrot.lane.b32.xlu0 %v232_v32, %s2105_s24 }
  0x69   : > { %1220 = vrot.lane.b32.xlu1 %v2431_v27, %s2104_s23  ;;  %v249_v27 = vshrl.u32 %v2490_v3, 16 }
  0x6a   : > { %312 = vrot.lane.b32.xlu0 %v2454_v26, %s2104_s23 }
  0x6b   : > { %v251_v26 = vor.u32 %v249_v27, %v2512_v17 }
  0x6d   : > { %1242 = vrot.lane.b32.xlu1 %v2434_v21, %s2103_s22  ;;  %v1159_v21 = vor.u32 %v1157_v44, %v2499_v47  ;;  %v2068_v47 = vld [vmem:[%s2928_s1] sm:$0xff]  }
  0x6e   : > { %335 = vrot.lane.b32.xlu0 %v2440_v37, %s2103_s22  ;;  %v1215_v37 = vshrl.u32 %v2469_v2, 16 }
  0x70   : > { %v1217_v24 = vor.u32 %v1215_v37, %v2514_v62 }
  0x71   : > { %1164 = vrot.lane.b32.xlu1 %v1148_v5, %s2105_s24 }
  0x72   : > { %256 = vrot.lane.b32.xlu0 %v240_v58, %s2105_s24 }
  0x75   : > { %1222 = vrot.lane.b32.xlu1 %v2483_v6, %s2104_s23 }
  0x76   : > { %314 = vrot.lane.b32.xlu0 %v2493_v46, %s2104_s23 }
  0x79   : > { %1244 = vrot.lane.b32.xlu1 %v2476_v55, %s2103_s22  ;;  %v309_v55 = vor.u32 %v307_v61, %v2516_v9  ;;  %v2069_v9 = vld [vmem:[%s2928_s1 + $0x24] sm:$0xff]  }
  0x7a   : > { %337 = vrot.lane.b32.xlu0 %v2486_v19, %s2103_s22 }
  0x7d   : > { %1166 = vrot.lane.b32.xlu1 %v2510_v7, %s2105_s24 }
  0x7e   : > { %258 = vrot.lane.b32.xlu0 %v248_v53, %s2105_s24 }
  0x81   : > { %1224 = vrot.lane.b32.xlu1 %v1214_v48, %s2104_s23 }
  0x82   : > { %316 = vrot.lane.b32.xlu0 %v306_v31, %s2104_s23 }
  0x85   : > { %1246 = vrot.lane.b32.xlu1 %v2521_v8, %s2103_s22 }
  0x86   : > { %339 = vrot.lane.b32.xlu0 %v332_v33, %s2103_s22 }
  0x89   : > { %1168 = vrot.lane.b32.xlu1 %v1159_v21, %s2105_s24 }
  0x8a   : > { %260 = vrot.lane.b32.xlu0 %v251_v26, %s2105_s24 }
  0x8c   : > { %v934_v6 = vpop.permute.xlu1 %933 }
  0x8d   : > { %1226 = vrot.lane.b32.xlu1 %v1217_v24, %s2104_s23  ;;  %v2953_v24 = vld [vmem:[#allocation2_spill] sm:$0xff] }
  0x8e   : > { %318 = vrot.lane.b32.xlu0 %v309_v55, %s2104_s23  ;;  %v540_v19 = vpop.permute.xlu0 %539  ;;  %v1755_v55 = vcombine.low %v2953_v24, %v2953_v24 }
  0x91   : > { %1248 = vrot.lane.b32.xlu1 %v1238_v34, %s2103_s22 }
  0x92   : > { %341 = vrot.lane.b32.xlu0 %v331_v42, %s2103_s22  ;;  %v2073_v42 = vld [vmem:[%s2928_s1 + $0x2c] ss:$0 sps:$4 sm:$0xff]  }
  0x93   : > { %v518_v62 = vpop.permute.xlu1 %517  ;;  %v1305_v1 = vsel %vm604_vm2, %v2073_v42, 0 }
  0x94   : > { %v460_v3 = vpop.permute.xlu0 %459 }
  0x95   : > { %v550_v46 = vsel %vm343_vm4, %v2178_v29, %v460_v3 }
  0x96   : > { %v561_v2 = vsel %vm355_vm5, %v550_v46, %v518_v62 }
  0x97   : > { %v912_v34 = vpop.permute.xlu1 %911  ;;  %v571_v7 = vsel %vm366_vm6, %v561_v2, %v540_v19 }
  0x98   : > { %1862 = vmatmul.mubr.msk.bf16.vlgmr.msra.gmra.mrb[0].mxu1 %vm593_vm7, %v571_v7  ;;  %v854_v17 = vpop.permute.xlu0 %853 }
  0x99   : > { %v944_v29 = vsel %vm343_vm4, %v2158_v10, %v854_v17  ;;  %1865 = vmatprep.mubr.msk.bf16.mxu1 %vm2106_vm3, %v2952_v41  ;;  %1882 = vmatpush3.bf16.msra.mxu1 %v2068_v47  ;;  %v700_v10 = vsel %vm604_vm2, %v2072_v16, 0 }
  0x9a   : > { %v955_v8 = vsel %vm355_vm5, %v944_v29, %v912_v34  ;;  %1883 = vmatprep.subr.bf16.mxu1 %v2952_v41 }
  0x9b   : > { %v856_v53 = vpop.permute.xlu1 %855  ;;  %v965_v48 = vsel %vm366_vm6, %v955_v8, %v934_v6  ;;  %v2954_v6 = vld [vmem:[#allocation3_spill] sm:$0xff] }
  0x9c   : > { %1910 = vmatmul.mubr.msk.bf16.vlgmr.msra.gmra.mrb[0].mxu0 %vm593_vm7, %v965_v48  ;;  %v462_v38 = vpop.permute.xlu0 %461  ;;  %v946_v13 = vsel %vm343_vm4, %v2160_v11, %v856_v53  ;;  %v1713_v19 = vcombine.low %v2954_v6, %v2954_v6  ;;  %v2955_v48 = vld [vmem:[#allocation4_spill] sm:$0xff] }
  0x9d   : > { %1913 = vmatprep.mubr.msk.bf16.mxu0 %vm2106_vm3, %v2952_v41  ;;  %1930 = vmatpush3.bf16.msra.mxu0 %v2069_v9  ;;  %v552_v63 = vsel %vm343_vm4, %v2170_v20, %v462_v38  ;;  %v2956_v38 = vld [vmem:[#allocation5_spill] sm:$0xff] }
  0x9e   : > { %1931 = vmatprep.subr.bf16.mxu0 %v2952_v41  ;;  %1884 = vmatpush3.bf16.msra.mxu1 %v700_v10 }
  0x9f   : > { %v914_v31 = vpop.permute.xlu1 %913 }
  0xa0   : > { %v520_v33 = vpop.permute.xlu0 %519  ;;  %v957_v45 = vsel %vm355_vm5, %v946_v13, %v914_v31 }
  0xa1   : > { %1932 = vmatpush3.bf16.msra.mxu0 %v1305_v1  ;;  %v563_v28 = vsel %vm355_vm5, %v552_v63, %v520_v33 }
  0xa3   : > { %v936_v39 = vpop.permute.xlu1 %935 }
  0xa4   : > { %v967_v50 = vsel %vm366_vm6, %v957_v45, %v936_v39  ;;  %v542_v54 = vpop.permute.xlu0 %541 }
  0xa5   : > { %v573_v60 = vsel %vm366_vm6, %v563_v28, %v542_v54  ;;  %1914 = vmatmul.mubr.msk.bf16.gmra.mrb[4].mxu0 %vm593_vm7, %v967_v50 }
  0xa6   : > { %1866 = vmatmul.mubr.msk.bf16.gmra.mrb[4].mxu1 %vm593_vm7, %v573_v60  ;;  %1917 = vmatprep.mubr.msk.bf16.mxu0 %vm2106_vm3, %v2952_v41 }
  0xa7   : > { %v858_v11 = vpop.permute.xlu1 %857  ;;  %1869 = vmatprep.mubr.msk.bf16.mxu1 %vm2106_vm3, %v2952_v41 }
  0xa8   : > { %v464_v20 = vpop.permute.xlu0 %463  ;;  %v948_v49 = vsel %vm343_vm4, %v2198_v52, %v858_v11 }
  0xa9   : > { %v554_v25 = vsel %vm343_vm4, %v2202_v57, %v464_v20 }
  0xab   : > { %v916_v22 = vpop.permute.xlu1 %915 }
  0xac   : > { %v522_v43 = vpop.permute.xlu0 %521  ;;  %v959_v18 = vsel %vm355_vm5, %v948_v49, %v916_v22 }
  0xad   : > { %v565_v14 = vsel %vm355_vm5, %v554_v25, %v522_v43 }
  0xaf   : > { %v938_v51 = vpop.permute.xlu1 %937 }
  0xb0   : > { %v969_v32 = vsel %vm366_vm6, %v959_v18, %v938_v51  ;;  %v544_v56 = vpop.permute.xlu0 %543 }
  0xb1   : > { %v575_v59 = vsel %vm366_vm6, %v565_v14, %v544_v56  ;;  %1918 = vmatmul.mubr.msk.bf16.gmra.mrb[8].mxu0 %vm593_vm7, %v969_v32 }
  0xb2   : > { %1870 = vmatmul.mubr.msk.bf16.gmra.mrb[8].mxu1 %vm593_vm7, %v575_v59  ;;  %1921 = vmatprep.mubr.msk.bf16.mxu0 %vm2106_vm3, %v2952_v41 }
  0xb3   : > { %v860_v52 = vpop.permute.xlu1 %859  ;;  %1873 = vmatprep.mubr.msk.bf16.mxu1 %vm2106_vm3, %v2952_v41 }
  0xb4   : > { %v466_v57 = vpop.permute.xlu0 %465  ;;  %v950_v5 = vsel %vm343_vm4, %v2230_v30, %v860_v52 }
  0xb5   : > { %v556_v58 = vsel %vm343_vm4, %v2236_v35, %v466_v57 }
  0xb7   : > { %v918_v36 = vpop.permute.xlu1 %917 }
  0xb8   : > { %v524_v40 = vpop.permute.xlu0 %523  ;;  %v961_v44 = vsel %vm355_vm5, %v950_v5, %v918_v36 }
  0xb9   : > { %v567_v21 = vsel %vm355_vm5, %v556_v58, %v524_v40 }
  0xbb   : > { %v940_v27 = vpop.permute.xlu1 %939 }
  0xbc   : > { %v971_v37 = vsel %vm366_vm6, %v961_v44, %v940_v27  ;;  %v546_v26 = vpop.permute.xlu0 %545 }
  0xbd   : > { %v577_v61 = vsel %vm366_vm6, %v567_v21, %v546_v26  ;;  %1922 = vmatmul.mubr.msk.bf16.gmra.mrb[12].mxu0 %vm593_vm7, %v971_v37  ;;  %v2957_v37 = vld [vmem:[#allocation8_spill] sm:$0xff] }
  0xbe   : > { %1874 = vmatmul.mubr.msk.bf16.gmra.mrb[12].mxu1 %vm593_vm7, %v577_v61  ;;  %1925 = vmatprep.mubr.msk.bf16.mxu0 %vm2106_vm3, %v2952_v41 }
  0xbf   : > { %v862_v30 = vpop.permute.xlu1 %861  ;;  %1877 = vmatprep.mubr.msk.bf16.mxu1 %vm2106_vm3, %v2952_v41 }
  0xc0   : > { %v468_v35 = vpop.permute.xlu0 %467  ;;  %v953_v46 = vsel %vm343_vm4, %v1755_v55, %v862_v30 }
  0xc1   : > { %v559_v47 = vsel %vm343_vm4, %v1713_v19, %v468_v35 }
  0xc3   : > { %v920_v62 = vpop.permute.xlu1 %919 }
  0xc4   : > { %v526_v3 = vpop.permute.xlu0 %525  ;;  %v963_v2 = vsel %vm355_vm5, %v953_v46, %v920_v62  ;;  %v2958_v62 = vld [vmem:[#allocation6_spill] sm:$0xff]  ;;  %v2959_v46 = vld [vmem:[#allocation7_spill] sm:$0xff] }
  0xc5   : > { %v569_v7 = vsel %vm355_vm5, %v559_v47, %v526_v3  ;;  %v1790_v3 = vcombine.low %v2958_v62, %v2958_v62  ;;  %v1688_v47 = vcombine.low %v2959_v46, %v2959_v46 }
  0xc7   : > { %v942_v34 = vpop.permute.xlu1 %941 }
  0xc8   : > { %v973_v16 = vsel %vm366_vm6, %v963_v2, %v942_v34  ;;  %v548_v17 = vpop.permute.xlu0 %547 }
  0xc9   : > { %v579_v29 = vsel %vm366_vm6, %v569_v7, %v548_v17  ;;  %1926 = vmatmul.mubr.msk.bf16.gmra.mrb[16].mxu0 %vm593_vm7, %v973_v16 }
  0xca   : > { %1878 = vmatmul.mubr.msk.bf16.gmra.mrb[16].mxu1 %vm593_vm7, %v579_v29  ;;  %1933 = vmatprep.mubr.msk.bf16.mxu0 %vm2106_vm3, %v2952_v41 }
  0xcb   : > { %v1161_v9 = vpop.permute.xlu1 %1160  ;;  %1885 = vmatprep.mubr.msk.bf16.mxu1 %vm2106_vm3, %v2952_v41 }
  0xcc   : > { %v253_v8 = vpop.permute.xlu0 %252  ;;  %v1251_v10 = vsel %vm343_vm4, %v2955_v48, %v1161_v9 }
  0xcd   : > { %v345_v1 = vsel %vm343_vm4, %v2956_v38, %v253_v8 }
  0xcf   : > { %v1219_v42 = vpop.permute.xlu1 %1218 }
  0xd0   : > { %v311_v53 = vpop.permute.xlu0 %310  ;;  %v1262_v31 = vsel %vm355_vm5, %v1251_v10, %v1219_v42 }
  0xd1   : > { %v357_v13 = vsel %vm355_vm5, %v345_v1, %v311_v53  ;;  %v2107_v53 = vmov 32  }
  0xd2   : > { %2018 = vset.pattern.permute.xlu0 %v2107_v53  ;;  %2019 = vset.pattern.permute.xlu1 %v2107_v53 }
  0xd3   : > { %v1241_v33 = vpop.permute.xlu1 %1240 }
  0xd4   : > { %v1272_v63 = vsel %vm366_vm6, %v1262_v31, %v1241_v33  ;;  %v334_v45 = vpop.permute.xlu0 %333 }
  0xd5   : > { %v368_v39 = vsel %vm366_vm6, %v357_v13, %v334_v45  ;;  %1934 = vmatmul.mubr.msk.bf16.vlgmr.msra.gmra.mrb[0].mxu0 %vm593_vm7, %v1272_v63 }
  0xd6   : > { %1886 = vmatmul.mubr.msk.bf16.vlgmr.msra.gmra.mrb[0].mxu1 %vm593_vm7, %v368_v39  ;;  %1937 = vmatprep.mubr.msk.bf16.mxu0 %vm2106_vm3, %v2952_v41 }
  0xd7   : > { %v1163_v28 = vpop.permute.xlu1 %1162  ;;  %1889 = vmatprep.mubr.msk.bf16.mxu1 %vm2106_vm3, %v2952_v41 }
  0xd8   : > { %v255_v50 = vpop.permute.xlu0 %254  ;;  %v1253_v11 = vsel %vm343_vm4, %v2354_v4, %v1163_v28 }
  0xd9   : > { %v347_v20 = vsel %vm343_vm4, %v2367_v12, %v255_v50 }
  0xdb   : > { %v1221_v54 = vpop.permute.xlu1 %1220 }
  0xdc   : > { %v313_v60 = vpop.permute.xlu0 %312  ;;  %v1264_v22 = vsel %vm355_vm5, %v1253_v11, %v1221_v54 }
  0xdd   : > { %v359_v49 = vsel %vm355_vm5, %v347_v20, %v313_v60 }
  0xdf   : > { %v1243_v43 = vpop.permute.xlu1 %1242 }
  0xe0   : > { %v1274_v25 = vsel %vm366_vm6, %v1264_v22, %v1243_v43  ;;  %v336_v18 = vpop.permute.xlu0 %335 }
  0xe1   : > { %v370_v51 = vsel %vm366_vm6, %v359_v49, %v336_v18  ;;  %1938 = vmatmul.mubr.msk.bf16.gmra.mrb[4].mxu0 %vm593_vm7, %v1274_v25 }
  0xe2   : > { %1890 = vmatmul.mubr.msk.bf16.gmra.mrb[4].mxu1 %vm593_vm7, %v370_v51  ;;  %1941 = vmatprep.mubr.msk.bf16.mxu0 %vm2106_vm3, %v2952_v41 }
  0xe3   : > { %v1165_v4 = vpop.permute.xlu1 %1164  ;;  %1893 = vmatprep.mubr.msk.bf16.mxu1 %vm2106_vm3, %v2952_v41 }
  0xe4   : > { %v257_v12 = vpop.permute.xlu0 %256  ;;  %v1255_v56 = vsel %vm343_vm4, %v2546_v0, %v1165_v4 }
  0xe5   : > { %v349_v59 = vsel %vm343_vm4, %v2558_v23, %v257_v12 }
  0xe7   : > { %v1223_v14 = vpop.permute.xlu1 %1222 }
  0xe8   : > { %v315_v32 = vpop.permute.xlu0 %314  ;;  %v1266_v52 = vsel %vm355_vm5, %v1255_v56, %v1223_v14 }
  0xe9   : > { %v361_v36 = vsel %vm355_vm5, %v349_v59, %v315_v32 }
  0xeb   : > { %v1245_v57 = vpop.permute.xlu1 %1244 }
  0xec   : > { %v1276_v40 = vsel %vm366_vm6, %v1266_v52, %v1245_v57  ;;  %v338_v5 = vpop.permute.xlu0 %337 }
  0xed   : > { %v372_v58 = vsel %vm366_vm6, %v361_v36, %v338_v5  ;;  %1942 = vmatmul.mubr.msk.bf16.gmra.mrb[8].mxu0 %vm593_vm7, %v1276_v40 }
  0xee   : > { %1894 = vmatmul.mubr.msk.bf16.gmra.mrb[8].mxu1 %vm593_vm7, %v372_v58  ;;  %1945 = vmatprep.mubr.msk.bf16.mxu0 %vm2106_vm3, %v2952_v41 }
  0xef   : > { %v1167_v0 = vpop.permute.xlu1 %1166  ;;  %1897 = vmatprep.mubr.msk.bf16.mxu1 %vm2106_vm3, %v2952_v41 }
  0xf0   : > { %v259_v23 = vpop.permute.xlu0 %258  ;;  %v1257_v21 = vsel %vm343_vm4, %v2419_v15, %v1167_v0 }
  0xf1   : > { %v351_v26 = vsel %vm343_vm4, %v2957_v37, %v259_v23 }
  0xf3   : > { %v1225_v44 = vpop.permute.xlu1 %1224 }
  0xf4   : > { %v317_v27 = vpop.permute.xlu0 %316  ;;  %v1268_v61 = vsel %vm355_vm5, %v1257_v21, %v1225_v44 }
  0xf5   : > { %v363_v35 = vsel %vm355_vm5, %v351_v26, %v317_v27 }
  0xf7   : > { %v1247_v30 = vpop.permute.xlu1 %1246 }
  0xf8   : > { %v1278_v24 = vsel %vm366_vm6, %v1268_v61, %v1247_v30  ;;  %v340_v55 = vpop.permute.xlu0 %339 }
  0xf9   : > { %v374_v6 = vsel %vm366_vm6, %v363_v35, %v340_v55  ;;  %1946 = vmatmul.mubr.msk.bf16.gmra.mrb[12].mxu0 %vm593_vm7, %v1278_v24 }
  0xfa   : > { %1898 = vmatmul.mubr.msk.bf16.gmra.mrb[12].mxu1 %vm593_vm7, %v374_v6  ;;  %1949 = vmatprep.mubr.msk.bf16.mxu0 %vm2106_vm3, %v2952_v41 }
  0xfb   : > { %v1169_v15 = vpop.permute.xlu1 %1168  ;;  %1901 = vmatprep.mubr.msk.bf16.mxu1 %vm2106_vm3, %v2952_v41 }
  0xfc   : > { %v261_v19 = vpop.permute.xlu0 %260  ;;  %v1260_v7 = vsel %vm343_vm4, %v1790_v3, %v1169_v15 }
  0xfd   : > { %v354_v16 = vsel %vm343_vm4, %v1688_v47, %v261_v19 }
  0xff   : > { %v1227_v2 = vpop.permute.xlu1 %1226 }
 0x100   : > { %v319_v34 = vpop.permute.xlu0 %318  ;;  %v1270_v17 = vsel %vm355_vm5, %v1260_v7, %v1227_v2 }
 0x101   : > { %v365_v9 = vsel %vm355_vm5, %v354_v16, %v319_v34 }
 0x103   : > { %v1249_v29 = vpop.permute.xlu1 %1248 }
 0x104   : > { %v1280_v41 = vsel %vm366_vm6, %v1270_v17, %v1249_v29  ;;  %v342_v8 = vpop.permute.xlu0 %341 }
 0x105   : > { %v376_v42 = vsel %vm366_vm6, %v365_v9, %v342_v8  ;;  %1950 = vmatmul.mubr.msk.bf16.gmra.mrb[16].mxu0 %vm593_vm7, %v1280_v41 }
 0x106   : > { %1902 = vmatmul.mubr.msk.bf16.gmra.mrb[16].mxu1 %vm593_vm7, %v376_v42 }
 0x1a8   : > { %v1341_v48 = vpop.f32.mrb[0].mxu0 }
 0x1a9   : > { %v736_v10 = vpop.f32.mrb[0].mxu1  ;;  %v1935_v38 = vpop.f32.mrb[1].mxu0 }
 0x1aa   : > { %v2796_v1 = vadd.f32 %v1341_v48, %v736_v10  ;;  %v1887_v31 = vpop.f32.mrb[1].mxu1  ;;  %v1344_v33 = vpop.f32.mrb[2].mxu0 }
 0x1ab   : > { %v739_v13 = vpop.f32.mrb[2].mxu1  ;;  %v1936_v63 = vpop.f32.mrb[3].mxu0 }
 0x1ac   : > { %v2798_v45 = vadd.f32 %v1344_v33, %v739_v13  ;;  %v1888_v39 = vpop.f32.mrb[3].mxu1  ;;  %v1388_v28 = vmax.f32 %v2796_v1, 0.0  ;;  %v1406_v50 = vadd.f32 1e-08, %v2796_v1 }
 0x1ae   : > { %v2802_v54 = vmin.f32 %v1388_v28, 1.0  ;;  %v1389_v60 = vmax.f32 %v2798_v45, 0.0  ;;  %v1407_v11 = vadd.f32 1e-08, %v2798_v45  ;;  %2076 = vrcp.f32 %v1406_v50 }
 0x1b0   : > { %1504 = vperm.xlu0 %2018, %v2802_v54   ;;  %v2807_v20 = vmin.f32 %v1389_v60, 1.0  ;;  %2078 = vrcp.f32 %v1407_v11 }
 0x1b2   : > { %1509 = vperm.xlu1 %2019, %v2807_v20  }
 0x1b4   : > { %v1349_v22 = vpop.f32.mrb[4].mxu0 }
 0x1b5   : > { %v744_v43 = vpop.f32.mrb[4].mxu1  ;;  %v1939_v49 = vpop.f32.mrb[5].mxu0 }
 0x1b6   : > { %v2810_v25 = vadd.f32 %v1349_v22, %v744_v43  ;;  %v1891_v18 = vpop.f32.mrb[5].mxu1  ;;  %v1352_v51 = vpop.f32.mrb[6].mxu0 }
 0x1b7   : > { %v747_v4 = vpop.f32.mrb[6].mxu1  ;;  %v1940_v12 = vpop.f32.mrb[7].mxu0 }
 0x1b8   : > { %v2812_v14 = vadd.f32 %v1352_v51, %v747_v4  ;;  %v1892_v32 = vpop.f32.mrb[7].mxu1  ;;  %v1390_v56 = vmax.f32 %v2810_v25, 0.0  ;;  %v2077_v36 = vpop.eup %2076  ;;  %v1408_v40 = vadd.f32 1e-08, %v2810_v25 }
 0x1b9   : > { %v1416_v0 = vmul.f32 48.0, %v2077_v36 }
 0x1ba   : > { %v1409_v59 = vadd.f32 1e-08, %v2812_v14  ;;  %v2816_v52 = vmin.f32 %v1390_v56, 1.0  ;;  %v1391_v57 = vmax.f32 %v2812_v14, 0.0  ;;  %v2079_v58 = vpop.eup %2078 }
 0x1bb   : > { %v1418_v44 = vmul.f32 48.0, %v2079_v58 }
 0x1bc   : > { %1514 = vperm.xlu0 %2018, %v2816_v52   ;;  %v2821_v5 = vmin.f32 %v1391_v57, 1.0  ;;  %2080 = vrcp.f32 %v1409_v59 }
 0x1bd   : > { %2082 = vrcp.f32 %v1408_v40 }
 0x1be   : > { %1519 = vperm.xlu1 %2019, %v2821_v5  }
 0x1c0   : > { %1435 = vperm.xlu0 %2018, %v1416_v0   ;;  %v1357_v23 = vpop.f32.mrb[8].mxu0 }
 0x1c1   : > { %v752_v27 = vpop.f32.mrb[8].mxu1  ;;  %v1943_v21 = vpop.f32.mrb[9].mxu0 }
 0x1c2   : > { %v2824_v37 = vadd.f32 %v1357_v23, %v752_v27  ;;  %1440 = vperm.xlu1 %2019, %v1418_v44   ;;  %v1895_v26 = vpop.f32.mrb[9].mxu1  ;;  %v1360_v61 = vpop.f32.mrb[10].mxu0 }
 0x1c3   : > { %v755_v30 = vpop.f32.mrb[10].mxu1  ;;  %v1944_v35 = vpop.f32.mrb[11].mxu0 }
 0x1c4   : > { %v1410_v24 = vadd.f32 1e-08, %v2824_v37  ;;  %v2827_v55 = vadd.f32 %v1360_v61, %v755_v30  ;;  %v1896_v6 = vpop.f32.mrb[11].mxu1  ;;  %v1392_v15 = vmax.f32 %v2824_v37, 0.0  ;;  %v2862_v35 = vld [vmem:[%s2929_s2] ss:$0 sm:$0xff] }
 0x1c6   : > { %2084 = vrcp.f32 %v1410_v24  ;;  %v1411_v19 = vadd.f32 1e-08, %v2827_v55  ;;  %v2831_v62 = vmin.f32 %v1392_v15, 1.0  ;;  %v1393_v3 = vmax.f32 %v2827_v55, 0.0  ;;  %v2081_v46 = vpop.eup %2080 }
 0x1c7   : > { %v2083_v2 = vpop.eup %2082  ;;  %v1422_v34 = vmul.f32 48.0, %v2081_v46 }
 0x1c8   : > { %1524 = vperm.xlu0 %2018, %v2831_v62   ;;  %v2835_v47 = vmin.f32 %v1393_v3, 1.0  ;;  %2086 = vrcp.f32 %v1411_v19  ;;  %v1420_v16 = vmul.f32 48.0, %v2083_v2 }
 0x1ca   : > { %1529 = vperm.xlu1 %2019, %v2835_v47  }
 0x1cc   : > { %1450 = vperm.xlu0 %2018, %v1422_v34   ;;  %v1365_v7 = vpop.f32.mrb[12].mxu0 }
 0x1cd   : > { %v760_v17 = vpop.f32.mrb[12].mxu1  ;;  %v1947_v29 = vpop.f32.mrb[13].mxu0 }
 0x1ce   : > { %v2838_v9 = vadd.f32 %v1365_v7, %v760_v17  ;;  %1445 = vperm.xlu1 %2019, %v1420_v16   ;;  %v1899_v41 = vpop.f32.mrb[13].mxu1  ;;  %v1368_v8 = vpop.f32.mrb[14].mxu0 }
 0x1cf   : > { %v763_v42 = vpop.f32.mrb[14].mxu1  ;;  %v1948_v53 = vpop.f32.mrb[15].mxu0 }
 0x1d0   : > { %v2085_v48 = vpop.eup %2084  ;;  %v1412_v10 = vadd.f32 1e-08, %v2838_v9  ;;  %v2841_v38 = vadd.f32 %v1368_v8, %v763_v42  ;;  %v1900_v31 = vpop.f32.mrb[15].mxu1  ;;  %v1394_v33 = vmax.f32 %v2838_v9, 0.0 }
 0x1d1   : > { %v1424_v13 = vmul.f32 48.0, %v2085_v48 }
 0x1d2   : > { %2088 = vrcp.f32 %v1412_v10  ;;  %v1413_v63 = vadd.f32 1e-08, %v2841_v38  ;;  %v2845_v39 = vmin.f32 %v1394_v33, 1.0  ;;  %v2087_v28 = vpop.eup %2086  ;;  %v1395_v44 = vmax.f32 %v2841_v38, 0.0 }
 0x1d3   : > { %1455 = vperm.xlu1 %2019, %v1424_v13   ;;  %v1426_v50 = vmul.f32 48.0, %v2087_v28 }
 0x1d4   : > { %2090 = vrcp.f32 %v1413_v63  ;;  %1534 = vperm.xlu0 %2018, %v2845_v39   ;;  %v2856_v27 = vmin.f32 %v1395_v44, 1.0 }
 0x1d8   : > { %1460 = vperm.xlu0 %2018, %v1426_v50   ;;  %v1373_v60 = vpop.f32.mrb[16].mxu0 }
 0x1d9   : > { %v768_v11 = vpop.f32.mrb[16].mxu1  ;;  %v1951_v22 = vpop.f32.mrb[17].mxu0 }
 0x1da   : > { %v2848_v43 = vadd.f32 %v1373_v60, %v768_v11  ;;  %v1903_v49 = vpop.f32.mrb[17].mxu1  ;;  %v1376_v18 = vpop.f32.mrb[18].mxu0 }
 0x1db   : > { %v771_v51 = vpop.f32.mrb[18].mxu1  ;;  %v1952_v4 = vpop.f32.mrb[19].mxu0 }
 0x1dc   : > { %v2089_v12 = vpop.eup %2088  ;;  %v1414_v32 = vadd.f32 1e-08, %v2848_v43  ;;  %v1904_v56 = vpop.f32.mrb[19].mxu1  ;;  %v1396_v40 = vmax.f32 %v2848_v43, 0.0 }
 0x1dd   : > { %v1428_v59 = vmul.f32 48.0, %v2089_v12 }
 0x1de   : > { %v2091_v57 = vpop.eup %2090  ;;  %2092 = vrcp.f32 %v1414_v32  ;;  %v2852_v58 = vmin.f32 %v1396_v40, 1.0 }
 0x1df   : > { %1465 = vperm.xlu1 %2019, %v1428_v59   ;;  %v1430_v36 = vmul.f32 48.0, %v2091_v57 }
 0x1e1   : > { %1470 = vperm.xlu0 %2018, %v1430_v36  }
 0x1e5   : > { %1544 = vperm.xlu0 %2018, %v2852_v58  }
 0x1e8   : > { %v2093_v0 = vpop.eup %2092 }
 0x1e9   : > { %v1432_v23 = vmul.f32 48.0, %v2093_v0 }
 0x1eb   : > { %1475 = vperm.xlu1 %2019, %v1432_v23  }
 0x1ef   : > { %1539 = vperm.xlu1 %2019, %v2856_v27  }
 0x22f   : > { %v1505_v21 = vpop.permute.xlu0 %1504 }
 0x231   : > { %v1510_v26 = vpop.permute.xlu1 %1509 }
 0x23b   : > { %v1515_v61 = vpop.permute.xlu0 %1514 }
 0x23d   : > { %v1520_v30 = vpop.permute.xlu1 %1519 }
 0x23f   : > { %v1436_v24 = vpop.permute.xlu0 %1435 }
 0x240   : > { %v1478_v6 = vmul.f32 %v2796_v1, %v1436_v24 }
 0x241   : > { %v1441_v15 = vpop.permute.xlu1 %1440 }
 0x242   : > { %v1493_v19 = vadd.f32 %v2862_v35, %v1478_v6  ;;  %v1479_v3 = vmul.f32 %v2798_v45, %v1441_v15 }
 0x244   : > { %v1547_v46 = vmul.f32 %v1505_v21, %v1493_v19  ;;  %v1494_v2 = vadd.f32 %v2862_v35, %v1479_v3 }
 0x246   : > { %v1556_v34 = vmax.f32 %v1547_v46, 0.0  ;;  %v1548_v7 = vmul.f32 %v1510_v26, %v1494_v2 }
 0x247   : > { %v1525_v16 = vpop.permute.xlu0 %1524 }
 0x248   : > { %v1566_v1 = vsel %vm1565_vm8, %v1556_v34, %v2802_v54  ;;  %v1557_v45 = vmax.f32 %v1548_v7, 0.0 }
 0x249   : > { %v1820_v17 = vpack.c.bf16 %v1566_v1, %v1566_v1  ;;  %v1530_v29 = vpop.permute.xlu1 %1529 }
 0x24a   : > { %v1567_v41 = vsel %vm1565_vm8, %v1557_v45, %v2807_v20 }
 0x24b   : > { %1613 = vst.msk [vmem:[%s2872_s17] sm:$0xf] %vm1612_vm9, %v1820_v17  ;;  %v1821_v8 = vpack.c.bf16 %v1567_v41, %v1567_v41  ;;  %v1451_v42 = vpop.permute.xlu0 %1450 }
 0x24c   : > { %v1481_v53 = vmul.f32 %v2812_v14, %v1451_v42 }
 0x24d   : > { %1614 = vst.msk [vmem:[%s2872_s17 + $0x4] sm:$0xf] %vm1612_vm9, %v1821_v8  ;;  %v1446_v48 = vpop.permute.xlu1 %1445 }
 0x24e   : > { %v1496_v10 = vadd.f32 %v2862_v35, %v1481_v53  ;;  %v1480_v54 = vmul.f32 %v2810_v25, %v1446_v48 }
 0x250   : > { %v1550_v31 = vmul.f32 %v1520_v30, %v1496_v10  ;;  %v1495_v33 = vadd.f32 %v2862_v35, %v1480_v54 }
 0x252   : > { %v1559_v13 = vmax.f32 %v1550_v31, 0.0  ;;  %v1549_v20 = vmul.f32 %v1515_v61, %v1495_v33  ;;  %v1456_v63 = vpop.permute.xlu1 %1455 }
 0x253   : > { %v1482_v28 = vmul.f32 %v2824_v37, %v1456_v63  ;;  %v1535_v50 = vpop.permute.xlu0 %1534 }
 0x254   : > { %v1569_v14 = vsel %vm1565_vm8, %v1559_v13, %v2821_v5  ;;  %v1558_v60 = vmax.f32 %v1549_v20, 0.0 }
 0x255   : > { %v1823_v11 = vpack.c.bf16 %v1569_v14, %v1569_v14  ;;  %v1497_v22 = vadd.f32 %v2862_v35, %v1482_v28 }
 0x256   : > { %v1568_v25 = vsel %vm1565_vm8, %v1558_v60, %v2816_v52 }
 0x257   : > { %1616 = vst.msk [vmem:[%s2872_s17 + $0xc] sm:$0xf] %vm1612_vm9, %v1823_v11  ;;  %v1822_v49 = vpack.c.bf16 %v1568_v25, %v1568_v25  ;;  %v1551_v18 = vmul.f32 %v1525_v16, %v1497_v22  ;;  %v1461_v51 = vpop.permute.xlu0 %1460 }
 0x258   : > { %v1483_v37 = vmul.f32 %v2827_v55, %v1461_v51 }
 0x259   : > { %1615 = vst.msk [vmem:[%s2872_s17 + $0x8] sm:$0xf] %vm1612_vm9, %v1822_v49  ;;  %v1560_v4 = vmax.f32 %v1551_v18, 0.0 }
 0x25a   : > { %v1498_v5 = vadd.f32 %v2862_v35, %v1483_v37 }
 0x25b   : > { %v1570_v12 = vsel %vm1565_vm8, %v1560_v4, %v2831_v62 }
 0x25c   : > { %v1824_v32 = vpack.c.bf16 %v1570_v12, %v1570_v12  ;;  %v1552_v56 = vmul.f32 %v1530_v29, %v1498_v5 }
 0x25e   : > { %1617 = vst.msk [vmem:[%s2872_s17 + $0x10] sm:$0xf] %vm1612_vm9, %v1824_v32  ;;  %v1561_v52 = vmax.f32 %v1552_v56, 0.0  ;;  %v1466_v59 = vpop.permute.xlu1 %1465 }
 0x25f   : > { %v1484_v57 = vmul.f32 %v2838_v9, %v1466_v59 }
 0x260   : > { %v1571_v55 = vsel %vm1565_vm8, %v1561_v52, %v2835_v47  ;;  %v1471_v62 = vpop.permute.xlu0 %1470 }
 0x261   : > { %v1825_v36 = vpack.c.bf16 %v1571_v55, %v1571_v55  ;;  %v1499_v40 = vadd.f32 %v2862_v35, %v1484_v57  ;;  %v1485_v26 = vmul.f32 %v2841_v38, %v1471_v62 }
 0x263   : > { %1618 = vst.msk [vmem:[%s2872_s17 + $0x14] sm:$0xf] %vm1612_vm9, %v1825_v36  ;;  %v1553_v0 = vmul.f32 %v1535_v50, %v1499_v40  ;;  %v1500_v30 = vadd.f32 %v2862_v35, %v1485_v26 }
 0x264   : > { %v1545_v24 = vpop.permute.xlu0 %1544 }
 0x265   : > { %v1562_v23 = vmax.f32 %v1553_v0, 0.0 }
 0x267   : > { %v1572_v44 = vsel %vm1565_vm8, %v1562_v23, %v2845_v39 }
 0x268   : > { %v1826_v21 = vpack.c.bf16 %v1572_v44, %v1572_v44 }
 0x26a   : > { %1619 = vst.msk [vmem:[%s2872_s17 + $0x18] sm:$0xf] %vm1612_vm9, %v1826_v21  ;;  %v1476_v9 = vpop.permute.xlu1 %1475 }
 0x26b   : > { %v1486_v47 = vmul.f32 %v2848_v43, %v1476_v9 }
 0x26d   : > { %v1501_v61 = vadd.f32 %v2862_v35, %v1486_v47 }
 0x26e   : > { %v1540_v6 = vpop.permute.xlu1 %1539 }
 0x26f   : > { %v1555_v15 = vmul.f32 %v1545_v24, %v1501_v61  ;;  %v1554_v19 = vmul.f32 %v1540_v6, %v1500_v30 }
 0x271   : > { %v1564_v3 = vmax.f32 %v1555_v15, 0.0  ;;  %v1563_v39 = vmax.f32 %v1554_v19, 0.0 }
 0x273   : > { %v1574_v38 = vsel %vm1565_vm8, %v1564_v3, %v2852_v58  ;;  %v1573_v46 = vsel %vm1565_vm8, %v1563_v39, %v2856_v27 }
 0x274   : > { %v1828_v2 = vpack.c.bf16 %v1574_v38, %v1574_v38  ;;  %v1827_v34 = vpack.c.bf16 %v1573_v46, %v1573_v46 }
 0x276   : > { %1621 = vst.msk [vmem:[%s2872_s17 + $0x20] sm:$0xf] %vm1612_vm9, %v1828_v2  ;;  %1620 = vst.msk [vmem:[%s2872_s17 + $0x1c] sm:$0xf] %vm1612_vm9, %v1827_v34 }
 0x277 PF: > { %s13_s12 = sadd.s32 1, %s2100_s12  }
 0x278   : > { %p10_p4 = scmp.ge.s32.totalorder %s13_s12, 4  }
 0x27a   :  { %12 = sbr.rel (!%p10_p4) target bundleno = 1 (0x1), region = 68 }

// kernel: pconv_encoder.5
= control target key start
LH: loop header
LB: loop body
LE: loop exit
PB: predicated region body
PF: predicated region fallthrough
CT: control target
= control target key end

     0   :  { %s2192_s12 = smov 0   ;;  %s2694_s0 = inlined_call_operand.vmem [shape: bf16[2,4,10,65], index: 0, kind: input, shape index: {}]   ;;  %s2695_s1 = inlined_call_operand.vmem [shape: bf16[4,260,129], index: 1, kind: input, shape index: {}]   ;;  %s2696_s2 = inlined_call_operand.vmem [shape: f32[1,128], index: 2, kind: input, shape index: {}]   ;;  %s2697_s3 = inlined_call_operand.vmem [shape: bf16[2,6,129], index: 3, kind: output, shape index: {}]  }
   0x1 LB: > { %s1620_s13 = sadd.s32 4294967295, %s2166_s12   ;;  %p1624_p0 = scmp.ge.s32.totalorder %s2166_s12, 1  ;;  %s2166_s12 = sphi %s2192_s12, %s13_s12  }
   0x2   : > { %p137_p1 = scmp.lt.s32.totalorder %s2166_s12, 3 }
   0x4   : > { %p138_p2 = pnand %p1624_p0, %p137_p1 }
   0x5   : > { %p161_p3 = scmp.lt.s32.totalorder (!%p138_p2), %s1620_s13, 1  ;;  %v1952_v0 = vld [vmem:[%s2695_s1 + $0x10c] ss:$8 sps:$4 sm:$0xff] (!%p138_p2)   ;;  %v1956_v2 = vld [vmem:[%s2695_s1 + $0x108] ss:$8 sps:$4 sm:$0xff] (!%p138_p2)   ;;  %s2168_s11 = smov (!%p138_p2), 65  }
   0x6   : > { %141 = sbr.rel (%p138_p2) target bundleno = 606 (0x25e), region = 32  ;;  %v1954_v1 = vld [vmem:[%s2695_s1 + $0x214] ss:$8 sps:$4 sm:$0xff] (!%p138_p2)   ;;  %513 = vmatprep.subr.bf16.mxu1 (!%p138_p2), %v1952_v0  ;;  %v1957_v3 = vld [vmem:[%s2695_s1 + $0x210] ss:$8 sps:$4 sm:$0xff] (!%p138_p2)   ;;  %s2170_s5 = smov (!%p138_p2), 67  }
   0x7   : > { %1105 = vmatprep.subr.bf16.mxu0 (!%p138_p2), %v1954_v1  ;;  %v1958_v4 = vld [vmem:[%s2695_s1 + $0x11c] ss:$8 sps:$4 sm:$0xff] (!%p138_p2)   ;;  %514 = vmatpush1.bf16.msra.mxu1 (!%p138_p2), %v1956_v2  ;;  %v1962_v6 = vld [vmem:[%s2695_s1 + $0x118] ss:$8 sps:$4 sm:$0xff] (!%p138_p2)   ;;  %v1964_v25 = vld [vmem:[%s2695_s1 + $0x12c] ss:$8 sps:$4 sm:$0xff] (!%p138_p2)  }
   0x8   : > { %1106 = vmatpush1.bf16.msra.mxu0 (!%p138_p2), %v1957_v3  ;;  %v1960_v5 = vld [vmem:[%s2695_s1 + $0x224] ss:$8 sps:$4 sm:$0xff] (!%p138_p2)   ;;  %515 = vmatprep.subr.bf16.mxu1 (!%p138_p2), %v1958_v4  ;;  %v1963_v7 = vld [vmem:[%s2695_s1 + $0x220] ss:$8 sps:$4 sm:$0xff] (!%p138_p2)   ;;  %v1966_v30 = vld [vmem:[%s2695_s1 + $0x234] ss:$8 sps:$4 sm:$0xff] (!%p138_p2)  }
   0x9   : > { %1107 = vmatprep.subr.bf16.mxu0 (!%p138_p2), %v1960_v5  ;;  %v1969_v40 = vld [vmem:[%s2695_s1 + $0x128] ss:$8 sps:$4 sm:$0xff] (!%p138_p2)   ;;  %v1971_v42 = vld [vmem:[%s2695_s1 + $0x13c] ss:$8 sps:$4 sm:$0xff] (!%p138_p2)   ;;  %v1977_v52 = vld [vmem:[%s2695_s1 + $0x138] ss:$8 sps:$4 sm:$0xff] (!%p138_p2)  }
   0xa   : > { %v1970_v41 = vld [vmem:[%s2695_s1 + $0x230] ss:$8 sps:$4 sm:$0xff] (!%p138_p2)   ;;  %v1973_v46 = vld [vmem:[%s2695_s1 + $0x244] ss:$8 sps:$4 sm:$0xff] (!%p138_p2)   ;;  %v1978_v54 = vld [vmem:[%s2695_s1 + $0x240] ss:$8 sps:$4 sm:$0xff] (!%p138_p2)  }
   0xb   : > { %516 = vmatpush1.bf16.msra.mxu1 (!%p138_p2), %v1962_v6  ;;  %v1979_v55 = vld [vmem:[%s2695_s1 + $0x14c] ss:$8 sps:$4 sm:$0xff] (!%p138_p2)   ;;  %v1985_v4 = vld [vmem:[%s2695_s1 + $0x148] ss:$8 sps:$4 sm:$0xff] (!%p138_p2)   ;;  %vm506_vm0 = vcmask (!%p138_p2), 1041408   ;;  %vm216_vm1 = vcmask (!%p138_p2), 15360  }
   0xc   : > { %1108 = vmatpush1.bf16.msra.mxu0 (!%p138_p2), %v1963_v7  ;;  %517 = vmatprep.subr.bf16.mxu1 (!%p138_p2), %v1964_v25  ;;  %v1981_v60 = vld [vmem:[%s2695_s1 + $0x254] ss:$8 sps:$4 sm:$0xff] (!%p138_p2)   ;;  %v1986_v5 = vld [vmem:[%s2695_s1 + $0x250] ss:$8 sps:$4 sm:$0xff] (!%p138_p2)   ;;  %vm219_vm2 = vcmask (!%p138_p2), 547840   ;;  %vm211_vm3 = vcmask (!%p138_p2), 531456  }
   0xd   : > { %s2699_s13 = smov (!%p161_p3, %s1620_s13), 1  ;;  %1109 = vmatprep.subr.bf16.mxu0 %v1966_v30  ;;  %vm503_vm4 = vcmask 31744   ;;  %vm1561_vm5 = vcmask 1042432   ;;  %vm1562_vm6 = vcmask 6148  }
   0xe   : > { %s1903_s24 = sshll.u32 %s2699_s13, 5  ;;  %s1904_s19 = sshll.u32 %s2699_s13, 3  ;;  %vm1563_vm7 = vmor %vm1562_vm6, %vm1561_vm5 }
   0xf   : > { %s2227_s4 = scalar_lea.vmem %s2694_s0, %s1903_s24  ;;  %518 = vmatpush1.bf16.msra.mxu1 %v1969_v40  ;;  %s2169_s24 = smov 2   ;;  %v2017_v40 = vld [vmem:[%s2695_s1 + $0x2a0] ss:$8 sps:$4 sm:$0xff]  }
  0x10   : > { %v1946_v8 = vld [vmem:[%s2227_s4 + $0x10] ss:$0 sps:$4 sm:$0xff]   ;;  %v1947_v9 = vld [vmem:[%s2227_s4 + $0x8] ss:$0 sps:$4 sm:$0xff]   ;;  %v1747_v10 = vld [vmem:[%s2227_s4 + $0x10] sm:$0xe]  ;;  %1110 = vmatpush1.bf16.msra.mxu0 %v1970_v41  ;;  %519 = vmatprep.subr.bf16.mxu1 %v1971_v42  ;;  %s170_s21 = scalar_lea.vmem %s2697_s3, %s1904_s19 }
  0x11   : > { %v1748_v11 = vld [vmem:[%s2227_s4 + $0x14] sm:$0x1]  ;;  %v860_v12 = vshrl.u32 %v1946_v8, 16  ;;  %v862_v13 = vshll.u32 %v1946_v8, 16  ;;  %v1634_v15 = vld [vmem:[%s2227_s4 + $0x8] sm:$0xe]  ;;  %1111 = vmatprep.subr.bf16.mxu0 %v1973_v46 }
  0x12   : > { %v1751_v14 = vcombine.low %v1747_v10, %v1748_v11  ;;  %v1635_v16 = vld [vmem:[%s2227_s4 + $0xc] sm:$0x1]  ;;  %v266_v17 = vshrl.u32 %v1947_v9, 16  ;;  %v268_v18 = vshll.u32 %v1947_v9, 16  ;;  %v1749_v20 = vld [vmem:[%s2227_s4 + $0x10] sm:$0xc] }
  0x13   : > { %v1638_v19 = vcombine.low %v1634_v15, %v1635_v16  ;;  %v1636_v21 = vld [vmem:[%s2227_s4 + $0x8] sm:$0xc]  ;;  %v864_v22 = vrot.slane %v862_v13, 1  ;;  %v1752_v29 = vcombine.low %v1749_v20, %v1748_v11  ;;  %v1968_v38 = vld [vmem:[%s2227_s4] ss:$0 sps:$4 sm:$0xff]   ;;  %520 = vmatpush1.bf16.msra.mxu1 %v1977_v52  ;;  %v2171_v20 = vmov 0  }
  0x14   : > { %v874_v23 = vshrl.u32 %v1751_v14, 16  ;;  %v877_v24 = vshll.u32 %v1751_v14, 16  ;;  %v270_v26 = vrot.slane %v268_v18, 1  ;;  %v1639_v37 = vcombine.low %v1636_v21, %v1635_v16  ;;  %v175_v47 = vld [vmem:[%s2227_s4] sm:$0xe]  ;;  %1112 = vmatpush1.bf16.msra.mxu0 %v1978_v54  ;;  %521 = vmatprep.subr.bf16.mxu1 %v1979_v55 }
  0x15   : > { %v280_v27 = vshrl.u32 %v1638_v19, 16  ;;  %v283_v28 = vshll.u32 %v1638_v19, 16  ;;  %v865_v31 = vor.u32 %v864_v22, %v860_v12  ;;  %v886_v44 = vrot.slane %v1752_v29, 2  ;;  %v2263_v48 = vld [vmem:[%s2227_s4 + $0x4] sm:$0x1]  ;;  %1113 = vmatprep.subr.bf16.mxu0 %v1981_v60  ;;  %1944 = vset.pattern.permute.xlu0 %v2171_v20 }
  0x16   : > { %v876_v32 = vrot.slane %v874_v23, 1  ;;  %v879_v33 = vrot.slane %v877_v24, 2  ;;  %v271_v34 = vor.u32 %v270_v26, %v266_v17  ;;  %v184_v45 = vshll.u32 %v1968_v38, 16  ;;  %v1976_v51 = vld [vmem:[%s2227_s4 + $0x18] ss:$0 sps:$4 sm:$0xff]   ;;  %1945 = vset.pattern.permute.xlu1 %v2171_v20 }
  0x17   : > { %v282_v35 = vrot.slane %v280_v27, 1  ;;  %v285_v36 = vrot.slane %v283_v28, 2  ;;  %866 = vrot.lane.b32.xlu1 %v865_v31, %s2168_s11  ;;  %v292_v49 = vrot.slane %v1639_v37, 2  ;;  %v1630_v50 = vcombine.low %v175_v47, %v2263_v48  ;;  %v1824_v61 = vld [vmem:[%s2227_s4 + $0x18] sm:$0xe]  ;;  %522 = vmatpush1.bf16.msra.mxu1 %v1985_v4 }
  0x18   : > { %v880_v39 = vor.u32 %v879_v33, %v876_v32  ;;  %272 = vrot.lane.b32.xlu0 %v271_v34, %s2168_s11  ;;  %v182_v53 = vshrl.u32 %v1968_v38, 16  ;;  %v186_v56 = vrot.slane %v184_v45, 1  ;;  %v1201_v59 = vshll.u32 %v1976_v51, 16  ;;  %v1825_v0 = vld [vmem:[%s2227_s4 + $0x1c] sm:$0x1]  ;;  %1114 = vmatpush1.bf16.msra.mxu0 %v1986_v5 }
  0x19   : > { %v286_v43 = vor.u32 %v285_v36, %v282_v35  ;;  %v196_v57 = vshrl.u32 %v1630_v50, 16  ;;  %v199_v58 = vshll.u32 %v1630_v50, 16  ;;  %v1199_v1 = vshrl.u32 %v1976_v51, 16  ;;  %v177_v3 = vld [vmem:[%s2227_s4] sm:$0xc] }
  0x1a   : > { %v1828_v2 = vcombine.low %v1824_v61, %v1825_v0  ;;  %v187_v6 = vor.u32 %v186_v56, %v182_v53  ;;  %v1203_v8 = vrot.slane %v1201_v59, 1  ;;  %v1987_v9 = vld [vmem:[%s2695_s1 + $0x15c] ss:$8 sps:$4 sm:$0xff]   ;;  %v1826_v13 = vld [vmem:[%s2227_s4 + $0x18] sm:$0xc]  ;;  %v1631_v22 = vcombine.low %v177_v3, %v2263_v48 }
  0x1b   : > { %881 = vrot.lane.b32.xlu1 %v880_v39, %s2169_s24  ;;  %v198_v62 = vrot.slane %v196_v57, 1  ;;  %v201_v63 = vrot.slane %v199_v58, 2  ;;  %v1989_v10 = vld [vmem:[%s2695_s1 + $0x264] ss:$8 sps:$4 sm:$0xff]   ;;  %523 = vmatprep.subr.bf16.mxu1 %v1987_v9  ;;  %v1992_v14 = vld [vmem:[%s2695_s1 + $0x158] ss:$8 sps:$4 sm:$0xff]   ;;  %v1829_v18 = vcombine.low %v1826_v13, %v1825_v0 }
  0x1c   : > { %287 = vrot.lane.b32.xlu0 %v286_v43, %s2169_s24  ;;  %v1213_v11 = vshrl.u32 %v1828_v2, 16  ;;  %v1216_v12 = vshll.u32 %v1828_v2, 16  ;;  %1115 = vmatprep.subr.bf16.mxu0 %v1989_v10  ;;  %v1993_v15 = vld [vmem:[%s2695_s1 + $0x260] ss:$8 sps:$4 sm:$0xff]   ;;  %v1994_v19 = vld [vmem:[%s2695_s1 + $0x16c] ss:$8 sps:$4 sm:$0xff]   ;;  %v1204_v21 = vor.u32 %v1203_v8, %v1199_v1 }
  0x1d   : > { %v202_v7 = vor.u32 %v201_v63, %v198_v62  ;;  %v1996_v23 = vld [vmem:[%s2695_s1 + $0x274] ss:$8 sps:$4 sm:$0xff]   ;;  %v1998_v24 = vld [vmem:[%s2695_s1 + $0x168] ss:$8 sps:$4 sm:$0xff]   ;;  %524 = vmatpush1.bf16.msra.mxu1 %v1992_v14  ;;  %1116 = vmatpush1.bf16.msra.mxu0 %v1993_v15  ;;  %v2002_v28 = vld [vmem:[%s2695_s1 + $0x284] ss:$8 sps:$4 sm:$0xff]  }
  0x1e   : > { %v1215_v16 = vrot.slane %v1213_v11, 1  ;;  %v1218_v17 = vrot.slane %v1216_v12, 2  ;;  %v1999_v26 = vld [vmem:[%s2695_s1 + $0x270] ss:$8 sps:$4 sm:$0xff]   ;;  %v2000_v27 = vld [vmem:[%s2695_s1 + $0x17c] ss:$8 sps:$4 sm:$0xff]   ;;  %525 = vmatprep.subr.bf16.mxu1 %v1994_v19  ;;  %1117 = vmatprep.subr.bf16.mxu0 %v1996_v23 }
  0x1f   : > { %887 = vrot.lane.b32.xlu1 %v886_v44, %s2170_s5  ;;  %v1225_v29 = vrot.slane %v1829_v18, 2  ;;  %v208_v30 = vrot.slane %v1631_v22, 2  ;;  %v2004_v31 = vld [vmem:[%s2695_s1 + $0x178] ss:$8 sps:$4 sm:$0xff]   ;;  %v2006_v33 = vld [vmem:[%s2695_s1 + $0x18c] ss:$8 sps:$4 sm:$0xff]  }
  0x20   : > { %293 = vrot.lane.b32.xlu0 %v292_v49, %s2170_s5  ;;  %v1219_v25 = vor.u32 %v1218_v17, %v1215_v16  ;;  %v2005_v32 = vld [vmem:[%s2695_s1 + $0x280] ss:$8 sps:$4 sm:$0xff]   ;;  %v2008_v34 = vld [vmem:[%s2695_s1 + $0x294] ss:$8 sps:$4 sm:$0xff]   ;;  %v2011_v36 = vld [vmem:[%s2695_s1 + $0x290] ss:$8 sps:$4 sm:$0xff]  }
  0x21   : > { %526 = vmatpush1.bf16.msra.mxu1 %v1998_v24  ;;  %1118 = vmatpush1.bf16.msra.mxu0 %v1999_v26  ;;  %v2010_v35 = vld [vmem:[%s2695_s1 + $0x188] ss:$8 sps:$4 sm:$0xff]   ;;  %v2012_v37 = vld [vmem:[%s2695_s1 + $0x19c] ss:$8 sps:$4 sm:$0xff]   ;;  %v2016_v39 = vld [vmem:[%s2695_s1 + $0x198] ss:$8 sps:$4 sm:$0xff]  }
  0x22   : > { %527 = vmatprep.subr.bf16.mxu1 %v2000_v27  ;;  %1119 = vmatprep.subr.bf16.mxu0 %v2002_v28  ;;  %v2014_v38 = vld [vmem:[%s2695_s1 + $0x2a4] ss:$8 sps:$4 sm:$0xff]   ;;  %v2020_v42 = vld [vmem:[%s2695_s1 + $0x2b4] ss:$8 sps:$4 sm:$0xff]   ;;  %v2022_v43 = vld [vmem:[%s2695_s1 + $0x1a8] ss:$8 sps:$4 sm:$0xff]  }
  0x23   : > { %203 = vrot.lane.b32.xlu1 %v202_v7, %s2169_s24  ;;  %v2018_v41 = vld [vmem:[%s2695_s1 + $0x1ac] ss:$8 sps:$4 sm:$0xff]   ;;  %v2023_v44 = vld [vmem:[%s2695_s1 + $0x2b0] ss:$8 sps:$4 sm:$0xff]   ;;  %v2024_v45 = vld [vmem:[%s2695_s1 + $0x1bc] ss:$8 sps:$4 sm:$0xff]  }
  0x24   : > { %188 = vrot.lane.b32.xlu0 %v187_v6, %s2168_s11  ;;  %v2026_v46 = vld [vmem:[%s2695_s1 + $0x2c4] ss:$8 sps:$4 sm:$0xff]   ;;  %v2028_v47 = vld [vmem:[%s2695_s1 + $0x1b8] ss:$8 sps:$4 sm:$0xff]   ;;  %v2032_v50 = vld [vmem:[%s2695_s1 + $0x2d4] ss:$8 sps:$4 sm:$0xff]  }
  0x25   : > { %528 = vmatpush1.bf16.msra.mxu1 %v2004_v31  ;;  %1120 = vmatpush1.bf16.msra.mxu0 %v2005_v32  ;;  %v2029_v48 = vld [vmem:[%s2695_s1 + $0x2c0] ss:$8 sps:$4 sm:$0xff]   ;;  %v2030_v49 = vld [vmem:[%s2695_s1 + $0x1cc] ss:$8 sps:$4 sm:$0xff]   ;;  %v2035_v52 = vld [vmem:[%s2695_s1 + $0x2d0] ss:$8 sps:$4 sm:$0xff]  }
  0x26   : > { %529 = vmatprep.subr.bf16.mxu1 %v2006_v33  ;;  %1121 = vmatprep.subr.bf16.mxu0 %v2008_v34  ;;  %v2034_v51 = vld [vmem:[%s2695_s1 + $0x1c8] ss:$8 sps:$4 sm:$0xff]   ;;  %v2036_v53 = vld [vmem:[%s2695_s1 + $0x1dc] ss:$8 sps:$4 sm:$0xff]   ;;  %v2040_v55 = vld [vmem:[%s2695_s1 + $0x1d8] ss:$8 sps:$4 sm:$0xff]  }
  0x27   : > { %1220 = vrot.lane.b32.xlu1 %v1219_v25, %s2169_s24  ;;  %v2038_v54 = vld [vmem:[%s2695_s1 + $0x2e4] ss:$8 sps:$4 sm:$0xff]   ;;  %v2041_v56 = vld [vmem:[%s2695_s1 + $0x2e0] ss:$8 sps:$4 sm:$0xff]   ;;  %v2044_v58 = vld [vmem:[%s2695_s1 + $0x2f4] ss:$8 sps:$4 sm:$0xff]  }
  0x28   : > { %1205 = vrot.lane.b32.xlu0 %v1204_v21, %s2168_s11  ;;  %v2042_v57 = vld [vmem:[%s2695_s1 + $0x1ec] ss:$8 sps:$4 sm:$0xff]   ;;  %v2046_v59 = vld [vmem:[%s2695_s1 + $0x1e8] ss:$8 sps:$4 sm:$0xff]   ;;  %v2048_v61 = vld [vmem:[%s2695_s1 + $0x1fc] ss:$8 sps:$4 sm:$0xff]  }
  0x29   : > { %530 = vmatpush1.bf16.msra.mxu1 %v2010_v35  ;;  %1122 = vmatpush1.bf16.msra.mxu0 %v2011_v36  ;;  %v2047_v60 = vld [vmem:[%s2695_s1 + $0x2f0] ss:$8 sps:$4 sm:$0xff]   ;;  %v2050_v62 = vld [vmem:[%s2695_s1 + $0x304] ss:$8 sps:$4 sm:$0xff]   ;;  %v2053_v2 = vld [vmem:[%s2695_s1 + $0x300] ss:$8 sps:$4 sm:$0xff]  }
  0x2a   : > { %531 = vmatprep.subr.bf16.mxu1 %v2012_v37  ;;  %1123 = vmatprep.subr.bf16.mxu0 %v2014_v38  ;;  %v1672_v63 = vld [vmem:[%s2695_s1 + $0x208] sm:$0x33]  ;;  %v1785_v0 = vld [vmem:[%s2695_s1 + $0x310] sm:$0x33]  ;;  %v2052_v1 = vld [vmem:[%s2695_s1 + $0x1f8] ss:$8 sps:$4 sm:$0xff]  }
  0x2b   : > { %1226 = vrot.lane.b32.xlu1 %v1225_v29, %s2170_s5  ;;  %v1706_v3 = vcombine.high %v1672_v63, %v1672_v63  ;;  %v1819_v4 = vcombine.high %v1785_v0, %v1785_v0  ;;  %v1818_v9 = vcombine.low %v1785_v0, %v1785_v0  ;;  %v1705_v10 = vcombine.low %v1672_v63, %v1672_v63  ;;  %v1745_v11 = vld [vmem:[%s2227_s4 + $0x10] sm:$0x7]  ;;  %v1632_v14 = vld [vmem:[%s2227_s4 + $0x8] sm:$0x7]  ;;  %v2060_v23 = vld [vmem:[%s2695_s1 + $0x4] ss:$8 sps:$4 sm:$0xff]  }
  0x2c   : > { %209 = vrot.lane.b32.xlu0 %v208_v30, %s2170_s5  ;;  %v2063_v25 = vld [vmem:[%s2695_s1 + $0x31c] ss:$8 sps:$4 sm:$0xff]   ;;  %v173_v26 = vld [vmem:[%s2227_s4] sm:$0x7]  ;;  %v1822_v30 = vld [vmem:[%s2227_s4 + $0x18] sm:$0x7] }
  0x2d   : > { %532 = vmatpush1.bf16.msra.mxu1 %v2016_v39  ;;  %1124 = vmatpush1.bf16.msra.mxu0 %v2017_v40  ;;  %v1100_v18 = vsel %vm506_vm0, %v1818_v9, 0  ;;  %v508_v22 = vsel %vm506_vm0, %v1705_v10, 0  ;;  %v2061_v34 = vld [vmem:[%s2695_s1 + $0x318] ss:$8 sps:$4 sm:$0xff]   ;;  %v2069_v37 = vld [vmem:[%s2695_s1 + $0x32c] ss:$8 sps:$4 sm:$0xff]  }
  0x2e   : > { %533 = vmatprep.subr.bf16.mxu1 %v2018_v41  ;;  %1125 = vmatprep.subr.bf16.mxu0 %v2020_v42  ;;  %v2058_v36 = vld [vmem:[%s2695_s1] ss:$8 sps:$4 sm:$0xff]   ;;  %v2066_v41 = vld [vmem:[%s2695_s1 + $0x14] ss:$8 sps:$4 sm:$0xff]   ;;  %v2096_v63 = vld [vmem:[%s2695_s1 + $0x64] ss:$8 sps:$4 sm:$0xff]  }
  0x2f   : > { %v2097_v0 = vld [vmem:[%s2695_s1 + $0x378] ss:$8 sps:$4 sm:$0xff]   ;;  %v2117_v10 = vld [vmem:[%s2695_s1 + $0x3ac] ss:$8 sps:$4 sm:$0xff]  }
  0x30   : > { %v2106_v9 = vld [vmem:[%s2695_s1 + $0x80] ss:$8 sps:$4 sm:$0xff]  }
  0x31   : > { %534 = vmatpush1.bf16.msra.mxu1 %v2022_v43  ;;  %1126 = vmatpush1.bf16.msra.mxu0 %v2023_v44  ;;  %v2067_v43 = vld [vmem:[%s2695_s1 + $0x328] ss:$8 sps:$4 sm:$0xff]  }
  0x32   : > { %535 = vmatprep.subr.bf16.mxu1 %v2024_v45  ;;  %1127 = vmatprep.subr.bf16.mxu0 %v2026_v46  ;;  %v2064_v45 = vld [vmem:[%s2695_s1 + $0x10] ss:$8 sps:$4 sm:$0xff]   ;;  %v2075_v46 = vld [vmem:[%s2695_s1 + $0x33c] ss:$8 sps:$4 sm:$0xff]  }
  0x35   : > { %536 = vmatpush1.bf16.msra.mxu1 %v2028_v47  ;;  %1128 = vmatpush1.bf16.msra.mxu0 %v2029_v48  ;;  %v2072_v47 = vld [vmem:[%s2695_s1 + $0x24] ss:$8 sps:$4 sm:$0xff]   ;;  %v2073_v48 = vld [vmem:[%s2695_s1 + $0x338] ss:$8 sps:$4 sm:$0xff]  }
  0x36   : > { %537 = vmatprep.subr.bf16.mxu1 %v2030_v49  ;;  %1129 = vmatprep.subr.bf16.mxu0 %v2032_v50  ;;  %v2070_v49 = vld [vmem:[%s2695_s1 + $0x20] ss:$8 sps:$4 sm:$0xff]   ;;  %v2081_v50 = vld [vmem:[%s2695_s1 + $0x34c] ss:$8 sps:$4 sm:$0xff]  }
  0x39   : > { %538 = vmatpush1.bf16.msra.mxu1 %v2034_v51  ;;  %1130 = vmatpush1.bf16.msra.mxu0 %v2035_v52  ;;  %v2078_v51 = vld [vmem:[%s2695_s1 + $0x34] ss:$8 sps:$4 sm:$0xff]   ;;  %v2079_v52 = vld [vmem:[%s2695_s1 + $0x348] ss:$8 sps:$4 sm:$0xff]  }
  0x3a   : > { %539 = vmatprep.subr.bf16.mxu1 %v2036_v53  ;;  %1131 = vmatprep.subr.bf16.mxu0 %v2038_v54  ;;  %v2076_v53 = vld [vmem:[%s2695_s1 + $0x30] ss:$8 sps:$4 sm:$0xff]   ;;  %v2087_v54 = vld [vmem:[%s2695_s1 + $0x35c] ss:$8 sps:$4 sm:$0xff]  }
  0x3d   : > { %540 = vmatpush1.bf16.msra.mxu1 %v2040_v55  ;;  %1132 = vmatpush1.bf16.msra.mxu0 %v2041_v56  ;;  %v2084_v55 = vld [vmem:[%s2695_s1 + $0x44] ss:$8 sps:$4 sm:$0xff]   ;;  %v2085_v56 = vld [vmem:[%s2695_s1 + $0x358] ss:$8 sps:$4 sm:$0xff]  }
  0x3e   : > { %541 = vmatprep.subr.bf16.mxu1 %v2042_v57  ;;  %1133 = vmatprep.subr.bf16.mxu0 %v2044_v58  ;;  %v2082_v57 = vld [vmem:[%s2695_s1 + $0x40] ss:$8 sps:$4 sm:$0xff]   ;;  %v2093_v58 = vld [vmem:[%s2695_s1 + $0x36c] ss:$8 sps:$4 sm:$0xff]  }
  0x41   : > { %542 = vmatpush1.bf16.msra.mxu1 %v2046_v59  ;;  %1134 = vmatpush1.bf16.msra.mxu0 %v2047_v60  ;;  %v2090_v59 = vld [vmem:[%s2695_s1 + $0x54] ss:$8 sps:$4 sm:$0xff]   ;;  %v2091_v60 = vld [vmem:[%s2695_s1 + $0x368] ss:$8 sps:$4 sm:$0xff]  }
  0x42   : > { %543 = vmatprep.subr.bf16.mxu1 %v2048_v61  ;;  %1135 = vmatprep.subr.bf16.mxu0 %v2050_v62  ;;  %v2088_v61 = vld [vmem:[%s2695_s1 + $0x50] ss:$8 sps:$4 sm:$0xff]   ;;  %v2099_v62 = vld [vmem:[%s2695_s1 + $0x37c] ss:$8 sps:$4 sm:$0xff]  }
  0x45   : > { %544 = vmatpush1.bf16.msra.mxu1 %v2052_v1  ;;  %1136 = vmatpush1.bf16.msra.mxu0 %v2053_v2  ;;  %v2094_v1 = vld [vmem:[%s2695_s1 + $0x60] ss:$8 sps:$4 sm:$0xff]   ;;  %v2105_v2 = vld [vmem:[%s2695_s1 + $0x38c] ss:$8 sps:$4 sm:$0xff]  }
  0x46   : > { %1707 = vmatprep.subr.msk.bf16.mxu1 %vm506_vm0, %v1706_v3  ;;  %1820 = vmatprep.subr.msk.bf16.mxu0 %vm506_vm0, %v1819_v4  ;;  %v2102_v3 = vld [vmem:[%s2695_s1 + $0x74] ss:$8 sps:$4 sm:$0xff]   ;;  %v2103_v4 = vld [vmem:[%s2695_s1 + $0x388] ss:$8 sps:$4 sm:$0xff]  }
  0x89   : > { %v867_v5 = vpop.permute.xlu1 %866 }
  0x8a   : > { %v273_v6 = vpop.permute.xlu0 %272  ;;  %v891_v21 = vsel %vm211_vm3, %v1745_v11, %v867_v5  ;;  %v2114_v11 = vld [vmem:[%s2695_s1 + $0x94] ss:$8 sps:$4 sm:$0xff]  }
  0x8b   : > { %v297_v24 = vsel %vm211_vm3, %v1632_v14, %v273_v6  ;;  %v2123_v14 = vld [vmem:[%s2695_s1 + $0x3bc] ss:$8 sps:$4 sm:$0xff]  }
  0x8d   : > { %v882_v7 = vpop.permute.xlu1 %881 }
  0x8e   : > { %v288_v8 = vpop.permute.xlu0 %287  ;;  %v894_v12 = vsel %vm216_vm1, %v867_v5, %v882_v7  ;;  %v2100_v5 = vld [vmem:[%s2695_s1 + $0x70] ss:$8 sps:$4 sm:$0xff]   ;;  %v2108_v7 = vld [vmem:[%s2695_s1 + $0x84] ss:$8 sps:$4 sm:$0xff]  }
  0x8f   : > { %v300_v15 = vsel %vm216_vm1, %v273_v6, %v288_v8  ;;  %v2111_v6 = vld [vmem:[%s2695_s1 + $0x39c] ss:$8 sps:$4 sm:$0xff]   ;;  %v2109_v8 = vld [vmem:[%s2695_s1 + $0x398] ss:$8 sps:$4 sm:$0xff]  }
  0x91   : > { %v888_v13 = vpop.permute.xlu1 %887 }
  0x92   : > { %v294_v16 = vpop.permute.xlu0 %293  ;;  %v896_v17 = vsel %vm219_vm2, %v894_v12, %v888_v13  ;;  %v2115_v12 = vld [vmem:[%s2695_s1 + $0x3a8] ss:$8 sps:$4 sm:$0xff]  }
  0x93   : > { %v302_v19 = vsel %vm219_vm2, %v300_v15, %v294_v16  ;;  %1137 = vmatprep.mubr.bf16.mxu0 %v896_v17  ;;  %v2120_v15 = vld [vmem:[%s2695_s1 + $0xa4] ss:$8 sps:$4 sm:$0xff]   ;;  %v2118_v17 = vld [vmem:[%s2695_s1 + $0xa0] ss:$8 sps:$4 sm:$0xff]  }
  0x94   : > { %545 = vmatprep.mubr.bf16.mxu1 %v302_v19  ;;  %1138 = vmatmul.mubr.bf16.vlgmr.msra.gmra.mrb[0].mxu0 %v891_v21  ;;  %v2126_v19 = vld [vmem:[%s2695_s1 + $0xb4] ss:$8 sps:$4 sm:$0xff]   ;;  %v2127_v21 = vld [vmem:[%s2695_s1 + $0x3c8] ss:$8 sps:$4 sm:$0xff]  }
  0x95   : > { %546 = vmatmul.mubr.bf16.vlgmr.msra.gmra.mrb[0].mxu1 %v297_v24  ;;  %1147 = vmatpush1.bf16.msra.mxu0 %v1100_v18  ;;  %v204_v27 = vpop.permute.xlu1 %203  ;;  %v2129_v18 = vld [vmem:[%s2695_s1 + $0x3cc] ss:$8 sps:$4 sm:$0xff]  }
  0x96   : > { %555 = vmatpush1.bf16.msra.mxu1 %v508_v22  ;;  %586 = vmatprep.mubr.bf16.mxu1 %v2171_v20  ;;  %v189_v28 = vpop.permute.xlu0 %188  ;;  %v2124_v22 = vld [vmem:[%s2695_s1 + $0xb0] ss:$8 sps:$4 sm:$0xff]   ;;  %v2132_v24 = vld [vmem:[%s2695_s1 + $0xc4] ss:$8 sps:$4 sm:$0xff]  }
  0x97   : > { %768 = vmatprep.subr.bf16.mxu1 %v2060_v23  ;;  %1178 = vmatprep.mubr.bf16.mxu0 %v2171_v20  ;;  %v2462_v29 = vsel %vm211_vm3, %v173_v26, %v189_v28  ;;  %v218_v35 = vsel %vm216_vm1, %v189_v28, %v204_v27  ;;  %v2135_v23 = vld [vmem:[%s2695_s1 + $0x3dc] ss:$8 sps:$4 sm:$0xff]   ;;  %v2130_v26 = vld [vmem:[%s2695_s1 + $0xc0] ss:$8 sps:$4 sm:$0xff]   ;;  %v2141_v27 = vld [vmem:[%s2695_s1 + $0x3ec] ss:$8 sps:$4 sm:$0xff]  }
  0x98   : > { %1444 = vmatprep.subr.bf16.mxu0 %v2063_v25  ;;  %v2133_v25 = vld [vmem:[%s2695_s1 + $0x3d8] ss:$8 sps:$4 sm:$0xff]   ;;  %v2138_v28 = vld [vmem:[%s2695_s1 + $0xd4] ss:$8 sps:$4 sm:$0xff]  }
  0x99   : > { %v1221_v31 = vpop.permute.xlu1 %1220 }
  0x9a   : > { %v1206_v32 = vpop.permute.xlu0 %1205 }
  0x9b   : > { %v2466_v33 = vsel %vm211_vm3, %v1822_v30, %v1206_v32  ;;  %v1233_v38 = vsel %vm216_vm1, %v1206_v32, %v1221_v31  ;;  %v2139_v30 = vld [vmem:[%s2695_s1 + $0x3e8] ss:$8 sps:$4 sm:$0xff]   ;;  %v2147_v32 = vld [vmem:[%s2695_s1 + $0x3fc] ss:$8 sps:$4 sm:$0xff]  }
  0x9c   : > { %v2136_v31 = vld [vmem:[%s2695_s1 + $0xd0] ss:$8 sps:$4 sm:$0xff]  }
  0x9d   : > { %v2481_v40 = vpop.permute.xlu1 %1226 }
  0x9e   : > { %v2479_v39 = vpop.permute.xlu0 %209  ;;  %v1235_v44 = vsel %vm219_vm2, %v1233_v38, %v2481_v40  ;;  %v2150_v38 = vld [vmem:[%s2695_s1 + $0xf4] ss:$8 sps:$4 sm:$0xff]  }
  0x9f   : > { %v221_v42 = vsel %vm219_vm2, %v218_v35, %v2479_v39  ;;  %v2145_v35 = vld [vmem:[%s2695_s1 + $0x3f8] ss:$8 sps:$4 sm:$0xff]  }
  0xa0   : > { %1821 = vmatmul.mubr.msk.bf16.vlgmr.msra.gmra.mrb[0].mxu0 %vm503_vm4, %v888_v13  ;;  %v2112_v13 = vld [vmem:[%s2695_s1 + $0x90] ss:$8 sps:$4 sm:$0xff]  }
  0xa1   : > { %1708 = vmatmul.mubr.msk.bf16.vlgmr.msra.gmra.mrb[0].mxu1 %vm503_vm4, %v294_v16  ;;  %1445 = vmatpush1.bf16.msra.mxu0 %v2061_v34  ;;  %v2121_v16 = vld [vmem:[%s2695_s1 + $0x3b8] ss:$8 sps:$4 sm:$0xff]   ;;  %v2144_v34 = vld [vmem:[%s2695_s1 + $0xe4] ss:$8 sps:$4 sm:$0xff]  }
  0xa2   : > { %769 = vmatpush1.bf16.msra.mxu1 %v2058_v36  ;;  %1446 = vmatprep.subr.bf16.mxu0 %v2069_v37  ;;  %v2142_v36 = vld [vmem:[%s2695_s1 + $0xe0] ss:$8 sps:$4 sm:$0xff]   ;;  %v2153_v37 = vld [vmem:[%s2695_s1 + $0x40c] ss:$8 sps:$4 sm:$0xff]  }
  0xa3   : > { %770 = vmatprep.subr.bf16.mxu1 %v2066_v41  ;;  %800 = vmatprep.mubr.bf16.mxu1 %v221_v42  ;;  %v1862_v41 = vld [vmem:[%s2695_s1 + $0x418] sm:$0x33]  ;;  %v255_v42 = vld [vmem:[%s2695_s1 + $0x100] sm:$0x33] }
  0xa4   : > { %1476 = vmatprep.mubr.bf16.mxu0 %v1235_v44  ;;  %v2148_v44 = vld [vmem:[%s2695_s1 + $0xf0] ss:$8 sps:$4 sm:$0xff]  }
  0xa5   : > { %1447 = vmatpush1.bf16.msra.mxu0 %v2067_v43  ;;  %v2151_v43 = vld [vmem:[%s2695_s1 + $0x408] ss:$8 sps:$4 sm:$0xff]  }
  0xa6   : > { %771 = vmatpush1.bf16.msra.mxu1 %v2064_v45  ;;  %1448 = vmatprep.subr.bf16.mxu0 %v2075_v46  ;;  %v1896_v45 = vcombine.high %v1862_v41, %v1862_v41  ;;  %v1895_v46 = vcombine.low %v1862_v41, %v1862_v41 }
  0xa7   : > { %772 = vmatprep.subr.bf16.mxu1 %v2072_v47  ;;  %v1742_v47 = vcombine.high %v255_v42, %v255_v42 }
  0xa9   : > { %1449 = vmatpush1.bf16.msra.mxu0 %v2073_v48  ;;  %v1741_v48 = vcombine.low %v255_v42, %v255_v42 }
  0xaa   : > { %773 = vmatpush1.bf16.msra.mxu1 %v2070_v49  ;;  %1450 = vmatprep.subr.bf16.mxu0 %v2081_v50  ;;  %v1439_v49 = vsel %vm506_vm0, %v1895_v46, 0 }
  0xab   : > { %774 = vmatprep.subr.bf16.mxu1 %v2078_v51  ;;  %v763_v50 = vsel %vm506_vm0, %v1741_v48, 0 }
  0xad   : > { %1451 = vmatpush1.bf16.msra.mxu0 %v2079_v52 }
  0xae   : > { %775 = vmatpush1.bf16.msra.mxu1 %v2076_v53  ;;  %1452 = vmatprep.subr.bf16.mxu0 %v2087_v54 }
  0xaf   : > { %776 = vmatprep.subr.bf16.mxu1 %v2084_v55 }
  0xb1   : > { %1453 = vmatpush1.bf16.msra.mxu0 %v2085_v56 }
  0xb2   : > { %777 = vmatpush1.bf16.msra.mxu1 %v2082_v57  ;;  %1454 = vmatprep.subr.bf16.mxu0 %v2093_v58 }
  0xb3   : > { %778 = vmatprep.subr.bf16.mxu1 %v2090_v59 }
  0xb5   : > { %1455 = vmatpush1.bf16.msra.mxu0 %v2091_v60 }
  0xb6   : > { %779 = vmatpush1.bf16.msra.mxu1 %v2088_v61  ;;  %1456 = vmatprep.subr.bf16.mxu0 %v2099_v62 }
  0xb7   : > { %780 = vmatprep.subr.bf16.mxu1 %v2096_v63 }
  0xb9   : > { %1457 = vmatpush1.bf16.msra.mxu0 %v2097_v0 }
  0xba   : > { %781 = vmatpush1.bf16.msra.mxu1 %v2094_v1  ;;  %1458 = vmatprep.subr.bf16.mxu0 %v2105_v2 }
  0xbb   : > { %782 = vmatprep.subr.bf16.mxu1 %v2102_v3 }
  0xbd   : > { %1459 = vmatpush1.bf16.msra.mxu0 %v2103_v4 }
  0xbe   : > { %783 = vmatpush1.bf16.msra.mxu1 %v2100_v5  ;;  %1460 = vmatprep.subr.bf16.mxu0 %v2111_v6 }
  0xbf   : > { %784 = vmatprep.subr.bf16.mxu1 %v2108_v7 }
  0xc1   : > { %1461 = vmatpush1.bf16.msra.mxu0 %v2109_v8 }
  0xc2   : > { %785 = vmatpush1.bf16.msra.mxu1 %v2106_v9  ;;  %1462 = vmatprep.subr.bf16.mxu0 %v2117_v10 }
  0xc3   : > { %786 = vmatprep.subr.bf16.mxu1 %v2114_v11 }
  0xc5   : > { %1463 = vmatpush1.bf16.msra.mxu0 %v2115_v12 }
  0xc6   : > { %787 = vmatpush1.bf16.msra.mxu1 %v2112_v13  ;;  %1464 = vmatprep.subr.bf16.mxu0 %v2123_v14 }
  0xc7   : > { %788 = vmatprep.subr.bf16.mxu1 %v2120_v15 }
  0xc9   : > { %1465 = vmatpush1.bf16.msra.mxu0 %v2121_v16 }
  0xca   : > { %789 = vmatpush1.bf16.msra.mxu1 %v2118_v17  ;;  %1466 = vmatprep.subr.bf16.mxu0 %v2129_v18 }
  0xcb   : > { %790 = vmatprep.subr.bf16.mxu1 %v2126_v19 }
  0xcd   : > { %1467 = vmatpush1.bf16.msra.mxu0 %v2127_v21 }
  0xce   : > { %791 = vmatpush1.bf16.msra.mxu1 %v2124_v22  ;;  %1468 = vmatprep.subr.bf16.mxu0 %v2135_v23 }
  0xcf   : > { %792 = vmatprep.subr.bf16.mxu1 %v2132_v24 }
  0xd1   : > { %1469 = vmatpush1.bf16.msra.mxu0 %v2133_v25 }
  0xd2   : > { %793 = vmatpush1.bf16.msra.mxu1 %v2130_v26  ;;  %1470 = vmatprep.subr.bf16.mxu0 %v2141_v27 }
  0xd3   : > { %794 = vmatprep.subr.bf16.mxu1 %v2138_v28 }
  0xd5   : > { %1471 = vmatpush1.bf16.msra.mxu0 %v2139_v30 }
  0xd6   : > { %795 = vmatpush1.bf16.msra.mxu1 %v2136_v31  ;;  %1472 = vmatprep.subr.bf16.mxu0 %v2147_v32 }
  0xd7   : > { %796 = vmatprep.subr.bf16.mxu1 %v2144_v34 }
  0xd9   : > { %1473 = vmatpush1.bf16.msra.mxu0 %v2145_v35 }
  0xda   : > { %797 = vmatpush1.bf16.msra.mxu1 %v2142_v36  ;;  %1474 = vmatprep.subr.bf16.mxu0 %v2153_v37 }
  0xdb   : > { %798 = vmatprep.subr.bf16.mxu1 %v2150_v38 }
  0xdd   : > { %1475 = vmatpush1.bf16.msra.mxu0 %v2151_v43 }
  0xde   : > { %799 = vmatpush1.bf16.msra.mxu1 %v2148_v44  ;;  %1897 = vmatprep.subr.msk.bf16.mxu0 %vm506_vm0, %v1896_v45 }
  0xdf   : > { %1743 = vmatprep.subr.msk.bf16.mxu1 %vm506_vm0, %v1742_v47 }
  0xe0   : > { %1477 = vmatmul.mubr.bf16.vlgmr.msra.gmra.mrb[0].mxu0 %v2466_v33 }
  0xe1   : > { %801 = vmatmul.mubr.bf16.vlgmr.msra.gmra.mrb[0].mxu1 %v2462_v29  ;;  %1486 = vmatpush1.bf16.msra.mxu0 %v1439_v49 }
  0xe2   : > { %810 = vmatpush1.bf16.msra.mxu1 %v763_v50  ;;  %841 = vmatprep.mubr.bf16.mxu1 %v2171_v20 }
  0xe3   : > { %1517 = vmatprep.mubr.bf16.mxu0 %v2171_v20 }
  0xec   : > { %1898 = vmatmul.mubr.msk.bf16.vlgmr.msra.gmra.mrb[0].mxu0 %vm503_vm4, %v2481_v40 }
  0xed   : > { %1744 = vmatmul.mubr.msk.bf16.vlgmr.msra.gmra.mrb[0].mxu1 %vm503_vm4, %v2479_v39  ;;  %v1899_v39 = vld [vmem:[%s2696_s2] ss:$0 sm:$0xff] }
 0x1bf   : > { %v1519_v51 = vpop.f32.mrb[0].mxu0 }
 0x1c0   : > { %v843_v52 = vpop.f32.mrb[0].mxu1  ;;  %v1521_v53 = vpop.f32.mrb[1].mxu0 }
 0x1c1   : > { %v1906_v54 = vadd.f32 %v1519_v51, %v843_v52  ;;  %v845_v55 = vpop.f32.mrb[1].mxu1  ;;  %v1523_v33 = vpop.f32.mrb[2].mxu0 }
 0x1c2   : > { %v1907_v56 = vadd.f32 %v1521_v53, %v845_v55  ;;  %v847_v29 = vpop.f32.mrb[2].mxu1  ;;  %v1524_v57 = vpop.f32.mrb[3].mxu0 }
 0x1c3   : > { %v848_v58 = vpop.f32.mrb[3].mxu1 }
 0x1c4   : > { %v1528_v59 = vmax.f32 %v1907_v56, 0.0  ;;  %v1530_v60 = vadd.f32 1e-08, %v1907_v56 }
 0x1c6   : > { %v1529_v20 = vmin.f32 %v1528_v59, 1.0  ;;  %2158 = vrcp.f32 %v1530_v60 }
 0x1c8   : > { %1548 = vperm.xlu1 %1945, %v1529_v20  }
 0x1d0   : > { %v2159_v40 = vpop.eup %2158 }
 0x1d1   : > { %v1532_v61 = vmul.f32 1024.0, %v2159_v40 }
 0x1d3   : > { %1535 = vperm.xlu0 %1944, %v1532_v61  }
 0x247   : > { %v1549_v1 = vpop.permute.xlu1 %1548 }
 0x252   : > { %v1536_v62 = vpop.permute.xlu0 %1535 }
 0x253   : > { %v1538_v63 = vmul.f32 %v1906_v54, %v1536_v62 }
 0x255   : > { %v1545_v0 = vadd.f32 %v1899_v39, %v1538_v63 }
 0x257   : > { %v1551_v2 = vmul.f32 %v1549_v1, %v1545_v0 }
 0x259   : > { %v1552_v3 = vmax.f32 %v1551_v2, 0.0 }
 0x25b   : > { %v1905_v4 = vpack.c.bf16 %v1529_v20, %v1552_v3 }
 0x25d   : > { %1564 = vst.msk [vmem:[%s170_s21] sm:$0x77] %vm1563_vm7, %v1905_v4 }
 0x25e PF: > { %s13_s12 = sadd.s32 1, %s2166_s12  }
 0x25f   : > { %p10_p4 = scmp.ge.s32.totalorder %s13_s12, 4  }
 0x261   :  { %12 = sbr.rel (!%p10_p4) target bundleno = 1 (0x1), region = 68 }

</bundles_post_ra>
